<compile_context>
chip_gen: v7x
topology: tpu7x:2x2x1
jax: 0.10.0
libtpu: 0.0.40
codegen_flags: <defaults>
</compile_context>

<pallas_src>
import functools

import jax
import jax.numpy as jnp
from jax.experimental import pallas as pl
from jax.experimental.pallas import tpu as pltpu


def _pad128(d):
    return max(128, ((d + 127) // 128) * 128)


# ---------------------------------------------------------------------------
# Kernel: all 12 Linear layers + LeakyReLU fused.
# refs = (x_ref, w_slab_refs..., b_ref, out_ref)
# layer_specs: static tuple of (slab_idx, kp, np_, w_col, b_col) per layer.
# ---------------------------------------------------------------------------
def thermonet_kernel(*refs, layer_specs, n_slabs):
    x_ref = refs[0]
    w_refs = refs[1:1 + n_slabs]
    b_ref = refs[1 + n_slabs]
    out_ref = refs[2 + n_slabs]

    n_layers = len(layer_specs)
    h = x_ref[...]  # [TB, in_pad] f32 (zero-padded features)
    for i, (si, kp, np_, wc, bc) in enumerate(layer_specs):
        assert h.shape == (x_ref.shape[0], kp)           # trace-time check
        w = w_refs[si][:, wc:wc + np_]                    # bf16 [kp, np_], static aligned slice
        h = jnp.dot(h.astype(jnp.bfloat16), w,           # bf16 in, f32 accumulate (MXU)
                    preferred_element_type=jnp.float32)
        h = h + b_ref[0:1, bc:bc + np_]                   # f32 bias add (broadcast over rows)
        if i < n_layers - 1:                              # fc12 has no activation
            h = jnp.maximum(h, 0.01 * h)                  # LeakyReLU, 2 VALU ops
    out_ref[...] = h.astype(out_ref.dtype)                # lane-dense [TB, out_pad] store


# ---------------------------------------------------------------------------
# Parameter construction / packing
# ---------------------------------------------------------------------------
def init_params(key, in_channels, hidden_channels, out_channels):
    """Synthetic params matching ThermoNet('linear') shapes (PyTorch-style init).

    Returns list of (w, b) with w stored transposed: [in_features, out_features].
    """
    dims = [
        in_channels,
        hidden_channels,
        hidden_channels * 2,
        hidden_channels * 4,
        hidden_channels * 8,
        hidden_channels * 16,
        hidden_channels * 32,
        hidden_channels * 16,
        hidden_channels * 8,
        hidden_channels * 4,
        hidden_channels * 2,
        hidden_channels,
        out_channels,
    ]
    params = []
    for i in range(len(dims) - 1):
        k_in, k_out = dims[i], dims[i + 1]
        key, kw, kb = jax.random.split(key, 3)
        scale = 1.0 / jnp.sqrt(jnp.float32(k_in))
        w = (jax.random.uniform(kw, (k_in, k_out), jnp.float32) * 2.0 - 1.0) * scale
        b = (jax.random.uniform(kb, (k_out,), jnp.float32) * 2.0 - 1.0) * scale
        params.append((w, b))
    return params


def prepare_params(params):
    """Zero-pad every layer to 128-multiples and pack compactly.

    Weights are grouped by padded input width kp into a few contiguous bf16
    slabs of shape [kp, sum(np_ of layers with that kp)]; biases go into one
    f32 [1, sum(np_)] row.  Total bytes == sum(kp*np_)*2 (no slab waste).
    """
    padded = [(_pad128(w.shape[0]), _pad128(w.shape[1])) for w, _ in params]
    kps = sorted({kp for kp, _ in padded})

    # Per-slab running column offsets.
    slab_width = {kp: 0 for kp in kps}
    wcols = []
    for kp, np_ in padded:
        wcols.append(slab_width[kp])
        slab_width[kp] += np_

    slab_arrays = {kp: jnp.zeros((kp, slab_width[kp]), jnp.float32) for kp in kps}
    b_total = sum(np_ for _, np_ in padded)
    packed_b = jnp.zeros((1, b_total), jnp.float32)

    layer_specs = []
    boff = 0
    for li, ((w, b), (kp, np_)) in enumerate(zip(params, padded)):
        k, n = w.shape
        c = wcols[li]
        slab_arrays[kp] = slab_arrays[kp].at[:k, c:c + n].set(w)
        packed_b = packed_b.at[0, boff:boff + n].set(b)
        layer_specs.append((kps.index(kp), kp, np_, c, boff))
        boff += np_

    w_slabs = tuple(slab_arrays[kp].astype(jnp.bfloat16) for kp in kps)
    return w_slabs, packed_b, tuple(layer_specs)


# ---------------------------------------------------------------------------
# Wrapper
# ---------------------------------------------------------------------------
@functools.partial(jax.jit, static_argnames=("layer_specs", "out_channels"))
def thermonet_forward(x_nchw, w_slabs, packed_b, layer_specs, out_channels):
    # torch's x.squeeze() with unit trailing spatial dims.  We keep the batch
    # dim even for B == 1 (API difference vs. torch, which would drop it).
    assert all(int(d) == 1 for d in x_nchw.shape[2:]), (
        "ThermoNet 'linear' forward expects unit spatial dims (H=W=1)")
    B, C = x_nchw.shape[0], x_nchw.shape[1]
    x = x_nchw.reshape(B, C).astype(jnp.float32)

    n_layers = len(layer_specs)
    in_pad = layer_specs[0][1]     # padded kp of first layer
    out_pad = layer_specs[-1][2]   # padded np_ of last layer
    n_slabs = len(w_slabs)

    # Batch tiling.  TB capped at 128 on v5e (128-wide MXU M streaming, 1 vst
    # slot), 256 elsewhere.  Larger batches => >=2 grid steps, sharded across
    # v7x's two TensorCores via "parallel"; weights stay resident per core.
    kind = jax.devices()[0].device_kind.lower()
    tb_cap = 128 if "v5" in kind else 256
    B_pad = max(8, ((B + 7) // 8) * 8)
    TB = min(B_pad, tb_cap)
    B_pad = ((B_pad + TB - 1) // TB) * TB
    grid = (B_pad // TB,)

    x_p = jnp.zeros((B_pad, in_pad), jnp.float32).at[:B, :C].set(x)

    flops = 2 * B_pad * sum(kp * np_ for (_, kp, np_, _, _) in layer_specs)
    bytes_accessed = (x_p.size * 4 + sum(int(w.size) for w in w_slabs) * 2
                      + packed_b.size * 4 + B_pad * out_pad * 4)

    kernel = functools.partial(thermonet_kernel,
                               layer_specs=layer_specs, n_slabs=n_slabs)

    in_specs = [pl.BlockSpec((TB, in_pad), lambda i: (i, 0))]
    for w in w_slabs:
        # Constant index_map -> weight slab DMA'd once, resident across tiles.
        in_specs.append(pl.BlockSpec(w.shape, lambda i: (0, 0)))
    in_specs.append(pl.BlockSpec(packed_b.shape, lambda i: (0, 0)))

    out_p = pl.pallas_call(
        kernel,
        out_shape=jax.ShapeDtypeStruct((B_pad, out_pad), jnp.float32),
        grid=grid,
        in_specs=in_specs,
        out_specs=pl.BlockSpec((TB, out_pad), lambda i: (i, 0)),
        compiler_params=pltpu.CompilerParams(
            dimension_semantics=("parallel",),
            vmem_limit_bytes=32 << 20,    # below v7x's 64 MiB physical VMEM
        ),
        cost_estimate=pl.CostEstimate(
            flops=flops, transcendentals=0, bytes_accessed=bytes_accessed),
    )(x_p, *w_slabs, packed_b)

    return out_p[:B, :out_channels]


def reference_forward(x_nchw, params):
    """Pure-JAX reference with the same bf16-weight / f32-accum numerics."""
    B, C = x_nchw.shape[0], x_nchw.shape[1]
    h = x_nchw.reshape(B, C).astype(jnp.float32)
    n_layers = len(params)
    for i, (w, b) in enumerate(params):
        h = jnp.dot(h.astype(jnp.bfloat16), w.astype(jnp.bfloat16),
                    preferred_element_type=jnp.float32) + b
        if i < n_layers - 1:
            h = jnp.where(h > 0, h, 0.01 * h)
    return h


if __name__ == "__main__":
    in_channels, hidden_channels, out_channels = 4, 32, 8
    B = 8

    key = jax.random.PRNGKey(0)
    key, kx = jax.random.split(key)
    # PyTorch-style NCHW conv-like input with unit spatial dims.
    x = jax.random.normal(kx, (B, in_channels, 1, 1), jnp.float32)

    params = init_params(key, in_channels, hidden_channels, out_channels)
    w_slabs, packed_b, layer_specs = prepare_params(params)

    out = thermonet_forward(x, w_slabs, packed_b, layer_specs, out_channels)
    out = jax.block_until_ready(out)

    ref = reference_forward(x, params)
    assert out.shape == (B, out_channels), out.shape
    assert jnp.allclose(out, ref, atol=2e-3, rtol=2e-3), "mismatch vs reference"

    print("KERNEL_OK")
</pallas_src>

<mosaic_0001>
module attributes {stable_mosaic.version = 11 : i64} {
  func.func @thermonet_kernel(%arg0: i32, %arg1: memref<8x128xf32, #tpu.memory_space<vmem>>, %arg2: memref<128x1024xbf16, #tpu.memory_space<vmem>>, %arg3: memref<256x640xbf16, #tpu.memory_space<vmem>>, %arg4: memref<512x1280xbf16, #tpu.memory_space<vmem>>, %arg5: memref<1024x512xbf16, #tpu.memory_space<vmem>>, %arg6: memref<1x3456xf32, #tpu.memory_space<vmem>>, %arg7: memref<8x128xf32, #tpu.memory_space<vmem>>) attributes {dimension_semantics = [#tpu.dimension_semantics<parallel>], iteration_bounds = array<i64: 1>, scalar_prefetch = 0 : i64, scratch_operands = 0 : i64, tpu.core_type = #tpu.core_type<tc>, window_params = [{transform_indices = @transform_0, window_bounds = array<i64: 8, 128>}, {pipeline_mode = #tpu.pipeline_mode<synchronous>, transform_indices = @transform_1, window_bounds = array<i64: 128, 1024>}, {pipeline_mode = #tpu.pipeline_mode<synchronous>, transform_indices = @transform_2, window_bounds = array<i64: 256, 640>}, {pipeline_mode = #tpu.pipeline_mode<synchronous>, transform_indices = @transform_3, window_bounds = array<i64: 512, 1280>}, {pipeline_mode = #tpu.pipeline_mode<synchronous>, transform_indices = @transform_4, window_bounds = array<i64: 1024, 512>}, {pipeline_mode = #tpu.pipeline_mode<synchronous>, transform_indices = @transform_5, window_bounds = array<i64: 1, 3456>}, {transform_indices = @transform_6, window_bounds = array<i64: 8, 128>}]} {
    %c0 = arith.constant 0 : index
    %c0_0 = arith.constant 0 : index
    %0 = vector.load %arg1[%c0, %c0_0] : memref<8x128xf32, #tpu.memory_space<vmem>>, vector<8x128xf32>
    %c0_1 = arith.constant 0 : index
    %c0_2 = arith.constant 0 : index
    %1 = vector.load %arg2[%c0_1, %c0_2] : memref<128x1024xbf16, #tpu.memory_space<vmem>>, vector<128x128xbf16>
    %2 = arith.truncf %0 : vector<8x128xf32> to vector<8x128xbf16>
    %cst = arith.constant dense<0.000000e+00> : vector<8x128xf32>
    %3 = tpu.matmul %2, %1, %cst {dimension_numbers = #tpu.dot_dimension_numbers<[1], [0], [0], [1], [0, 0, 1, 1], [], []>} : vector<8x128xbf16>, vector<128x128xbf16>, vector<8x128xf32> -> vector<8x128xf32>
    %c0_3 = arith.constant 0 : index
    %c0_4 = arith.constant 0 : index
    %4 = vector.load %arg6[%c0_3, %c0_4] : memref<1x3456xf32, #tpu.memory_space<vmem>>, vector<1x128xf32>
    %5 = vector.broadcast %4 : vector<1x128xf32> to vector<8x128xf32>
    %6 = arith.addf %3, %5 : vector<8x128xf32>
    %cst_5 = arith.constant 0.00999999977 : f32
    %7 = vector.broadcast %cst_5 : f32 to vector<8x128xf32>
    %8 = arith.mulf %7, %6 : vector<8x128xf32>
    %9 = arith.maximumf %6, %8 : vector<8x128xf32>
    %c0_6 = arith.constant 0 : index
    %c128 = arith.constant 128 : index
    %10 = vector.load %arg2[%c0_6, %c128] : memref<128x1024xbf16, #tpu.memory_space<vmem>>, vector<128x128xbf16>
    %11 = arith.truncf %9 : vector<8x128xf32> to vector<8x128xbf16>
    %cst_7 = arith.constant dense<0.000000e+00> : vector<8x128xf32>
    %12 = tpu.matmul %11, %10, %cst_7 {dimension_numbers = #tpu.dot_dimension_numbers<[1], [0], [0], [1], [0, 0, 1, 1], [], []>} : vector<8x128xbf16>, vector<128x128xbf16>, vector<8x128xf32> -> vector<8x128xf32>
    %c0_8 = arith.constant 0 : index
    %c128_9 = arith.constant 128 : index
    %13 = vector.load %arg6[%c0_8, %c128_9] : memref<1x3456xf32, #tpu.memory_space<vmem>>, vector<1x128xf32>
    %14 = vector.broadcast %13 : vector<1x128xf32> to vector<8x128xf32>
    %15 = arith.addf %12, %14 : vector<8x128xf32>
    %cst_10 = arith.constant 0.00999999977 : f32
    %16 = vector.broadcast %cst_10 : f32 to vector<8x128xf32>
    %17 = arith.mulf %16, %15 : vector<8x128xf32>
    %18 = arith.maximumf %15, %17 : vector<8x128xf32>
    %c0_11 = arith.constant 0 : index
    %c256 = arith.constant 256 : index
    %19 = vector.load %arg2[%c0_11, %c256] : memref<128x1024xbf16, #tpu.memory_space<vmem>>, vector<128x128xbf16>
    %20 = arith.truncf %18 : vector<8x128xf32> to vector<8x128xbf16>
    %cst_12 = arith.constant dense<0.000000e+00> : vector<8x128xf32>
    %21 = tpu.matmul %20, %19, %cst_12 {dimension_numbers = #tpu.dot_dimension_numbers<[1], [0], [0], [1], [0, 0, 1, 1], [], []>} : vector<8x128xbf16>, vector<128x128xbf16>, vector<8x128xf32> -> vector<8x128xf32>
    %c0_13 = arith.constant 0 : index
    %c256_14 = arith.constant 256 : index
    %22 = vector.load %arg6[%c0_13, %c256_14] : memref<1x3456xf32, #tpu.memory_space<vmem>>, vector<1x128xf32>
    %23 = vector.broadcast %22 : vector<1x128xf32> to vector<8x128xf32>
    %24 = arith.addf %21, %23 : vector<8x128xf32>
    %cst_15 = arith.constant 0.00999999977 : f32
    %25 = vector.broadcast %cst_15 : f32 to vector<8x128xf32>
    %26 = arith.mulf %25, %24 : vector<8x128xf32>
    %27 = arith.maximumf %24, %26 : vector<8x128xf32>
    %c0_16 = arith.constant 0 : index
    %c384 = arith.constant 384 : index
    %28 = vector.load %arg2[%c0_16, %c384] : memref<128x1024xbf16, #tpu.memory_space<vmem>>, vector<128x256xbf16>
    %29 = arith.truncf %27 : vector<8x128xf32> to vector<8x128xbf16>
    %cst_17 = arith.constant dense<0.000000e+00> : vector<8x256xf32>
    %30 = tpu.matmul %29, %28, %cst_17 {dimension_numbers = #tpu.dot_dimension_numbers<[1], [0], [0], [1], [0, 0, 1, 1], [], []>} : vector<8x128xbf16>, vector<128x256xbf16>, vector<8x256xf32> -> vector<8x256xf32>
    %c0_18 = arith.constant 0 : index
    %c384_19 = arith.constant 384 : index
    %31 = vector.load %arg6[%c0_18, %c384_19] : memref<1x3456xf32, #tpu.memory_space<vmem>>, vector<1x256xf32>
    %32 = vector.broadcast %31 : vector<1x256xf32> to vector<8x256xf32>
    %33 = arith.addf %30, %32 : vector<8x256xf32>
    %cst_20 = arith.constant 0.00999999977 : f32
    %34 = vector.broadcast %cst_20 : f32 to vector<8x256xf32>
    %35 = arith.mulf %34, %33 : vector<8x256xf32>
    %36 = arith.maximumf %33, %35 : vector<8x256xf32>
    %c0_21 = arith.constant 0 : index
    %c0_22 = arith.constant 0 : index
    %37 = vector.load %arg3[%c0_21, %c0_22] : memref<256x640xbf16, #tpu.memory_space<vmem>>, vector<256x512xbf16>
    %38 = arith.truncf %36 : vector<8x256xf32> to vector<8x256xbf16>
    %cst_23 = arith.constant dense<0.000000e+00> : vector<8x512xf32>
    %39 = tpu.matmul %38, %37, %cst_23 {dimension_numbers = #tpu.dot_dimension_numbers<[1], [0], [0], [1], [0, 0, 1, 1], [], []>} : vector<8x256xbf16>, vector<256x512xbf16>, vector<8x512xf32> -> vector<8x512xf32>
    %c0_24 = arith.constant 0 : index
    %c640 = arith.constant 640 : index
    %40 = vector.load %arg6[%c0_24, %c640] : memref<1x3456xf32, #tpu.memory_space<vmem>>, vector<1x512xf32>
    %41 = vector.broadcast %40 : vector<1x512xf32> to vector<8x512xf32>
    %42 = arith.addf %39, %41 : vector<8x512xf32>
    %cst_25 = arith.constant 0.00999999977 : f32
    %43 = vector.broadcast %cst_25 : f32 to vector<8x512xf32>
    %44 = arith.mulf %43, %42 : vector<8x512xf32>
    %45 = arith.maximumf %42, %44 : vector<8x512xf32>
    %c0_26 = arith.constant 0 : index
    %c0_27 = arith.constant 0 : index
    %46 = vector.load %arg4[%c0_26, %c0_27] : memref<512x1280xbf16, #tpu.memory_space<vmem>>, vector<512x1024xbf16>
    %47 = arith.truncf %45 : vector<8x512xf32> to vector<8x512xbf16>
    %cst_28 = arith.constant dense<0.000000e+00> : vector<8x1024xf32>
    %48 = tpu.matmul %47, %46, %cst_28 {dimension_numbers = #tpu.dot_dimension_numbers<[1], [0], [0], [1], [0, 0, 1, 1], [], []>} : vector<8x512xbf16>, vector<512x1024xbf16>, vector<8x1024xf32> -> vector<8x1024xf32>
    %c0_29 = arith.constant 0 : index
    %c1152 = arith.constant 1152 : index
    %49 = vector.load %arg6[%c0_29, %c1152] : memref<1x3456xf32, #tpu.memory_space<vmem>>, vector<1x1024xf32>
    %50 = vector.broadcast %49 : vector<1x1024xf32> to vector<8x1024xf32>
    %51 = arith.addf %48, %50 : vector<8x1024xf32>
    %cst_30 = arith.constant 0.00999999977 : f32
    %52 = vector.broadcast %cst_30 : f32 to vector<8x1024xf32>
    %53 = arith.mulf %52, %51 : vector<8x1024xf32>
    %54 = arith.maximumf %51, %53 : vector<8x1024xf32>
    %c0_31 = arith.constant 0 : index
    %c0_32 = arith.constant 0 : index
    %55 = vector.load %arg5[%c0_31, %c0_32] : memref<1024x512xbf16, #tpu.memory_space<vmem>>, vector<1024x512xbf16>
    %56 = arith.truncf %54 : vector<8x1024xf32> to vector<8x1024xbf16>
    %cst_33 = arith.constant dense<0.000000e+00> : vector<8x512xf32>
    %57 = tpu.matmul %56, %55, %cst_33 {dimension_numbers = #tpu.dot_dimension_numbers<[1], [0], [0], [1], [0, 0, 1, 1], [], []>} : vector<8x1024xbf16>, vector<1024x512xbf16>, vector<8x512xf32> -> vector<8x512xf32>
    %c0_34 = arith.constant 0 : index
    %c2176 = arith.constant 2176 : index
    %58 = vector.load %arg6[%c0_34, %c2176] : memref<1x3456xf32, #tpu.memory_space<vmem>>, vector<1x512xf32>
    %59 = vector.broadcast %58 : vector<1x512xf32> to vector<8x512xf32>
    %60 = arith.addf %57, %59 : vector<8x512xf32>
    %cst_35 = arith.constant 0.00999999977 : f32
    %61 = vector.broadcast %cst_35 : f32 to vector<8x512xf32>
    %62 = arith.mulf %61, %60 : vector<8x512xf32>
    %63 = arith.maximumf %60, %62 : vector<8x512xf32>
    %c0_36 = arith.constant 0 : index
    %c1024 = arith.constant 1024 : index
    %64 = vector.load %arg4[%c0_36, %c1024] : memref<512x1280xbf16, #tpu.memory_space<vmem>>, vector<512x256xbf16>
    %65 = arith.truncf %63 : vector<8x512xf32> to vector<8x512xbf16>
    %cst_37 = arith.constant dense<0.000000e+00> : vector<8x256xf32>
    %66 = tpu.matmul %65, %64, %cst_37 {dimension_numbers = #tpu.dot_dimension_numbers<[1], [0], [0], [1], [0, 0, 1, 1], [], []>} : vector<8x512xbf16>, vector<512x256xbf16>, vector<8x256xf32> -> vector<8x256xf32>
    %c0_38 = arith.constant 0 : index
    %c2688 = arith.constant 2688 : index
    %67 = vector.load %arg6[%c0_38, %c2688] : memref<1x3456xf32, #tpu.memory_space<vmem>>, vector<1x256xf32>
    %68 = vector.broadcast %67 : vector<1x256xf32> to vector<8x256xf32>
    %69 = arith.addf %66, %68 : vector<8x256xf32>
    %cst_39 = arith.constant 0.00999999977 : f32
    %70 = vector.broadcast %cst_39 : f32 to vector<8x256xf32>
    %71 = arith.mulf %70, %69 : vector<8x256xf32>
    %72 = arith.maximumf %69, %71 : vector<8x256xf32>
    %c0_40 = arith.constant 0 : index
    %c512 = arith.constant 512 : index
    %73 = vector.load %arg3[%c0_40, %c512] : memref<256x640xbf16, #tpu.memory_space<vmem>>, vector<256x128xbf16>
    %74 = arith.truncf %72 : vector<8x256xf32> to vector<8x256xbf16>
    %cst_41 = arith.constant dense<0.000000e+00> : vector<8x128xf32>
    %75 = tpu.matmul %74, %73, %cst_41 {dimension_numbers = #tpu.dot_dimension_numbers<[1], [0], [0], [1], [0, 0, 1, 1], [], []>} : vector<8x256xbf16>, vector<256x128xbf16>, vector<8x128xf32> -> vector<8x128xf32>
    %c0_42 = arith.constant 0 : index
    %c2944 = arith.constant 2944 : index
    %76 = vector.load %arg6[%c0_42, %c2944] : memref<1x3456xf32, #tpu.memory_space<vmem>>, vector<1x128xf32>
    %77 = vector.broadcast %76 : vector<1x128xf32> to vector<8x128xf32>
    %78 = arith.addf %75, %77 : vector<8x128xf32>
    %cst_43 = arith.constant 0.00999999977 : f32
    %79 = vector.broadcast %cst_43 : f32 to vector<8x128xf32>
    %80 = arith.mulf %79, %78 : vector<8x128xf32>
    %81 = arith.maximumf %78, %80 : vector<8x128xf32>
    %c0_44 = arith.constant 0 : index
    %c640_45 = arith.constant 640 : index
    %82 = vector.load %arg2[%c0_44, %c640_45] : memref<128x1024xbf16, #tpu.memory_space<vmem>>, vector<128x128xbf16>
    %83 = arith.truncf %81 : vector<8x128xf32> to vector<8x128xbf16>
    %cst_46 = arith.constant dense<0.000000e+00> : vector<8x128xf32>
    %84 = tpu.matmul %83, %82, %cst_46 {dimension_numbers = #tpu.dot_dimension_numbers<[1], [0], [0], [1], [0, 0, 1, 1], [], []>} : vector<8x128xbf16>, vector<128x128xbf16>, vector<8x128xf32> -> vector<8x128xf32>
    %c0_47 = arith.constant 0 : index
    %c3072 = arith.constant 3072 : index
    %85 = vector.load %arg6[%c0_47, %c3072] : memref<1x3456xf32, #tpu.memory_space<vmem>>, vector<1x128xf32>
    %86 = vector.broadcast %85 : vector<1x128xf32> to vector<8x128xf32>
    %87 = arith.addf %84, %86 : vector<8x128xf32>
    %cst_48 = arith.constant 0.00999999977 : f32
    %88 = vector.broadcast %cst_48 : f32 to vector<8x128xf32>
    %89 = arith.mulf %88, %87 : vector<8x128xf32>
    %90 = arith.maximumf %87, %89 : vector<8x128xf32>
    %c0_49 = arith.constant 0 : index
    %c768 = arith.constant 768 : index
    %91 = vector.load %arg2[%c0_49, %c768] : memref<128x1024xbf16, #tpu.memory_space<vmem>>, vector<128x128xbf16>
    %92 = arith.truncf %90 : vector<8x128xf32> to vector<8x128xbf16>
    %cst_50 = arith.constant dense<0.000000e+00> : vector<8x128xf32>
    %93 = tpu.matmul %92, %91, %cst_50 {dimension_numbers = #tpu.dot_dimension_numbers<[1], [0], [0], [1], [0, 0, 1, 1], [], []>} : vector<8x128xbf16>, vector<128x128xbf16>, vector<8x128xf32> -> vector<8x128xf32>
    %c0_51 = arith.constant 0 : index
    %c3200 = arith.constant 3200 : index
    %94 = vector.load %arg6[%c0_51, %c3200] : memref<1x3456xf32, #tpu.memory_space<vmem>>, vector<1x128xf32>
    %95 = vector.broadcast %94 : vector<1x128xf32> to vector<8x128xf32>
    %96 = arith.addf %93, %95 : vector<8x128xf32>
    %cst_52 = arith.constant 0.00999999977 : f32
    %97 = vector.broadcast %cst_52 : f32 to vector<8x128xf32>
    %98 = arith.mulf %97, %96 : vector<8x128xf32>
    %99 = arith.maximumf %96, %98 : vector<8x128xf32>
    %c0_53 = arith.constant 0 : index
    %c896 = arith.constant 896 : index
    %100 = vector.load %arg2[%c0_53, %c896] : memref<128x1024xbf16, #tpu.memory_space<vmem>>, vector<128x128xbf16>
    %101 = arith.truncf %99 : vector<8x128xf32> to vector<8x128xbf16>
    %cst_54 = arith.constant dense<0.000000e+00> : vector<8x128xf32>
    %102 = tpu.matmul %101, %100, %cst_54 {dimension_numbers = #tpu.dot_dimension_numbers<[1], [0], [0], [1], [0, 0, 1, 1], [], []>} : vector<8x128xbf16>, vector<128x128xbf16>, vector<8x128xf32> -> vector<8x128xf32>
    %c0_55 = arith.constant 0 : index
    %c3328 = arith.constant 3328 : index
    %103 = vector.load %arg6[%c0_55, %c3328] : memref<1x3456xf32, #tpu.memory_space<vmem>>, vector<1x128xf32>
    %104 = vector.broadcast %103 : vector<1x128xf32> to vector<8x128xf32>
    %105 = arith.addf %102, %104 : vector<8x128xf32>
    %c0_56 = arith.constant 0 : index
    %c0_57 = arith.constant 0 : index
    %106 = vector.load %arg7[%c0_56, %c0_57] : memref<8x128xf32, #tpu.memory_space<vmem>>, vector<8x128xf32>
    tpu.vector_store %arg7[%c0_56, %c0_57], %105 {strides = array<i32>} : memref<8x128xf32, #tpu.memory_space<vmem>>, vector<8x128xf32>,
    return
  }
  func.func @transform_0(%arg0: i32) -> (i32, i32) {
    %c0_i32 = arith.constant 0 : i32
    %c0_i32_0 = arith.constant 0 : i32
    return %arg0, %c0_i32 : i32, i32
  }
  func.func @transform_1(%arg0: i32) -> (i32, i32) {
    %c0_i32 = arith.constant 0 : i32
    %c0_i32_0 = arith.constant 0 : i32
    %c0_i32_1 = arith.constant 0 : i32
    return %c0_i32, %c0_i32_0 : i32, i32
  }
  func.func @transform_2(%arg0: i32) -> (i32, i32) {
    %c0_i32 = arith.constant 0 : i32
    %c0_i32_0 = arith.constant 0 : i32
    %c0_i32_1 = arith.constant 0 : i32
    return %c0_i32, %c0_i32_0 : i32, i32
  }
  func.func @transform_3(%arg0: i32) -> (i32, i32) {
    %c0_i32 = arith.constant 0 : i32
    %c0_i32_0 = arith.constant 0 : i32
    %c0_i32_1 = arith.constant 0 : i32
    return %c0_i32, %c0_i32_0 : i32, i32
  }
  func.func @transform_4(%arg0: i32) -> (i32, i32) {
    %c0_i32 = arith.constant 0 : i32
    %c0_i32_0 = arith.constant 0 : i32
    %c0_i32_1 = arith.constant 0 : i32
    return %c0_i32, %c0_i32_0 : i32, i32
  }
  func.func @transform_5(%arg0: i32) -> (i32, i32) {
    %c0_i32 = arith.constant 0 : i32
    %c0_i32_0 = arith.constant 0 : i32
    %c0_i32_1 = arith.constant 0 : i32
    return %c0_i32, %c0_i32_0 : i32, i32
  }
  func.func @transform_6(%arg0: i32) -> (i32, i32) {
    %c0_i32 = arith.constant 0 : i32
    %c0_i32_0 = arith.constant 0 : i32
    return %arg0, %c0_i32 : i32, i32
  }
}

</mosaic_0001>

<bundles_post_ra>
// kernel: thermonet_forward.1
= control target key start
LH: loop header
LB: loop body
LE: loop exit
PB: predicated region body
PF: predicated region fallthrough
CT: control target
= control target key end

     0   :  { %11 = vsyncpa [#allocation3], 0  ;;  %s8330_s0 = inlined_call_operand.vmem [shape: f32[8,128], index: 0, kind: input, shape index: {}]   ;;  %s8331_s1 = inlined_call_operand.hbm [shape: bf16[128,1024], index: 1, kind: input, shape index: {}]   ;;  %s8332_s2 = inlined_call_operand.hbm [shape: bf16[256,640], index: 2, kind: input, shape index: {}]   ;;  %s8333_s3 = inlined_call_operand.hbm [shape: bf16[512,1280], index: 3, kind: input, shape index: {}]   ;;  %s8334_s4 = inlined_call_operand.hbm [shape: bf16[1024,512], index: 4, kind: input, shape index: {}]   ;;  %s8335_s5 = inlined_call_operand.hbm [shape: f32[1,3456], index: 5, kind: input, shape index: {}]   ;;  %s8336_s6 = inlined_call_operand.hbm [shape: f32[8,128], index: 6, kind: output, shape index: {}]  }
   0x1   :  { %12 = vsyncpa [#allocation6], 0 }
   0x2   :  { %13 = vsyncpa [#allocation9], 0 }
   0x3   :  { %14 = vsyncpa [#allocation4], 0  ;;  %s8051_s21 = smov [#allocation5]   ;;  %s7911_s25 = scalar_lea.hbm %s8332_s2, 10240 }
   0x4   :  { %s34_s22 = sshll.u32 %s8051_s21, 4  ;;  %p7912_p0 = scmp.ne.s32.totalorder %s8332_s2, %s7911_s25  ;;  %s35_s22 = int_to_ptr.vmem [resolvable:$true] %s34_s22 }
   0x5   :  { %p7915_p1 = scmp.lt.u32.totalorder %s7911_s25, %s8332_s2 }
   0x7   :  { %p7917_p2 = pnand %p7915_p1, %p7912_p0 }
   0x9   :  { %7920 = shalt.err (!%p7917_p2)
}
   0xa   :  { %s7921_s30 = scalar_lea.vmem %s35_s22, 10240  ;;  %p7926_p4 = scmp.lt.s32.totalorder %s35_s22, %s35_s22 }
   0xb   :  { %p7922_p3 = scmp.ne.s32.totalorder %s35_s22, %s7921_s30  ;;  %p7927_p5 = scmp.lt.s32.totalorder %s7921_s30, %s7921_s30 }
   0xd   :  { %p7928_p6 = por %p7927_p5, %p7926_p4 }
   0xf   :  { %p7929_p7 = pnand %p7928_p6, %p7922_p3 }
  0x11   :  { %7932 = shalt.err (!%p7929_p7)
}
  0x12   :  { %s8052_s7 = smov 320   ;;  %s8053_s8 = smov 20  }
  0x13   :  { %40 = dma.hbm_to_vmem [thread:$0]  %s8332_s2, 10240, %s35_s22, [#allocation6], %s8052_s7, %s8052_s7, %s8053_s8  }
  0x14   :  { %s8054_s11 = smov [#allocation8]   ;;  %s7933_s15 = scalar_lea.hbm %s8334_s4, 32768 }
  0x15   :  { %s58_s12 = sshll.u32 %s8054_s11, 4  ;;  %p7934_p8 = scmp.ne.s32.totalorder %s8334_s4, %s7933_s15  ;;  %s59_s12 = int_to_ptr.vmem [resolvable:$true] %s58_s12 }
  0x16   :  { %p7937_p9 = scmp.lt.u32.totalorder %s7933_s15, %s8334_s4 }
  0x18   :  { %p7939_p10 = pnand %p7937_p9, %p7934_p8 }
  0x1a   :  { %7942 = shalt.err (!%p7939_p10)
}
  0x1b   :  { %s7943_s20 = scalar_lea.vmem %s59_s12, 32768  ;;  %p7948_p12 = scmp.lt.s32.totalorder %s59_s12, %s59_s12 }
  0x1c   :  { %p7944_p11 = scmp.ne.s32.totalorder %s59_s12, %s7943_s20  ;;  %p7949_p13 = scmp.lt.s32.totalorder %s7943_s20, %s7943_s20 }
  0x1e   :  { %p7950_p0 = por %p7949_p13, %p7948_p12 }
  0x20   :  { %p7951_p1 = pnand %p7950_p0, %p7944_p11 }
  0x22   :  { %7954 = shalt.err (!%p7951_p1)
}
  0x23   :  { %s8055_s2 = smov 256   ;;  %s8056_s21 = smov 16  }
  0x24   :  { %64 = dma.hbm_to_vmem [thread:$0]  %s8334_s4, 32768, %s59_s12, [#allocation9], %s8055_s2, %s8055_s2, %s8056_s21  }
  0x25   :  { %s8057_s24 = smov [#allocation2]   ;;  %s7955_s28 = scalar_lea.hbm %s8331_s1, 8192 }
  0x26   :  { %s22_s25 = sshll.u32 %s8057_s24, 4  ;;  %p7956_p2 = scmp.ne.s32.totalorder %s8331_s1, %s7955_s28  ;;  %s23_s25 = int_to_ptr.vmem [resolvable:$true] %s22_s25 }
  0x27   :  { %p7959_p3 = scmp.lt.u32.totalorder %s7955_s28, %s8331_s1 }
  0x29   :  { %p7961_p4 = pnand %p7959_p3, %p7956_p2 }
  0x2b   :  { %7964 = shalt.err (!%p7961_p4)
}
  0x2c   :  { %s7965_s9 = scalar_lea.vmem %s23_s25, 8192  ;;  %p7970_p6 = scmp.lt.s32.totalorder %s23_s25, %s23_s25 }
  0x2d   :  { %p7966_p5 = scmp.ne.s32.totalorder %s23_s25, %s7965_s9  ;;  %p7971_p7 = scmp.lt.s32.totalorder %s7965_s9, %s7965_s9 }
  0x2f   :  { %p7972_p8 = por %p7971_p7, %p7970_p6 }
  0x31   :  { %p7973_p9 = pnand %p7972_p8, %p7966_p5 }
  0x33   :  { %7976 = shalt.err (!%p7973_p9)
}
  0x34   :  { %s8058_s4 = smov 512   ;;  %s8059_s10 = smov 32  }
  0x35   :  { %28 = dma.hbm_to_vmem [thread:$0]  %s8331_s1, 8192, %s23_s25, [#allocation3], %s8058_s4, %s8058_s4, %s8059_s10  }
  0x36   :  { %s8060_s13 = smov [#allocation7]   ;;  %s7977_s17 = scalar_lea.hbm %s8333_s3, 40960 }
  0x37   :  { %s46_s14 = sshll.u32 %s8060_s13, 4  ;;  %p7978_p10 = scmp.ne.s32.totalorder %s8333_s3, %s7977_s17  ;;  %s47_s14 = int_to_ptr.vmem [resolvable:$true] %s46_s14 }
  0x38   :  { %p7981_p11 = scmp.lt.u32.totalorder %s7977_s17, %s8333_s3 }
  0x3a   :  { %p7983_p12 = pnand %p7981_p11, %p7978_p10 }
  0x3c   :  { %7986 = shalt.err (!%p7983_p12)
}
  0x3d   :  { %s7987_s21 = scalar_lea.vmem %s47_s14, 40960  ;;  %p7992_p0 = scmp.lt.s32.totalorder %s47_s14, %s47_s14 }
  0x3e   :  { %p7988_p13 = scmp.ne.s32.totalorder %s47_s14, %s7987_s21  ;;  %p7993_p1 = scmp.lt.s32.totalorder %s7987_s21, %s7987_s21 }
  0x40   :  { %p7994_p2 = por %p7993_p1, %p7992_p0 }
  0x42   :  { %p7995_p3 = pnand %p7994_p2, %p7988_p13 }
  0x44   :  { %7998 = shalt.err (!%p7995_p3)
}
  0x45   :  { %s8061_s1 = smov 640   ;;  %s8062_s22 = smov 40  }
  0x46   :  { %52 = dma.hbm_to_vmem [thread:$0]  %s8333_s3, 40960, %s47_s14, [#allocation6], %s8061_s1, %s8061_s1, %s8062_s22  }
  0x47   :  { %s8063_s25 = smov [#allocation10]   ;;  %s7999_s29 = scalar_lea.hbm %s8335_s5, 432 }
  0x48   :  { %s71_s26 = sshll.u32 %s8063_s25, 4  ;;  %p8000_p4 = scmp.ne.s32.totalorder %s8335_s5, %s7999_s29  ;;  %s72_s26 = int_to_ptr.vmem [resolvable:$true] %s71_s26 }
  0x49   :  { %p8003_p5 = scmp.lt.u32.totalorder %s7999_s29, %s8335_s5 }
  0x4b   :  { %p8005_p6 = pnand %p8003_p5, %p8000_p4 }
  0x4d   :  { %8008 = shalt.err (!%p8005_p6)
}
  0x4e   :  { %s8009_s4 = scalar_lea.vmem %s72_s26, 432  ;;  %s8013_s3 = scalar_lea.vmem %s72_s26, 448 }
  0x4f   :  { %p8010_p7 = scmp.ne.s32.totalorder %s72_s26, %s8009_s4  ;;  %p8014_p8 = scmp.lt.s32.totalorder %s72_s26, %s72_s26 }
  0x50   :  { %p8015_p9 = scmp.lt.s32.totalorder %s8013_s3, %s8009_s4 }
  0x52   :  { %p8016_p10 = por %p8015_p9, %p8014_p8 }
  0x54   :  { %p8017_p11 = pnand %p8016_p10, %p8010_p7 }
  0x56   :  { %8020 = shalt.err (!%p8017_p11)
}
  0x57   :  { %74 = dma.hbm_to_vmem [thread:$0]  %s8335_s5, 432, %s72_s26, [#allocation9]  }
  0x58   :  { %8043 = dma.done.wait [#allocation3], 8192  }
  0x59   :  { %8044 = vsyncadd [#allocation3], 4294959104 }
  0x5a   :  { %8045 = dma.done.wait [#allocation6], 51200  }
  0x5b   :  { %8046 = vsyncadd [#allocation6], 4294916096 }
  0x5c   :  { %8047 = dma.done.wait [#allocation9], 33200  }
  0x5d   :  { %8048 = vsyncadd [#allocation9], 4294934096  ;;  %v8064_v0 = vmov 0.0   ;;  %vm8065_vm0 = vmmov 0   ;;  %v92_v1 = vld [vmem:[#allocation2] sm:$0xf] }
  0x5e   :  { %6740 = vmatprep.subr.bf16.mxu0 %v8064_v0  ;;  %6756 = vmatprep.mubr.msk.bf16.mxu0 %vm8065_vm0, %v8064_v0  ;;  %v93_v2 = vld [vmem:[#allocation2 + $0x20] sm:$0xf]  ;;  %v206_v9 = vld [vmem:[#allocation2 + $0x4] sm:$0xf]  ;;  %v320_v51 = vld [vmem:[#allocation2 + $0x8] sm:$0xf] }
  0x5f   :  { %6760 = vmatprep.subr.bf16.mxu1 %v8064_v0  ;;  %6776 = vmatprep.mubr.msk.bf16.mxu1 %vm8065_vm0, %v8064_v0  ;;  %v94_v3 = vld [vmem:[#allocation2 + $0x40] sm:$0xf]  ;;  %v5938_v4 = vcombine.low %v92_v1, %v93_v2  ;;  %v207_v10 = vld [vmem:[#allocation2 + $0x24] sm:$0xf]  ;;  %v321_v52 = vld [vmem:[#allocation2 + $0x28] sm:$0xf] }
  0x60   :  { %v95_v5 = vld [vmem:[#allocation2 + $0x60] sm:$0xf]  ;;  %v208_v11 = vld [vmem:[#allocation2 + $0x44] sm:$0xf]  ;;  %v5947_v14 = vcombine.low %v206_v9, %v207_v10  ;;  %v322_v53 = vld [vmem:[#allocation2 + $0x48] sm:$0xf]  ;;  %v5956_v54 = vcombine.low %v320_v51, %v321_v52 }
  0x61   :  { %6741 = vmatpush3.bf16.msra.mxu0 %v5938_v4  ;;  %v5939_v6 = vcombine.low %v94_v3, %v95_v5  ;;  %v96_v7 = vld [vmem:[#allocation2 + $0x80] sm:$0xf]  ;;  %v209_v12 = vld [vmem:[#allocation2 + $0x64] sm:$0xf]  ;;  %v323_v55 = vld [vmem:[#allocation2 + $0x68] sm:$0xf] }
  0x62   :  { %6742 = vmatprep.subr.bf16.mxu0 %v8064_v0  ;;  %v97_v8 = vld [vmem:[#allocation2 + $0xa0] sm:$0xf]  ;;  %6761 = vmatpush3.bf16.msra.mxu1 %v5947_v14  ;;  %v5948_v17 = vcombine.low %v208_v11, %v209_v12  ;;  %v210_v18 = vld [vmem:[#allocation2 + $0x84] sm:$0xf]  ;;  %v5957_v56 = vcombine.low %v322_v53, %v323_v55  ;;  %v324_v57 = vld [vmem:[#allocation2 + $0x88] sm:$0xf] }
  0x63   :  { %v5940_v13 = vcombine.low %v96_v7, %v97_v8  ;;  %v98_v15 = vld [vmem:[#allocation2 + $0xc0] sm:$0xf]  ;;  %v211_v19 = vld [vmem:[#allocation2 + $0xa4] sm:$0xf]  ;;  %6762 = vmatprep.subr.bf16.mxu1 %v8064_v0  ;;  %v325_v58 = vld [vmem:[#allocation2 + $0xa8] sm:$0xf] }
  0x64   :  { %v99_v16 = vld [vmem:[#allocation2 + $0xe0] sm:$0xf]  ;;  %v212_v23 = vld [vmem:[#allocation2 + $0xc4] sm:$0xf]  ;;  %v5949_v25 = vcombine.low %v210_v18, %v211_v19  ;;  %v326_v59 = vld [vmem:[#allocation2 + $0xc8] sm:$0xf]  ;;  %v5958_v61 = vcombine.low %v324_v57, %v325_v58 }
  0x65   :  { %6743 = vmatpush3.bf16.msra.mxu0 %v5939_v6  ;;  %v100_v20 = vld [vmem:[#allocation2 + $0x100] sm:$0xf]  ;;  %v5941_v22 = vcombine.low %v98_v15, %v99_v16  ;;  %v213_v24 = vld [vmem:[#allocation2 + $0xe4] sm:$0xf]  ;;  %v327_v60 = vld [vmem:[#allocation2 + $0xe8] sm:$0xf] }
  0x66   :  { %6744 = vmatprep.subr.bf16.mxu0 %v8064_v0  ;;  %v101_v21 = vld [vmem:[#allocation2 + $0x120] sm:$0xf]  ;;  %6763 = vmatpush3.bf16.msra.mxu1 %v5948_v17  ;;  %v214_v29 = vld [vmem:[#allocation2 + $0x104] sm:$0xf]  ;;  %v5950_v31 = vcombine.low %v212_v23, %v213_v24  ;;  %v328_v62 = vld [vmem:[#allocation2 + $0x108] sm:$0xf]  ;;  %v5959_v1 = vcombine.low %v326_v59, %v327_v60 }
  0x67   :  { %v102_v26 = vld [vmem:[#allocation2 + $0x140] sm:$0xf]  ;;  %6764 = vmatprep.subr.bf16.mxu1 %v8064_v0  ;;  %v5942_v28 = vcombine.low %v100_v20, %v101_v21  ;;  %v215_v30 = vld [vmem:[#allocation2 + $0x124] sm:$0xf]  ;;  %v329_v63 = vld [vmem:[#allocation2 + $0x128] sm:$0xf] }
  0x68   :  { %v103_v27 = vld [vmem:[#allocation2 + $0x160] sm:$0xf]  ;;  %v216_v35 = vld [vmem:[#allocation2 + $0x144] sm:$0xf]  ;;  %v5951_v37 = vcombine.low %v214_v29, %v215_v30  ;;  %v330_v2 = vld [vmem:[#allocation2 + $0x148] sm:$0xf]  ;;  %v5960_v4 = vcombine.low %v328_v62, %v329_v63 }
  0x69   :  { %6745 = vmatpush3.bf16.msra.mxu0 %v5940_v13  ;;  %v104_v32 = vld [vmem:[#allocation2 + $0x180] sm:$0xf]  ;;  %v5943_v34 = vcombine.low %v102_v26, %v103_v27  ;;  %v217_v36 = vld [vmem:[#allocation2 + $0x164] sm:$0xf]  ;;  %v331_v3 = vld [vmem:[#allocation2 + $0x168] sm:$0xf] }
  0x6a   :  { %6746 = vmatprep.subr.bf16.mxu0 %v8064_v0  ;;  %6765 = vmatpush3.bf16.msra.mxu1 %v5949_v25  ;;  %v105_v33 = vld [vmem:[#allocation2 + $0x1a0] sm:$0xf]  ;;  %v5952_v42 = vcombine.low %v216_v35, %v217_v36  ;;  %v218_v45 = vld [vmem:[#allocation2 + $0x184] sm:$0xf]  ;;  %v5961_v5 = vcombine.low %v330_v2, %v331_v3  ;;  %v332_v15 = vld [vmem:[#allocation2 + $0x188] sm:$0xf] }
  0x6b   :  { %6766 = vmatprep.subr.bf16.mxu1 %v8064_v0  ;;  %v106_v38 = vld [vmem:[#allocation2 + $0x1c0] sm:$0xf]  ;;  %v5944_v40 = vcombine.low %v104_v32, %v105_v33  ;;  %v219_v46 = vld [vmem:[#allocation2 + $0x1a4] sm:$0xf]  ;;  %v333_v16 = vld [vmem:[#allocation2 + $0x1a8] sm:$0xf] }
  0x6c   :  { %v107_v39 = vld [vmem:[#allocation2 + $0x1e0] sm:$0xf]  ;;  %v5953_v47 = vcombine.low %v218_v45, %v219_v46  ;;  %v220_v48 = vld [vmem:[#allocation2 + $0x1c4] sm:$0xf]  ;;  %v5962_v17 = vcombine.low %v332_v15, %v333_v16  ;;  %v334_v18 = vld [vmem:[#allocation2 + $0x1c8] sm:$0xf] }
  0x6d   :  { %6747 = vmatpush3.bf16.msra.mxu0 %v5941_v22  ;;  %v91_v41 = vld [vmem:[%s8330_s0] sm:$0xff]  ;;  %v5945_v43 = vcombine.low %v106_v38, %v107_v39  ;;  %v335_v19 = vld [vmem:[#allocation2 + $0x1e8] sm:$0xf]  ;;  %v434_v21 = vld [vmem:[#allocation2 + $0xc] sm:$0xff]  ;;  %v8066_v62 = vmov 0   ;;  %s8067_s0 = smov [#allocation11]  }
  0x6e   :  { %6748 = vmatprep.subr.bf16.mxu0 %v8064_v0  ;;  %6767 = vmatpush3.bf16.msra.mxu1 %v5950_v31  ;;  %v108_v44 = vpack.c.bf16 %v91_v41, %v91_v41  ;;  %v221_v49 = vld [vmem:[#allocation2 + $0x1e4] sm:$0xf]  ;;  %v5937_v6 = vld [vmem:[#allocation10] ss:$0 sm:$0xff]  ;;  %v5963_v20 = vcombine.low %v334_v18, %v335_v19  ;;  %v435_v22 = vld [vmem:[#allocation2 + $0x2c] sm:$0xff]  ;;  %s5926_s13 = sshll.u32 %s8067_s0, 4  ;;  %s5927_s13 = int_to_ptr.vmem [resolvable:$true] %s5926_s13 }
  0x6f   :  { %6768 = vmatprep.subr.bf16.mxu1 %v8064_v0  ;;  %v5954_v50 = vcombine.low %v220_v48, %v221_v49  ;;  %v436_v23 = vld [vmem:[#allocation2 + $0x4c] sm:$0xff]  ;;  %v5964_v24 = vcombine.low %v434_v21, %v435_v22  ;;  %v5965_v25 = vcombine.high %v434_v21, %v435_v22  ;;  %v5946_v45 = vld [vmem:[#allocation10 + $0x1] ss:$0 sm:$0xff]  ;;  %v6997_v21 = vld [vmem:[#allocation5 + $0x194] ss:$20 sps:$4 sm:$0xff]   ;;  %s8021_s14 = scalar_lea.vmem %s5927_s13, 128  ;;  %p8026_p13 = scmp.lt.s32.totalorder %s5927_s13, %s5927_s13 }
  0x70   :  { %v437_v26 = vld [vmem:[#allocation2 + $0x6c] sm:$0xff]  ;;  %v6935_v63 = vld [vmem:[#allocation5] ss:$20 sps:$4 sm:$0xff]   ;;  %p8022_p12 = scmp.ne.s32.totalorder %s5927_s13, %s8021_s14  ;;  %p8027_p0 = scmp.lt.s32.totalorder %s8021_s14, %s8021_s14 }
  0x71   :  { %6749 = vmatpush3.bf16.msra.mxu0 %v5942_v28  ;;  %v5967_v27 = vcombine.high %v436_v23, %v437_v26  ;;  %v438_v28 = vld [vmem:[#allocation2 + $0x8c] sm:$0xff]  ;;  %v5966_v30 = vcombine.low %v436_v23, %v437_v26  ;;  %v6983_v18 = vld [vmem:[#allocation5 + $0x140] ss:$20 sps:$4 sm:$0xff]  }
  0x72   :  { %6750 = vmatprep.subr.bf16.mxu0 %v8064_v0  ;;  %6769 = vmatpush3.bf16.msra.mxu1 %v5951_v37  ;;  %v439_v29 = vld [vmem:[#allocation2 + $0xac] sm:$0xff]  ;;  %v7007_v26 = vld [vmem:[#allocation5 + $0x1e0] ss:$20 sps:$4 sm:$0xff]   ;;  %p8028_p1 = por %p8027_p0, %p8026_p13 }
  0x73   :  { %6770 = vmatprep.subr.bf16.mxu1 %v8064_v0  ;;  %v5969_v31 = vcombine.high %v438_v28, %v439_v29  ;;  %v440_v32 = vld [vmem:[#allocation2 + $0xcc] sm:$0xff] }
  0x74   :  { %v441_v33 = vld [vmem:[#allocation2 + $0xec] sm:$0xff]  ;;  %p8029_p2 = pnand %p8028_p1, %p8022_p12 }
  0x75   :  { %6751 = vmatpush3.bf16.msra.mxu0 %v5943_v34  ;;  %v5968_v34 = vcombine.low %v438_v28, %v439_v29  ;;  %v5971_v35 = vcombine.high %v440_v32, %v441_v33  ;;  %v442_v36 = vld [vmem:[#allocation2 + $0x10c] sm:$0xff]  ;;  %v5970_v38 = vcombine.low %v440_v32, %v441_v33  ;;  %v7013_v28 = vld [vmem:[#allocation5 + $0x208] ss:$20 sps:$4 sm:$0xff]   ;;  %v5955_v29 = vld [vmem:[#allocation10 + $0x2] ss:$0 sm:$0xff] }
  0x76   :  { %6752 = vmatprep.subr.bf16.mxu0 %v8064_v0  ;;  %6771 = vmatpush3.bf16.msra.mxu1 %v5952_v42  ;;  %v443_v37 = vld [vmem:[#allocation2 + $0x12c] sm:$0xff] }
  0x77   :  { %6772 = vmatprep.subr.bf16.mxu1 %v8064_v0  ;;  %v5973_v39 = vcombine.high %v442_v36, %v443_v37  ;;  %v445_v41 = vld [vmem:[#allocation2 + $0x16c] sm:$0xff]  ;;  %v5972_v42 = vcombine.low %v442_v36, %v443_v37  ;;  %v6938_v37 = vld [vmem:[#allocation5 + $0x8] ss:$20 sps:$4 sm:$0xff]  }
  0x78   :  { %v447_v55 = vld [vmem:[#allocation2 + $0x1ac] sm:$0xff] }
  0x79   :  { %6753 = vmatpush3.bf16.msra.mxu0 %v5944_v40  ;;  %v444_v40 = vld [vmem:[#allocation2 + $0x14c] sm:$0xff] }
  0x7a   :  { %6754 = vmatprep.subr.bf16.mxu0 %v8064_v0  ;;  %6773 = vmatpush3.bf16.msra.mxu1 %v5953_v47  ;;  %v448_v58 = vld [vmem:[#allocation2 + $0x1cc] sm:$0xff] }
  0x7b   :  { %6774 = vmatprep.subr.bf16.mxu1 %v8064_v0  ;;  %v449_v59 = vld [vmem:[#allocation2 + $0x1ec] sm:$0xff] }
  0x7c   :  { %v5979_v60 = vcombine.high %v448_v58, %v449_v59  ;;  %v6940_v2 = vld [vmem:[#allocation5 + $0xc] ss:$20 sps:$4 sm:$0xff]   ;;  %v6979_v15 = vld [vmem:[#allocation5 + $0x11c] ss:$20 sps:$4 sm:$0xff]  }
  0x7d   :  { %6755 = vmatpush3.bf16.msra.mxu0 %v5945_v43  ;;  %v5975_v43 = vcombine.high %v444_v40, %v445_v41  ;;  %v6943_v3 = vld [vmem:[#allocation5 + $0x2c] ss:$20 sps:$4 sm:$0xff]   ;;  %v6995_v22 = vld [vmem:[#allocation5 + $0x190] ss:$20 sps:$4 sm:$0xff]  }
  0x7e   :  { %6780 = vmatprep.subr.bf16.mxu0 %v8064_v0  ;;  %6775 = vmatpush3.bf16.msra.mxu1 %v5954_v50  ;;  %v6977_v16 = vld [vmem:[#allocation5 + $0x118] ss:$20 sps:$4 sm:$0xff]   ;;  %v7003_v23 = vld [vmem:[#allocation5 + $0x1bc] ss:$20 sps:$4 sm:$0xff]  }
  0x7f   :  { %543 = vmatprep.subr.bf16.mxu1 %v5965_v25  ;;  %v6991_v19 = vld [vmem:[#allocation5 + $0x16c] ss:$20 sps:$4 sm:$0xff]   ;;  %v7009_v25 = vld [vmem:[#allocation5 + $0x1e4] ss:$20 sps:$4 sm:$0xff]  }
  0x80   :  { %6757 = vmatmul.mubr.bf16.vlgmr.msra.gmra.mrb[0].mxu0 %v108_v44  ;;  %v5974_v44 = vcombine.low %v444_v40, %v445_v41  ;;  %v6944_v40 = vld [vmem:[#allocation5 + $0x30] ss:$20 sps:$4 sm:$0xff]  }
  0x81   :  { %6796 = vmatprep.mubr.msk.bf16.mxu0 %vm8065_vm0, %v8064_v0  ;;  %6781 = vmatpush3.bf16.msra.mxu0 %v5956_v54  ;;  %v446_v54 = vld [vmem:[#allocation2 + $0x18c] sm:$0xff] }
  0x82   :  { %6782 = vmatprep.subr.bf16.mxu0 %v8064_v0  ;;  %v5976_v57 = vcombine.low %v446_v54, %v447_v55  ;;  %v6952_v41 = vld [vmem:[#allocation5 + $0x5c] ss:$20 sps:$4 sm:$0xff]  }
  0x85   :  { %6783 = vmatpush3.bf16.msra.mxu0 %v5957_v56  ;;  %v5977_v56 = vcombine.high %v446_v54, %v447_v55  ;;  %v6986_v54 = vld [vmem:[#allocation5 + $0x148] ss:$20 sps:$4 sm:$0xff]  }
  0x86   :  { %6784 = vmatprep.subr.bf16.mxu0 %v8064_v0  ;;  %v6994_v55 = vld [vmem:[#allocation5 + $0x174] ss:$20 sps:$4 sm:$0xff]  }
  0x89   :  { %6785 = vmatpush3.bf16.msra.mxu0 %v5958_v61  ;;  %v5978_v61 = vcombine.low %v448_v58, %v449_v59  ;;  %v6998_v58 = vld [vmem:[#allocation5 + $0x198] ss:$20 sps:$4 sm:$0xff]  }
  0x8a   :  { %6786 = vmatprep.subr.bf16.mxu0 %v8064_v0  ;;  %v7006_v59 = vld [vmem:[#allocation5 + $0x1c4] ss:$20 sps:$4 sm:$0xff]  }
  0x8d   :  { %6787 = vmatpush3.bf16.msra.mxu0 %v5959_v1  ;;  %v6937_v1 = vld [vmem:[#allocation5 + $0x4] ss:$20 sps:$4 sm:$0xff]  }
  0x8e   :  { %6788 = vmatprep.subr.bf16.mxu0 %v8064_v0 }
  0x91   :  { %6789 = vmatpush3.bf16.msra.mxu0 %v5960_v4  ;;  %v6941_v4 = vld [vmem:[#allocation5 + $0x28] ss:$20 sps:$4 sm:$0xff]  }
  0x92   :  { %6790 = vmatprep.subr.bf16.mxu0 %v8064_v0 }
  0x95   :  { %6791 = vmatpush3.bf16.msra.mxu0 %v5961_v5  ;;  %v6949_v5 = vld [vmem:[#allocation5 + $0x54] ss:$20 sps:$4 sm:$0xff]  }
  0x96   :  { %6792 = vmatprep.subr.bf16.mxu0 %v8064_v0 }
  0x99   :  { %6793 = vmatpush3.bf16.msra.mxu0 %v5962_v17  ;;  %v6985_v17 = vld [vmem:[#allocation5 + $0x144] ss:$20 sps:$4 sm:$0xff]  }
  0x9a   :  { %6794 = vmatprep.subr.bf16.mxu0 %v8064_v0 }
  0x9d   :  { %6795 = vmatpush3.bf16.msra.mxu0 %v5963_v20  ;;  %v6989_v20 = vld [vmem:[#allocation5 + $0x168] ss:$20 sps:$4 sm:$0xff]  }
  0x9e   :  { %996 = vmatprep.subr.bf16.mxu0 %v6937_v1  ;;  %v7016_v1 = vld [vmem:[#allocation5 + $0x210] ss:$20 sps:$4 sm:$0xff]  }
 0x153   :  { %v198_v7 = vpop.f32.mrb[0].mxu0 }
 0x154   :  { %v199_v8 = vadd.f32 %v5937_v6, %v198_v7  ;;  %v6758_v9 = vpop.f32.mrb[1].mxu0  ;;  %v6947_v6 = vld [vmem:[#allocation5 + $0x50] ss:$20 sps:$4 sm:$0xff]  }
 0x155   :  { %v201_v10 = vpop.f32.mrb[2].mxu0  ;;  %v6955_v7 = vld [vmem:[#allocation5 + $0x7c] ss:$20 sps:$4 sm:$0xff]   ;;  %v6961_v9 = vld [vmem:[#allocation5 + $0xa4] ss:$20 sps:$4 sm:$0xff]  }
 0x156   :  { %v204_v11 = vmul.f32 0.01, %v199_v8  ;;  %v6759_v12 = vpop.f32.mrb[3].mxu0  ;;  %v6959_v10 = vld [vmem:[#allocation5 + $0xa0] ss:$20 sps:$4 sm:$0xff]  }
 0x157   :  { %v6965_v12 = vld [vmem:[#allocation5 + $0xc8] ss:$20 sps:$4 sm:$0xff]  }
 0x158   :  { %v205_v13 = vmax.f32 %v199_v8, %v204_v11  ;;  %v6953_v8 = vld [vmem:[#allocation5 + $0x78] ss:$20 sps:$4 sm:$0xff]  }
 0x159   :  { %v6967_v11 = vld [vmem:[#allocation5 + $0xcc] ss:$20 sps:$4 sm:$0xff]  }
 0x15a   :  { %v222_v14 = vpack.c.bf16 %v205_v13, %v205_v13  ;;  %v6973_v13 = vld [vmem:[#allocation5 + $0xf4] ss:$20 sps:$4 sm:$0xff]  }
 0x15c   :  { %6777 = vmatmul.mubr.bf16.vlgmr.msra.gmra.mrb[0].mxu1 %v222_v14  ;;  %v6971_v14 = vld [vmem:[#allocation5 + $0xf0] ss:$20 sps:$4 sm:$0xff]  }
 0x15d   :  { %544 = vmatpush1.bf16.msra.mxu1 %v5964_v24  ;;  %575 = vmatprep.mubr.bf16.mxu1 %v8066_v62  ;;  %v7001_v24 = vld [vmem:[#allocation5 + $0x1b8] ss:$20 sps:$4 sm:$0xff]   ;;  %v7010_v62 = vld [vmem:[#allocation5 + $0x1e8] ss:$20 sps:$4 sm:$0xff]  }
 0x15e   :  { %545 = vmatprep.subr.bf16.mxu1 %v5967_v27  ;;  %v7015_v27 = vld [vmem:[#allocation5 + $0x20c] ss:$20 sps:$4 sm:$0xff]  }
 0x161   :  { %546 = vmatpush1.bf16.msra.mxu1 %v5966_v30 }
 0x162   :  { %547 = vmatprep.subr.bf16.mxu1 %v5969_v31 }
 0x165   :  { %548 = vmatpush1.bf16.msra.mxu1 %v5968_v34 }
 0x166   :  { %549 = vmatprep.subr.bf16.mxu1 %v5971_v35 }
 0x169   :  { %550 = vmatpush1.bf16.msra.mxu1 %v5970_v38 }
 0x16a   :  { %551 = vmatprep.subr.bf16.mxu1 %v5973_v39  ;;  %v6946_v39 = vld [vmem:[#allocation5 + $0x34] ss:$20 sps:$4 sm:$0xff]  }
 0x16d   :  { %552 = vmatpush1.bf16.msra.mxu1 %v5972_v42  ;;  %v6950_v42 = vld [vmem:[#allocation5 + $0x58] ss:$20 sps:$4 sm:$0xff]  }
 0x16e   :  { %553 = vmatprep.subr.bf16.mxu1 %v5975_v43  ;;  %v6958_v43 = vld [vmem:[#allocation5 + $0x84] ss:$20 sps:$4 sm:$0xff]  }
 0x171   :  { %554 = vmatpush1.bf16.msra.mxu1 %v5974_v44  ;;  %v6956_v44 = vld [vmem:[#allocation5 + $0x80] ss:$20 sps:$4 sm:$0xff]  }
 0x172   :  { %555 = vmatprep.subr.bf16.mxu1 %v5977_v56  ;;  %v6992_v56 = vld [vmem:[#allocation5 + $0x170] ss:$20 sps:$4 sm:$0xff]  }
 0x175   :  { %556 = vmatpush1.bf16.msra.mxu1 %v5976_v57  ;;  %v7000_v57 = vld [vmem:[#allocation5 + $0x19c] ss:$20 sps:$4 sm:$0xff]  }
 0x176   :  { %557 = vmatprep.subr.bf16.mxu1 %v5979_v60  ;;  %v7004_v60 = vld [vmem:[#allocation5 + $0x1c0] ss:$20 sps:$4 sm:$0xff]  }
 0x179   :  { %558 = vmatpush1.bf16.msra.mxu1 %v5978_v61  ;;  %v7012_v61 = vld [vmem:[#allocation5 + $0x1ec] ss:$20 sps:$4 sm:$0xff]  }
 0x17a   :  { %1037 = vmatprep.subr.bf16.mxu1 %v6940_v2  ;;  %v7021_v2 = vld [vmem:[#allocation5 + $0x234] ss:$20 sps:$4 sm:$0xff]  }
 0x22f   :  { %v312_v46 = vpop.f32.mrb[0].mxu1 }
 0x230   :  { %v313_v47 = vadd.f32 %v5946_v45, %v312_v46  ;;  %v6778_v48 = vpop.f32.mrb[1].mxu1  ;;  %v6964_v45 = vld [vmem:[#allocation5 + $0xac] ss:$20 sps:$4 sm:$0xff]   ;;  %v6962_v46 = vld [vmem:[#allocation5 + $0xa8] ss:$20 sps:$4 sm:$0xff]  }
 0x231   :  { %v315_v49 = vpop.f32.mrb[2].mxu1  ;;  %v6968_v48 = vld [vmem:[#allocation5 + $0xd0] ss:$20 sps:$4 sm:$0xff]  }
 0x232   :  { %v318_v50 = vmul.f32 0.01, %v313_v47  ;;  %v6779_v51 = vpop.f32.mrb[3].mxu1  ;;  %v6976_v49 = vld [vmem:[#allocation5 + $0xfc] ss:$20 sps:$4 sm:$0xff]  }
 0x233   :  { %v6982_v51 = vld [vmem:[#allocation5 + $0x124] ss:$20 sps:$4 sm:$0xff]  }
 0x234   :  { %v319_v52 = vmax.f32 %v313_v47, %v318_v50  ;;  %v6970_v47 = vld [vmem:[#allocation5 + $0xd4] ss:$20 sps:$4 sm:$0xff]   ;;  %v6974_v50 = vld [vmem:[#allocation5 + $0xf8] ss:$20 sps:$4 sm:$0xff]  }
 0x236   :  { %v336_v53 = vpack.c.bf16 %v319_v52, %v319_v52  ;;  %v6980_v52 = vld [vmem:[#allocation5 + $0x120] ss:$20 sps:$4 sm:$0xff]  }
 0x238   :  { %6797 = vmatmul.mubr.bf16.vlgmr.msra.gmra.mrb[4].mxu0 %v336_v53  ;;  %v6988_v53 = vld [vmem:[#allocation5 + $0x14c] ss:$20 sps:$4 sm:$0xff]  }
 0x239   :  { %997 = vmatpush1.bf16.msra.mxu0 %v6935_v63  ;;  %v7018_v63 = vld [vmem:[#allocation5 + $0x214] ss:$20 sps:$4 sm:$0xff]  }
 0x23a   :  { %998 = vmatprep.subr.bf16.mxu0 %v6943_v3  ;;  %v7024_v3 = vld [vmem:[#allocation5 + $0x23c] ss:$20 sps:$4 sm:$0xff]  }
 0x23d   :  { %999 = vmatpush1.bf16.msra.mxu0 %v6941_v4  ;;  %v7019_v4 = vld [vmem:[#allocation5 + $0x230] ss:$20 sps:$4 sm:$0xff]  }
 0x23e   :  { %1000 = vmatprep.subr.bf16.mxu0 %v6949_v5  ;;  %v7022_v5 = vld [vmem:[#allocation5 + $0x238] ss:$20 sps:$4 sm:$0xff]  }
 0x241   :  { %1001 = vmatpush1.bf16.msra.mxu0 %v6947_v6  ;;  %v7027_v6 = vld [vmem:[#allocation5 + $0x25c] ss:$20 sps:$4 sm:$0xff]  }
 0x242   :  { %1002 = vmatprep.subr.bf16.mxu0 %v6955_v7  ;;  %v7030_v7 = vld [vmem:[#allocation5 + $0x264] ss:$20 sps:$4 sm:$0xff]  }
 0x245   :  { %1003 = vmatpush1.bf16.msra.mxu0 %v6953_v8  ;;  %v7025_v8 = vld [vmem:[#allocation5 + $0x258] ss:$20 sps:$4 sm:$0xff]  }
 0x246   :  { %1004 = vmatprep.subr.bf16.mxu0 %v6961_v9  ;;  %v7028_v9 = vld [vmem:[#allocation5 + $0x260] ss:$20 sps:$4 sm:$0xff]  }
 0x249   :  { %1005 = vmatpush1.bf16.msra.mxu0 %v6959_v10  ;;  %v7033_v10 = vld [vmem:[#allocation7 + $0x4] ss:$40 sps:$4 sm:$0xff]  }
 0x24a   :  { %1006 = vmatprep.subr.bf16.mxu0 %v6967_v11  ;;  %v7036_v11 = vld [vmem:[#allocation7 + $0xc] ss:$40 sps:$4 sm:$0xff]  }
 0x24d   :  { %1007 = vmatpush1.bf16.msra.mxu0 %v6965_v12  ;;  %v453_v12 = vlaneseq }
 0x24e   :  { %1008 = vmatprep.subr.bf16.mxu0 %v6973_v13 }
 0x24f   :  { %v8196_v13 = vshrl.u32 %v453_v12, 7  ;;  %v7097_v12 = vld [vmem:[#allocation7 + $0x370] ss:$40 sps:$4 sm:$0xff]  }
 0x251   :  { %1009 = vmatpush1.bf16.msra.mxu0 %v6971_v14  ;;  %v8199_v14 = vsub.s32 0, %v8196_v13 }
 0x252   :  { %1010 = vmatprep.subr.bf16.mxu0 %v6979_v15  ;;  %v451_v15 = vld [vmem:[#allocation10 + $0x3] sm:$0x3] }
 0x255   :  { %1011 = vmatpush1.bf16.msra.mxu0 %v6977_v16  ;;  %v8202_v16 = vsub.s32 1, %v8196_v13 }
 0x256   :  { %1012 = vmatprep.subr.bf16.mxu0 %v6985_v17  ;;  %v456_v17 = vrot.slane %v451_v15, %v8199_v14 }
 0x259   :  { %1013 = vmatpush1.bf16.msra.mxu0 %v6983_v18  ;;  %v460_v18 = vrot.slane %v451_v15, %v8202_v16  ;;  %v7100_v15 = vld [vmem:[#allocation7 + $0x378] ss:$40 sps:$4 sm:$0xff]  }
 0x25a   :  { %1014 = vmatprep.subr.bf16.mxu0 %v6991_v19 }
 0x25d   :  { %1015 = vmatpush1.bf16.msra.mxu0 %v6989_v20 }
 0x25e   :  { %1016 = vmatprep.subr.bf16.mxu0 %v6997_v21 }
 0x261   :  { %1017 = vmatpush1.bf16.msra.mxu0 %v6995_v22 }
 0x262   :  { %1018 = vmatprep.subr.bf16.mxu0 %v7003_v23 }
 0x265   :  { %1019 = vmatpush1.bf16.msra.mxu0 %v7001_v24 }
 0x266   :  { %1020 = vmatprep.subr.bf16.mxu0 %v7009_v25 }
 0x269   :  { %1021 = vmatpush1.bf16.msra.mxu0 %v7007_v26 }
 0x26a   :  { %1022 = vmatprep.subr.bf16.mxu0 %v7015_v27 }
 0x26d   :  { %1023 = vmatpush1.bf16.msra.mxu0 %v7013_v28 }
 0x26e   :  { %1024 = vmatprep.subr.bf16.mxu0 %v7021_v2  ;;  %v7087_v2 = vld [vmem:[#allocation7 + $0x2d4] ss:$40 sps:$4 sm:$0xff]  }
 0x271   :  { %1025 = vmatpush1.bf16.msra.mxu0 %v7019_v4  ;;  %v7085_v4 = vld [vmem:[#allocation7 + $0x2d0] ss:$40 sps:$4 sm:$0xff]  }
 0x272   :  { %1026 = vmatprep.subr.bf16.mxu0 %v7027_v6  ;;  %v7093_v6 = vld [vmem:[#allocation7 + $0x324] ss:$40 sps:$4 sm:$0xff]  }
 0x275   :  { %1027 = vmatpush1.bf16.msra.mxu0 %v7025_v8  ;;  %v7091_v8 = vld [vmem:[#allocation7 + $0x320] ss:$40 sps:$4 sm:$0xff]  }
 0x276   :  { %2668 = vmatprep.subr.bf16.mxu0 %v7033_v10  ;;  %v7099_v10 = vld [vmem:[#allocation7 + $0x374] ss:$40 sps:$4 sm:$0xff]  }
 0x30b   :  { %v426_v30 = vpop.f32.mrb[4].mxu0 }
 0x30c   :  { %v427_v31 = vadd.f32 %v5955_v29, %v426_v30  ;;  %v6798_v32 = vpop.f32.mrb[5].mxu0  ;;  %v7031_v30 = vld [vmem:[#allocation7] ss:$40 sps:$4 sm:$0xff]  }
 0x30d   :  { %v429_v33 = vpop.f32.mrb[6].mxu0 }
 0x30e   :  { %v432_v34 = vmul.f32 0.01, %v427_v31  ;;  %v6799_v35 = vpop.f32.mrb[7].mxu0  ;;  %v7039_v33 = vld [vmem:[#allocation7 + $0x54] ss:$40 sps:$4 sm:$0xff]  }
 0x30f   :  { %v7037_v35 = vld [vmem:[#allocation7 + $0x50] ss:$40 sps:$4 sm:$0xff]  }
 0x310   :  { %v433_v36 = vmax.f32 %v427_v31, %v432_v34  ;;  %v7034_v31 = vld [vmem:[#allocation7 + $0x8] ss:$40 sps:$4 sm:$0xff]   ;;  %v7042_v34 = vld [vmem:[#allocation7 + $0x5c] ss:$40 sps:$4 sm:$0xff]  }
 0x312   :  { %v450_v38 = vpack.c.bf16 %v433_v36, %v433_v36  ;;  %v7040_v36 = vld [vmem:[#allocation7 + $0x58] ss:$40 sps:$4 sm:$0xff]  }
 0x314   :  { %576 = vmatmul.mubr.bf16.vlgmr.msra.gmra.mrb[4].mxu1 %v450_v38  ;;  %v7048_v38 = vld [vmem:[#allocation7 + $0xac] ss:$40 sps:$4 sm:$0xff]  }
 0x315   :  { %1038 = vmatpush1.bf16.msra.mxu1 %v6938_v37  ;;  %v7045_v37 = vld [vmem:[#allocation7 + $0xa4] ss:$40 sps:$4 sm:$0xff]  }
 0x316   :  { %1039 = vmatprep.subr.bf16.mxu1 %v6946_v39  ;;  %v7043_v39 = vld [vmem:[#allocation7 + $0xa0] ss:$40 sps:$4 sm:$0xff]  }
 0x319   :  { %1040 = vmatpush1.bf16.msra.mxu1 %v6944_v40  ;;  %v7046_v40 = vld [vmem:[#allocation7 + $0xa8] ss:$40 sps:$4 sm:$0xff]  }
 0x31a   :  { %1041 = vmatprep.subr.bf16.mxu1 %v6952_v41  ;;  %v7051_v41 = vld [vmem:[#allocation7 + $0xf4] ss:$40 sps:$4 sm:$0xff]  }
 0x31d   :  { %1042 = vmatpush1.bf16.msra.mxu1 %v6950_v42  ;;  %v7054_v42 = vld [vmem:[#allocation7 + $0xfc] ss:$40 sps:$4 sm:$0xff]  }
 0x31e   :  { %1043 = vmatprep.subr.bf16.mxu1 %v6958_v43  ;;  %v7049_v43 = vld [vmem:[#allocation7 + $0xf0] ss:$40 sps:$4 sm:$0xff]  }
 0x321   :  { %1044 = vmatpush1.bf16.msra.mxu1 %v6956_v44  ;;  %v7052_v44 = vld [vmem:[#allocation7 + $0xf8] ss:$40 sps:$4 sm:$0xff]  }
 0x322   :  { %1045 = vmatprep.subr.bf16.mxu1 %v6964_v45  ;;  %v7057_v45 = vld [vmem:[#allocation7 + $0x144] ss:$40 sps:$4 sm:$0xff]  }
 0x325   :  { %1046 = vmatpush1.bf16.msra.mxu1 %v6962_v46  ;;  %v7060_v46 = vld [vmem:[#allocation7 + $0x14c] ss:$40 sps:$4 sm:$0xff]  }
 0x326   :  { %1047 = vmatprep.subr.bf16.mxu1 %v6970_v47  ;;  %v7055_v47 = vld [vmem:[#allocation7 + $0x140] ss:$40 sps:$4 sm:$0xff]  }
 0x329   :  { %1048 = vmatpush1.bf16.msra.mxu1 %v6968_v48  ;;  %v7058_v48 = vld [vmem:[#allocation7 + $0x148] ss:$40 sps:$4 sm:$0xff]  }
 0x32a   :  { %1049 = vmatprep.subr.bf16.mxu1 %v6976_v49  ;;  %v7063_v49 = vld [vmem:[#allocation7 + $0x194] ss:$40 sps:$4 sm:$0xff]  }
 0x32d   :  { %1050 = vmatpush1.bf16.msra.mxu1 %v6974_v50  ;;  %v7066_v50 = vld [vmem:[#allocation7 + $0x19c] ss:$40 sps:$4 sm:$0xff]  }
 0x32e   :  { %1051 = vmatprep.subr.bf16.mxu1 %v6982_v51  ;;  %v7061_v51 = vld [vmem:[#allocation7 + $0x190] ss:$40 sps:$4 sm:$0xff]  }
 0x331   :  { %1052 = vmatpush1.bf16.msra.mxu1 %v6980_v52  ;;  %v7064_v52 = vld [vmem:[#allocation7 + $0x198] ss:$40 sps:$4 sm:$0xff]  }
 0x332   :  { %1053 = vmatprep.subr.bf16.mxu1 %v6988_v53  ;;  %v7069_v53 = vld [vmem:[#allocation7 + $0x1e4] ss:$40 sps:$4 sm:$0xff]  }
 0x335   :  { %1054 = vmatpush1.bf16.msra.mxu1 %v6986_v54  ;;  %v7072_v54 = vld [vmem:[#allocation7 + $0x1ec] ss:$40 sps:$4 sm:$0xff]  }
 0x336   :  { %1055 = vmatprep.subr.bf16.mxu1 %v6994_v55  ;;  %v7067_v55 = vld [vmem:[#allocation7 + $0x1e0] ss:$40 sps:$4 sm:$0xff]  }
 0x339   :  { %1056 = vmatpush1.bf16.msra.mxu1 %v6992_v56  ;;  %v7070_v56 = vld [vmem:[#allocation7 + $0x1e8] ss:$40 sps:$4 sm:$0xff]  }
 0x33a   :  { %1057 = vmatprep.subr.bf16.mxu1 %v7000_v57  ;;  %v7075_v57 = vld [vmem:[#allocation7 + $0x234] ss:$40 sps:$4 sm:$0xff]  }
 0x33d   :  { %1058 = vmatpush1.bf16.msra.mxu1 %v6998_v58  ;;  %v7078_v58 = vld [vmem:[#allocation7 + $0x23c] ss:$40 sps:$4 sm:$0xff]  }
 0x33e   :  { %1059 = vmatprep.subr.bf16.mxu1 %v7006_v59  ;;  %v7073_v59 = vld [vmem:[#allocation7 + $0x230] ss:$40 sps:$4 sm:$0xff]  }
 0x341   :  { %1060 = vmatpush1.bf16.msra.mxu1 %v7004_v60  ;;  %v7076_v60 = vld [vmem:[#allocation7 + $0x238] ss:$40 sps:$4 sm:$0xff]  }
 0x342   :  { %1061 = vmatprep.subr.bf16.mxu1 %v7012_v61  ;;  %v7081_v61 = vld [vmem:[#allocation7 + $0x284] ss:$40 sps:$4 sm:$0xff]  }
 0x345   :  { %1062 = vmatpush1.bf16.msra.mxu1 %v7010_v62  ;;  %v7084_v62 = vld [vmem:[#allocation7 + $0x28c] ss:$40 sps:$4 sm:$0xff]  }
 0x346   :  { %1063 = vmatprep.subr.bf16.mxu1 %v7018_v63  ;;  %v7079_v63 = vld [vmem:[#allocation7 + $0x280] ss:$40 sps:$4 sm:$0xff]  }
 0x349   :  { %1064 = vmatpush1.bf16.msra.mxu1 %v7016_v1  ;;  %v7082_v1 = vld [vmem:[#allocation7 + $0x288] ss:$40 sps:$4 sm:$0xff]  }
 0x34a   :  { %1065 = vmatprep.subr.bf16.mxu1 %v7024_v3  ;;  %v7090_v3 = vld [vmem:[#allocation7 + $0x2dc] ss:$40 sps:$4 sm:$0xff]  }
 0x34d   :  { %1066 = vmatpush1.bf16.msra.mxu1 %v7022_v5  ;;  %v7088_v5 = vld [vmem:[#allocation7 + $0x2d8] ss:$40 sps:$4 sm:$0xff]  }
 0x34e   :  { %1067 = vmatprep.subr.bf16.mxu1 %v7030_v7  ;;  %v7096_v7 = vld [vmem:[#allocation7 + $0x32c] ss:$40 sps:$4 sm:$0xff]  }
 0x351   :  { %1068 = vmatpush1.bf16.msra.mxu1 %v7028_v9  ;;  %v7094_v9 = vld [vmem:[#allocation7 + $0x328] ss:$40 sps:$4 sm:$0xff]  }
 0x352   :  { %2750 = vmatprep.subr.bf16.mxu1 %v7036_v11  ;;  %v7102_v11 = vld [vmem:[#allocation7 + $0x37c] ss:$40 sps:$4 sm:$0xff]  }
 0x3e7   :  { %v577_v19 = vpop.f32.mrb[4].mxu1 }
 0x3e8   :  { %v578_v20 = vadd.f32 %v577_v19, %v456_v17  ;;  %v579_v21 = vpop.f32.mrb[5].mxu1  ;;  %v7105_v17 = vld [vmem:[#allocation7 + $0x3c4] ss:$40 sps:$4 sm:$0xff]   ;;  %v7103_v19 = vld [vmem:[#allocation7 + $0x3c0] ss:$40 sps:$4 sm:$0xff]  }
 0x3e9   :  { %v580_v22 = vadd.f32 %v579_v21, %v460_v18  ;;  %v581_v23 = vpop.f32.mrb[6].mxu1  ;;  %v7108_v18 = vld [vmem:[#allocation7 + $0x3cc] ss:$40 sps:$4 sm:$0xff]  }
 0x3ea   :  { %v584_v24 = vmul.f32 0.01, %v578_v20  ;;  %v582_v25 = vpop.f32.mrb[7].mxu1  ;;  %v7111_v21 = vld [vmem:[#allocation7 + $0x414] ss:$40 sps:$4 sm:$0xff]  }
 0x3eb   :  { %v585_v26 = vmul.f32 0.01, %v580_v22  ;;  %v7109_v23 = vld [vmem:[#allocation7 + $0x410] ss:$40 sps:$4 sm:$0xff]   ;;  %v7117_v25 = vld [vmem:[#allocation7 + $0x464] ss:$40 sps:$4 sm:$0xff]  }
 0x3ec   :  { %v586_v27 = vmax.f32 %v578_v20, %v584_v24  ;;  %v7106_v20 = vld [vmem:[#allocation7 + $0x3c8] ss:$40 sps:$4 sm:$0xff]   ;;  %v7112_v24 = vld [vmem:[#allocation7 + $0x418] ss:$40 sps:$4 sm:$0xff]  }
 0x3ed   :  { %v587_v28 = vmax.f32 %v580_v22, %v585_v26  ;;  %v7114_v22 = vld [vmem:[#allocation7 + $0x41c] ss:$40 sps:$4 sm:$0xff]   ;;  %v7120_v26 = vld [vmem:[#allocation7 + $0x46c] ss:$40 sps:$4 sm:$0xff]  }
 0x3ee   :  { %v652_v32 = vpack.c.bf16 %v586_v27, %v586_v27  ;;  %v7115_v27 = vld [vmem:[#allocation7 + $0x460] ss:$40 sps:$4 sm:$0xff]  }
 0x3ef   :  { %v653_v29 = vpack.c.bf16 %v587_v28, %v587_v28  ;;  %v7118_v28 = vld [vmem:[#allocation7 + $0x468] ss:$40 sps:$4 sm:$0xff]  }
 0x3f1   :  { %1028 = vmatprep.mubr.bf16.mxu0 %v653_v29  ;;  %1069 = vmatprep.mubr.bf16.mxu1 %v653_v29  ;;  %v7123_v29 = vld [vmem:[#allocation7 + $0x4b4] ss:$40 sps:$4 sm:$0xff]  }
 0x3f2   :  { %1029 = vmatmul.mubr.bf16.vlgmr.msra.gmra.mrb[8].mxu0 %v652_v32  ;;  %1070 = vmatmul.mubr.bf16.vlgmr.msra.gmra.mrb[8].mxu1 %v652_v32  ;;  %v7124_v32 = vld [vmem:[#allocation7 + $0x4b8] ss:$40 sps:$4 sm:$0xff]  }
 0x3f3   :  { %2669 = vmatpush1.bf16.msra.mxu0 %v7031_v30  ;;  %2751 = vmatpush1.bf16.msra.mxu1 %v7034_v31  ;;  %v7126_v30 = vld [vmem:[#allocation7 + $0x4bc] ss:$40 sps:$4 sm:$0xff]   ;;  %v7121_v31 = vld [vmem:[#allocation7 + $0x4b0] ss:$40 sps:$4 sm:$0xff]  }
 0x3f4   :  { %2670 = vmatprep.subr.bf16.mxu0 %v7039_v33  ;;  %2752 = vmatprep.subr.bf16.mxu1 %v7042_v34  ;;  %v7129_v33 = vld [vmem:[#allocation7 + $0x504] ss:$40 sps:$4 sm:$0xff]  }
 0x3f5   :  { %v7132_v34 = vld [vmem:[#allocation7 + $0x50c] ss:$40 sps:$4 sm:$0xff]  }
 0x3f7   :  { %2671 = vmatpush1.bf16.msra.mxu0 %v7037_v35  ;;  %2753 = vmatpush1.bf16.msra.mxu1 %v7040_v36  ;;  %v8206_v35 = vld [vmem:[#allocation10 + $0x5] sm:$0xf]  ;;  %v8209_v36 = vsub.s32 3, %v8196_v13 }
 0x3f8   :  { %2672 = vmatprep.subr.bf16.mxu0 %v7045_v37  ;;  %2754 = vmatprep.subr.bf16.mxu1 %v7048_v38  ;;  %v659_v37 = vrot.slane %v8206_v35, %v8199_v14  ;;  %v663_v38 = vrot.slane %v8206_v35, %v8202_v16 }
 0x3fb   :  { %2673 = vmatpush1.bf16.msra.mxu0 %v7043_v39  ;;  %2755 = vmatpush1.bf16.msra.mxu1 %v7046_v40  ;;  %v671_v39 = vrot.slane %v8206_v35, %v8209_v36 }
 0x3fc   :  { %2674 = vmatprep.subr.bf16.mxu0 %v7051_v41  ;;  %2756 = vmatprep.subr.bf16.mxu1 %v7054_v42 }
 0x3ff   :  { %2675 = vmatpush1.bf16.msra.mxu0 %v7049_v43  ;;  %2757 = vmatpush1.bf16.msra.mxu1 %v7052_v44 }
 0x400   :  { %2676 = vmatprep.subr.bf16.mxu0 %v7057_v45  ;;  %2758 = vmatprep.subr.bf16.mxu1 %v7060_v46 }
 0x403   :  { %2677 = vmatpush1.bf16.msra.mxu0 %v7055_v47  ;;  %2759 = vmatpush1.bf16.msra.mxu1 %v7058_v48 }
 0x404   :  { %2678 = vmatprep.subr.bf16.mxu0 %v7063_v49  ;;  %2760 = vmatprep.subr.bf16.mxu1 %v7066_v50 }
 0x407   :  { %2679 = vmatpush1.bf16.msra.mxu0 %v7061_v51  ;;  %2761 = vmatpush1.bf16.msra.mxu1 %v7064_v52 }
 0x408   :  { %2680 = vmatprep.subr.bf16.mxu0 %v7069_v53  ;;  %2762 = vmatprep.subr.bf16.mxu1 %v7072_v54 }
 0x40b   :  { %2681 = vmatpush1.bf16.msra.mxu0 %v7067_v55  ;;  %2763 = vmatpush1.bf16.msra.mxu1 %v7070_v56 }
 0x40c   :  { %2682 = vmatprep.subr.bf16.mxu0 %v7075_v57  ;;  %2764 = vmatprep.subr.bf16.mxu1 %v7078_v58  ;;  %v7127_v58 = vld [vmem:[#allocation7 + $0x500] ss:$40 sps:$4 sm:$0xff]  }
 0x40f   :  { %2683 = vmatpush1.bf16.msra.mxu0 %v7073_v59  ;;  %2765 = vmatpush1.bf16.msra.mxu1 %v7076_v60  ;;  %v7130_v59 = vld [vmem:[#allocation7 + $0x508] ss:$40 sps:$4 sm:$0xff]  }
 0x410   :  { %2684 = vmatprep.subr.bf16.mxu0 %v7081_v61  ;;  %2766 = vmatprep.subr.bf16.mxu1 %v7084_v62  ;;  %v7135_v61 = vld [vmem:[#allocation7 + $0x554] ss:$40 sps:$4 sm:$0xff]  }
 0x411   :  { %v7138_v62 = vld [vmem:[#allocation7 + $0x55c] ss:$40 sps:$4 sm:$0xff]  }
 0x413   :  { %2685 = vmatpush1.bf16.msra.mxu0 %v7079_v63  ;;  %2767 = vmatpush1.bf16.msra.mxu1 %v7082_v1  ;;  %v7133_v1 = vld [vmem:[#allocation7 + $0x550] ss:$40 sps:$4 sm:$0xff]  }
 0x414   :  { %2686 = vmatprep.subr.bf16.mxu0 %v7087_v2  ;;  %2768 = vmatprep.subr.bf16.mxu1 %v7090_v3  ;;  %v7136_v2 = vld [vmem:[#allocation7 + $0x558] ss:$40 sps:$4 sm:$0xff]   ;;  %v7141_v3 = vld [vmem:[#allocation7 + $0x5a4] ss:$40 sps:$4 sm:$0xff]  }
 0x417   :  { %2687 = vmatpush1.bf16.msra.mxu0 %v7085_v4  ;;  %2769 = vmatpush1.bf16.msra.mxu1 %v7088_v5  ;;  %v7144_v4 = vld [vmem:[#allocation7 + $0x5ac] ss:$40 sps:$4 sm:$0xff]   ;;  %v7139_v5 = vld [vmem:[#allocation7 + $0x5a0] ss:$40 sps:$4 sm:$0xff]  }
 0x418   :  { %2688 = vmatprep.subr.bf16.mxu0 %v7093_v6  ;;  %2770 = vmatprep.subr.bf16.mxu1 %v7096_v7  ;;  %v7142_v6 = vld [vmem:[#allocation7 + $0x5a8] ss:$40 sps:$4 sm:$0xff]   ;;  %v7147_v7 = vld [vmem:[#allocation7 + $0x5f4] ss:$40 sps:$4 sm:$0xff]  }
 0x41b   :  { %2689 = vmatpush1.bf16.msra.mxu0 %v7091_v8  ;;  %2771 = vmatpush1.bf16.msra.mxu1 %v7094_v9  ;;  %v7150_v8 = vld [vmem:[#allocation7 + $0x5fc] ss:$40 sps:$4 sm:$0xff]   ;;  %v7145_v9 = vld [vmem:[#allocation7 + $0x5f0] ss:$40 sps:$4 sm:$0xff]  }
 0x41c   :  { %2690 = vmatprep.subr.bf16.mxu0 %v7099_v10  ;;  %2772 = vmatprep.subr.bf16.mxu1 %v7102_v11  ;;  %v7148_v10 = vld [vmem:[#allocation7 + $0x5f8] ss:$40 sps:$4 sm:$0xff]   ;;  %v7153_v11 = vld [vmem:[#allocation7 + $0x644] ss:$40 sps:$4 sm:$0xff]  }
 0x41f   :  { %2691 = vmatpush1.bf16.msra.mxu0 %v7097_v12  ;;  %2773 = vmatpush1.bf16.msra.mxu1 %v7100_v15  ;;  %v7156_v12 = vld [vmem:[#allocation7 + $0x64c] ss:$40 sps:$4 sm:$0xff]   ;;  %v7151_v15 = vld [vmem:[#allocation7 + $0x640] ss:$40 sps:$4 sm:$0xff]  }
 0x420   :  { %2692 = vmatprep.subr.bf16.mxu0 %v7105_v17  ;;  %2774 = vmatprep.subr.bf16.mxu1 %v7108_v18  ;;  %v7154_v17 = vld [vmem:[#allocation7 + $0x648] ss:$40 sps:$4 sm:$0xff]   ;;  %v7159_v18 = vld [vmem:[#allocation7 + $0x694] ss:$40 sps:$4 sm:$0xff]  }
 0x423   :  { %2693 = vmatpush1.bf16.msra.mxu0 %v7103_v19  ;;  %2775 = vmatpush1.bf16.msra.mxu1 %v7106_v20  ;;  %v7162_v19 = vld [vmem:[#allocation7 + $0x69c] ss:$40 sps:$4 sm:$0xff]   ;;  %v7157_v20 = vld [vmem:[#allocation7 + $0x690] ss:$40 sps:$4 sm:$0xff]  }
 0x424   :  { %2694 = vmatprep.subr.bf16.mxu0 %v7111_v21  ;;  %2776 = vmatprep.subr.bf16.mxu1 %v7114_v22  ;;  %v7160_v21 = vld [vmem:[#allocation7 + $0x698] ss:$40 sps:$4 sm:$0xff]   ;;  %v7165_v22 = vld [vmem:[#allocation7 + $0x6e4] ss:$40 sps:$4 sm:$0xff]  }
 0x427   :  { %2695 = vmatpush1.bf16.msra.mxu0 %v7109_v23  ;;  %2777 = vmatpush1.bf16.msra.mxu1 %v7112_v24  ;;  %v7168_v23 = vld [vmem:[#allocation7 + $0x6ec] ss:$40 sps:$4 sm:$0xff]   ;;  %v7163_v24 = vld [vmem:[#allocation7 + $0x6e0] ss:$40 sps:$4 sm:$0xff]  }
 0x428   :  { %2696 = vmatprep.subr.bf16.mxu0 %v7117_v25  ;;  %2778 = vmatprep.subr.bf16.mxu1 %v7120_v26  ;;  %v7166_v25 = vld [vmem:[#allocation7 + $0x6e8] ss:$40 sps:$4 sm:$0xff]   ;;  %v7171_v26 = vld [vmem:[#allocation7 + $0x734] ss:$40 sps:$4 sm:$0xff]  }
 0x42b   :  { %2697 = vmatpush1.bf16.msra.mxu0 %v7115_v27  ;;  %2779 = vmatpush1.bf16.msra.mxu1 %v7118_v28  ;;  %v7174_v27 = vld [vmem:[#allocation7 + $0x73c] ss:$40 sps:$4 sm:$0xff]   ;;  %v7169_v28 = vld [vmem:[#allocation7 + $0x730] ss:$40 sps:$4 sm:$0xff]  }
 0x42c   :  { %2698 = vmatprep.subr.bf16.mxu0 %v7123_v29  ;;  %2780 = vmatprep.subr.bf16.mxu1 %v7126_v30  ;;  %v7172_v29 = vld [vmem:[#allocation7 + $0x738] ss:$40 sps:$4 sm:$0xff]   ;;  %v7177_v30 = vld [vmem:[#allocation7 + $0x784] ss:$40 sps:$4 sm:$0xff]  }
 0x42f   :  { %2699 = vmatpush1.bf16.msra.mxu0 %v7121_v31  ;;  %2781 = vmatpush1.bf16.msra.mxu1 %v7124_v32  ;;  %v7180_v31 = vld [vmem:[#allocation7 + $0x78c] ss:$40 sps:$4 sm:$0xff]   ;;  %v7175_v32 = vld [vmem:[#allocation7 + $0x780] ss:$40 sps:$4 sm:$0xff]  }
 0x430   :  { %2709 = vmatprep.subr.bf16.mxu0 %v7129_v33  ;;  %2791 = vmatprep.subr.bf16.mxu1 %v7132_v34  ;;  %v7178_v33 = vld [vmem:[#allocation7 + $0x788] ss:$40 sps:$4 sm:$0xff]   ;;  %v7183_v34 = vld [vmem:[#allocation7 + $0x7d4] ss:$40 sps:$4 sm:$0xff]  }
 0x4c5   :  { %v1030_v40 = vpop.f32.mrb[8].mxu0  ;;  %v8217_v41 = vpop.f32.mrb[8].mxu1 }
 0x4c6   :  { %v1031_v42 = vadd.f32 %v1030_v40, %v659_v37  ;;  %v1032_v43 = vpop.f32.mrb[9].mxu0  ;;  %v1073_v44 = vpop.f32.mrb[9].mxu1  ;;  %v7186_v37 = vld [vmem:[#allocation7 + $0x7dc] ss:$40 sps:$4 sm:$0xff]  }
 0x4c7   :  { %v1033_v45 = vadd.f32 %v1032_v43, %v663_v38  ;;  %v1074_v46 = vadd.f32 %v1073_v44, %v671_v39  ;;  %v1034_v47 = vpop.f32.mrb[10].mxu0  ;;  %v1075_v48 = vpop.f32.mrb[10].mxu1  ;;  %v7181_v38 = vld [vmem:[#allocation7 + $0x7d0] ss:$40 sps:$4 sm:$0xff]   ;;  %v7189_v40 = vld [vmem:[#allocation7 + $0x824] ss:$40 sps:$4 sm:$0xff]  }
 0x4c8   :  { %v1078_v49 = vmul.f32 0.01, %v1031_v42  ;;  %v1035_v50 = vpop.f32.mrb[11].mxu0  ;;  %v1076_v51 = vpop.f32.mrb[11].mxu1  ;;  %v7184_v39 = vld [vmem:[#allocation7 + $0x7d8] ss:$40 sps:$4 sm:$0xff]  }
 0x4c9   :  { %v1079_v52 = vmul.f32 0.01, %v1033_v45  ;;  %v1081_v53 = vmul.f32 0.01, %v1074_v46  ;;  %v7187_v43 = vld [vmem:[#allocation7 + $0x820] ss:$40 sps:$4 sm:$0xff]  }
 0x4ca   :  { %v1082_v54 = vmax.f32 %v1031_v42, %v1078_v49  ;;  %v7192_v42 = vld [vmem:[#allocation7 + $0x82c] ss:$40 sps:$4 sm:$0xff]   ;;  %v7190_v44 = vld [vmem:[#allocation7 + $0x828] ss:$40 sps:$4 sm:$0xff]   ;;  %v7196_v48 = vld [vmem:[#allocation7 + $0x878] ss:$40 sps:$4 sm:$0xff]  }
 0x4cb   :  { %v1083_v55 = vmax.f32 %v1033_v45, %v1079_v52  ;;  %v1085_v56 = vmax.f32 %v1074_v46, %v1081_v53  ;;  %v7195_v45 = vld [vmem:[#allocation7 + $0x874] ss:$40 sps:$4 sm:$0xff]   ;;  %v7193_v47 = vld [vmem:[#allocation7 + $0x870] ss:$40 sps:$4 sm:$0xff]   ;;  %v8232_v49 = vsub.s32 2, %v8196_v13 }
 0x4cc   :  { %v8221_v60 = vpack.c.bf16 %v1082_v54, %v1082_v54  ;;  %v7198_v46 = vld [vmem:[#allocation7 + $0x87c] ss:$40 sps:$4 sm:$0xff]   ;;  %v7204_v51 = vld [vmem:[#allocation7 + $0x8cc] ss:$40 sps:$4 sm:$0xff]   ;;  %v7199_v52 = vld [vmem:[#allocation7 + $0x8c0] ss:$40 sps:$4 sm:$0xff]  }
 0x4cd   :  { %v8219_v57 = vpack.c.bf16 %v1083_v55, %v1083_v55  ;;  %v8225_v63 = vpack.c.bf16 %v1085_v56, %v1085_v56  ;;  %v7201_v50 = vld [vmem:[#allocation7 + $0x8c4] ss:$40 sps:$4 sm:$0xff]   ;;  %v7202_v53 = vld [vmem:[#allocation7 + $0x8c8] ss:$40 sps:$4 sm:$0xff]   ;;  %v667_v54 = vrot.slane %v8206_v35, %v8232_v49  ;;  %v7207_v55 = vld [vmem:[#allocation7 + $0x914] ss:$40 sps:$4 sm:$0xff]  }
 0x4ce   :  { %v7210_v56 = vld [vmem:[#allocation7 + $0x91c] ss:$40 sps:$4 sm:$0xff]  }
 0x4cf   :  { %2700 = vmatprep.mubr.bf16.mxu0 %v8219_v57  ;;  %2782 = vmatprep.mubr.bf16.mxu1 %v8219_v57  ;;  %v7219_v35 = vld [vmem:[#allocation7 + $0x9b4] ss:$40 sps:$4 sm:$0xff]  }
 0x4d0   :  { %2701 = vmatmul.mubr.bf16.vlgmr.msra.gmra.mrb[12].mxu0 %v8221_v60  ;;  %2783 = vmatmul.mubr.bf16.vlgmr.msra.gmra.mrb[12].mxu1 %v8221_v60 }
 0x4d1   :  { %2710 = vmatpush1.bf16.msra.mxu0 %v7127_v58  ;;  %2792 = vmatpush1.bf16.msra.mxu1 %v7130_v59  ;;  %v7205_v58 = vld [vmem:[#allocation7 + $0x910] ss:$40 sps:$4 sm:$0xff]  }
 0x4d2   :  { %2741 = vmatprep.mubr.bf16.mxu0 %v8225_v63  ;;  %2823 = vmatprep.mubr.bf16.mxu1 %v8225_v63  ;;  %v7208_v59 = vld [vmem:[#allocation7 + $0x918] ss:$40 sps:$4 sm:$0xff]  }
 0x4d3   :  { %2711 = vmatprep.subr.bf16.mxu0 %v7135_v61  ;;  %2793 = vmatprep.subr.bf16.mxu1 %v7138_v62  ;;  %v1072_v61 = vadd.f32 %v8217_v41, %v667_v54  ;;  %v7213_v62 = vld [vmem:[#allocation7 + $0x964] ss:$40 sps:$4 sm:$0xff]   ;;  %v7225_v41 = vld [vmem:[#allocation7 + $0x14] ss:$40 sps:$4 sm:$0xff]   ;;  %v7280_v54 = vld [vmem:[#allocation7 + $0x2e8] ss:$40 sps:$4 sm:$0xff]  }
 0x4d5   :  { %2712 = vmatpush1.bf16.msra.mxu0 %v7133_v1  ;;  %2794 = vmatpush1.bf16.msra.mxu1 %v7136_v2  ;;  %v7216_v1 = vld [vmem:[#allocation7 + $0x96c] ss:$40 sps:$4 sm:$0xff]   ;;  %v7211_v2 = vld [vmem:[#allocation7 + $0x960] ss:$40 sps:$4 sm:$0xff]  }
 0x4d6   :  { %2713 = vmatprep.subr.bf16.mxu0 %v7141_v3  ;;  %2795 = vmatprep.subr.bf16.mxu1 %v7144_v4  ;;  %v7214_v3 = vld [vmem:[#allocation7 + $0x968] ss:$40 sps:$4 sm:$0xff]   ;;  %v1080_v4 = vmul.f32 0.01, %v1072_v61 }
 0x4d9   :  { %2714 = vmatpush1.bf16.msra.mxu0 %v7139_v5  ;;  %2796 = vmatpush1.bf16.msra.mxu1 %v7142_v6  ;;  %v7222_v5 = vld [vmem:[#allocation7 + $0x9bc] ss:$40 sps:$4 sm:$0xff]   ;;  %v7217_v6 = vld [vmem:[#allocation7 + $0x9b0] ss:$40 sps:$4 sm:$0xff]  }
 0x4da   :  { %2715 = vmatprep.subr.bf16.mxu0 %v7147_v7  ;;  %2797 = vmatprep.subr.bf16.mxu1 %v7150_v8  ;;  %v7220_v7 = vld [vmem:[#allocation7 + $0x9b8] ss:$40 sps:$4 sm:$0xff]   ;;  %v1084_v8 = vmax.f32 %v1072_v61, %v1080_v4  ;;  %v7291_v61 = vld [vmem:[#allocation7 + $0x384] ss:$40 sps:$4 sm:$0xff]  }
 0x4db   :  { %v7300_v4 = vld [vmem:[#allocation7 + $0x3dc] ss:$40 sps:$4 sm:$0xff]  }
 0x4dd   :  { %2716 = vmatpush1.bf16.msra.mxu0 %v7145_v9  ;;  %2798 = vmatpush1.bf16.msra.mxu1 %v7148_v10  ;;  %v7228_v9 = vld [vmem:[#allocation7 + $0x1c] ss:$40 sps:$4 sm:$0xff]   ;;  %v7223_v10 = vld [vmem:[#allocation7 + $0x10] ss:$40 sps:$4 sm:$0xff]  }
 0x4de   :  { %2717 = vmatprep.subr.bf16.mxu0 %v7153_v11  ;;  %2799 = vmatprep.subr.bf16.mxu1 %v7156_v12  ;;  %v8237_v11 = vpack.c.bf16 %v1084_v8, %v1084_v8  ;;  %v7226_v12 = vld [vmem:[#allocation7 + $0x18] ss:$40 sps:$4 sm:$0xff]  }
 0x4df   :  { %v7301_v8 = vld [vmem:[#allocation7 + $0x420] ss:$40 sps:$4 sm:$0xff]  }
 0x4e1   :  { %2718 = vmatpush1.bf16.msra.mxu0 %v7151_v15  ;;  %2800 = vmatpush1.bf16.msra.mxu1 %v7154_v17  ;;  %v7231_v15 = vld [vmem:[#allocation7 + $0x64] ss:$40 sps:$4 sm:$0xff]  }
 0x4e2   :  { %2719 = vmatprep.subr.bf16.mxu0 %v7159_v18  ;;  %2801 = vmatprep.subr.bf16.mxu1 %v7162_v19  ;;  %v7234_v17 = vld [vmem:[#allocation7 + $0x6c] ss:$40 sps:$4 sm:$0xff]   ;;  %v7229_v18 = vld [vmem:[#allocation7 + $0x60] ss:$40 sps:$4 sm:$0xff]  }
 0x4e3   :  { %v7232_v19 = vld [vmem:[#allocation7 + $0x68] ss:$40 sps:$4 sm:$0xff]  }
 0x4e5   :  { %2720 = vmatpush1.bf16.msra.mxu0 %v7157_v20  ;;  %2802 = vmatpush1.bf16.msra.mxu1 %v7160_v21  ;;  %v7237_v20 = vld [vmem:[#allocation7 + $0xb4] ss:$40 sps:$4 sm:$0xff]  }
 0x4e6   :  { %2721 = vmatprep.subr.bf16.mxu0 %v7165_v22  ;;  %2803 = vmatprep.subr.bf16.mxu1 %v7168_v23  ;;  %v7240_v21 = vld [vmem:[#allocation7 + $0xbc] ss:$40 sps:$4 sm:$0xff]   ;;  %v7235_v22 = vld [vmem:[#allocation7 + $0xb0] ss:$40 sps:$4 sm:$0xff]  }
 0x4e7   :  { %v7238_v23 = vld [vmem:[#allocation7 + $0xb8] ss:$40 sps:$4 sm:$0xff]  }
 0x4e9   :  { %2722 = vmatpush1.bf16.msra.mxu0 %v7163_v24  ;;  %2804 = vmatpush1.bf16.msra.mxu1 %v7166_v25  ;;  %v7243_v24 = vld [vmem:[#allocation7 + $0x104] ss:$40 sps:$4 sm:$0xff]  }
 0x4ea   :  { %2723 = vmatprep.subr.bf16.mxu0 %v7171_v26  ;;  %2805 = vmatprep.subr.bf16.mxu1 %v7174_v27  ;;  %v7246_v25 = vld [vmem:[#allocation7 + $0x10c] ss:$40 sps:$4 sm:$0xff]   ;;  %v7241_v26 = vld [vmem:[#allocation7 + $0x100] ss:$40 sps:$4 sm:$0xff]  }
 0x4eb   :  { %v7244_v27 = vld [vmem:[#allocation7 + $0x108] ss:$40 sps:$4 sm:$0xff]  }
 0x4ed   :  { %2724 = vmatpush1.bf16.msra.mxu0 %v7169_v28  ;;  %2806 = vmatpush1.bf16.msra.mxu1 %v7172_v29  ;;  %v7249_v28 = vld [vmem:[#allocation7 + $0x154] ss:$40 sps:$4 sm:$0xff]   ;;  %v7247_v29 = vld [vmem:[#allocation7 + $0x150] ss:$40 sps:$4 sm:$0xff]  }
 0x4ee   :  { %2725 = vmatprep.subr.bf16.mxu0 %v7177_v30  ;;  %2807 = vmatprep.subr.bf16.mxu1 %v7180_v31  ;;  %v7250_v30 = vld [vmem:[#allocation7 + $0x158] ss:$40 sps:$4 sm:$0xff]   ;;  %v7255_v31 = vld [vmem:[#allocation7 + $0x1a4] ss:$40 sps:$4 sm:$0xff]  }
 0x4f1   :  { %2726 = vmatpush1.bf16.msra.mxu0 %v7175_v32  ;;  %2808 = vmatpush1.bf16.msra.mxu1 %v7178_v33  ;;  %v7258_v32 = vld [vmem:[#allocation7 + $0x1ac] ss:$40 sps:$4 sm:$0xff]   ;;  %v7253_v33 = vld [vmem:[#allocation7 + $0x1a0] ss:$40 sps:$4 sm:$0xff]  }
 0x4f2   :  { %2727 = vmatprep.subr.bf16.mxu0 %v7183_v34  ;;  %2809 = vmatprep.subr.bf16.mxu1 %v7186_v37  ;;  %v7256_v34 = vld [vmem:[#allocation7 + $0x1a8] ss:$40 sps:$4 sm:$0xff]   ;;  %v7261_v37 = vld [vmem:[#allocation7 + $0x1f4] ss:$40 sps:$4 sm:$0xff]  }
 0x4f5   :  { %2728 = vmatpush1.bf16.msra.mxu0 %v7181_v38  ;;  %2810 = vmatpush1.bf16.msra.mxu1 %v7184_v39  ;;  %v7264_v38 = vld [vmem:[#allocation7 + $0x1fc] ss:$40 sps:$4 sm:$0xff]   ;;  %v7259_v39 = vld [vmem:[#allocation7 + $0x1f0] ss:$40 sps:$4 sm:$0xff]  }
 0x4f6   :  { %2729 = vmatprep.subr.bf16.mxu0 %v7189_v40  ;;  %2811 = vmatprep.subr.bf16.mxu1 %v7192_v42  ;;  %v7262_v40 = vld [vmem:[#allocation7 + $0x1f8] ss:$40 sps:$4 sm:$0xff]   ;;  %v7267_v42 = vld [vmem:[#allocation7 + $0x244] ss:$40 sps:$4 sm:$0xff]  }
 0x4f9   :  { %2730 = vmatpush1.bf16.msra.mxu0 %v7187_v43  ;;  %2812 = vmatpush1.bf16.msra.mxu1 %v7190_v44  ;;  %v7270_v43 = vld [vmem:[#allocation7 + $0x24c] ss:$40 sps:$4 sm:$0xff]   ;;  %v7265_v44 = vld [vmem:[#allocation7 + $0x240] ss:$40 sps:$4 sm:$0xff]  }
 0x4fa   :  { %2731 = vmatprep.subr.bf16.mxu0 %v7195_v45  ;;  %2813 = vmatprep.subr.bf16.mxu1 %v7198_v46  ;;  %v7268_v45 = vld [vmem:[#allocation7 + $0x248] ss:$40 sps:$4 sm:$0xff]   ;;  %v7273_v46 = vld [vmem:[#allocation7 + $0x294] ss:$40 sps:$4 sm:$0xff]  }
 0x4fd   :  { %2732 = vmatpush1.bf16.msra.mxu0 %v7193_v47  ;;  %2814 = vmatpush1.bf16.msra.mxu1 %v7196_v48  ;;  %v7276_v47 = vld [vmem:[#allocation7 + $0x29c] ss:$40 sps:$4 sm:$0xff]   ;;  %v7271_v48 = vld [vmem:[#allocation7 + $0x290] ss:$40 sps:$4 sm:$0xff]  }
 0x4fe   :  { %2733 = vmatprep.subr.bf16.mxu0 %v7201_v50  ;;  %2815 = vmatprep.subr.bf16.mxu1 %v7204_v51  ;;  %v7274_v50 = vld [vmem:[#allocation7 + $0x298] ss:$40 sps:$4 sm:$0xff]   ;;  %v7279_v51 = vld [vmem:[#allocation7 + $0x2e4] ss:$40 sps:$4 sm:$0xff]  }
 0x501   :  { %2734 = vmatpush1.bf16.msra.mxu0 %v7199_v52  ;;  %2816 = vmatpush1.bf16.msra.mxu1 %v7202_v53  ;;  %v7282_v52 = vld [vmem:[#allocation7 + $0x2ec] ss:$40 sps:$4 sm:$0xff]   ;;  %v7277_v53 = vld [vmem:[#allocation7 + $0x2e0] ss:$40 sps:$4 sm:$0xff]  }
 0x502   :  { %2735 = vmatprep.subr.bf16.mxu0 %v7207_v55  ;;  %2817 = vmatprep.subr.bf16.mxu1 %v7210_v56  ;;  %v7285_v55 = vld [vmem:[#allocation7 + $0x334] ss:$40 sps:$4 sm:$0xff]  }
 0x503   :  { %v7288_v56 = vld [vmem:[#allocation7 + $0x33c] ss:$40 sps:$4 sm:$0xff]  }
 0x505   :  { %2736 = vmatpush1.bf16.msra.mxu0 %v7205_v58  ;;  %2818 = vmatpush1.bf16.msra.mxu1 %v7208_v59  ;;  %v7283_v58 = vld [vmem:[#allocation7 + $0x330] ss:$40 sps:$4 sm:$0xff]  }
 0x506   :  { %2737 = vmatprep.subr.bf16.mxu0 %v7213_v62  ;;  %2819 = vmatprep.subr.bf16.mxu1 %v7216_v1  ;;  %v7286_v59 = vld [vmem:[#allocation7 + $0x338] ss:$40 sps:$4 sm:$0xff]   ;;  %v7294_v62 = vld [vmem:[#allocation7 + $0x38c] ss:$40 sps:$4 sm:$0xff]  }
 0x507   :  { %v7289_v1 = vld [vmem:[#allocation7 + $0x380] ss:$40 sps:$4 sm:$0xff]  }
 0x509   :  { %2738 = vmatpush1.bf16.msra.mxu0 %v7211_v2  ;;  %2820 = vmatpush1.bf16.msra.mxu1 %v7214_v3  ;;  %v7292_v2 = vld [vmem:[#allocation7 + $0x388] ss:$40 sps:$4 sm:$0xff]   ;;  %v7297_v3 = vld [vmem:[#allocation7 + $0x3d4] ss:$40 sps:$4 sm:$0xff]  }
 0x50a   :  { %2739 = vmatprep.subr.bf16.mxu0 %v7219_v35  ;;  %2821 = vmatprep.subr.bf16.mxu1 %v7222_v5  ;;  %v7295_v35 = vld [vmem:[#allocation7 + $0x3d0] ss:$40 sps:$4 sm:$0xff]  }
 0x50b   :  { %v7298_v5 = vld [vmem:[#allocation7 + $0x3d8] ss:$40 sps:$4 sm:$0xff]  }
 0x50d   :  { %2740 = vmatpush1.bf16.msra.mxu0 %v7217_v6  ;;  %2822 = vmatpush1.bf16.msra.mxu1 %v7220_v7  ;;  %v7303_v6 = vld [vmem:[#allocation7 + $0x424] ss:$40 sps:$4 sm:$0xff]  }
 0x50e   :  { %2832 = vmatprep.subr.bf16.mxu0 %v7225_v41  ;;  %2914 = vmatprep.subr.bf16.mxu1 %v7228_v9  ;;  %v7306_v7 = vld [vmem:[#allocation7 + $0x42c] ss:$40 sps:$4 sm:$0xff]   ;;  %v7304_v41 = vld [vmem:[#allocation7 + $0x428] ss:$40 sps:$4 sm:$0xff]  }
 0x50f   :  { %v7309_v9 = vld [vmem:[#allocation7 + $0x474] ss:$40 sps:$4 sm:$0xff]  }
 0x510   :  { %2742 = vmatmul.mubr.bf16.vlgmr.msra.gmra.mrb[12].mxu0 %v8237_v11  ;;  %2824 = vmatmul.mubr.bf16.vlgmr.msra.gmra.mrb[12].mxu1 %v8237_v11 }
 0x511   :  { %2833 = vmatpush1.bf16.msra.mxu0 %v7223_v10  ;;  %2864 = vmatprep.mubr.bf16.mxu0 %v8219_v57  ;;  %v7312_v10 = vld [vmem:[#allocation7 + $0x47c] ss:$40 sps:$4 sm:$0xff]  }
 0x512   :  { %2915 = vmatpush1.bf16.msra.mxu1 %v7226_v12  ;;  %2946 = vmatprep.mubr.bf16.mxu1 %v8219_v57  ;;  %v7252_v57 = vld [vmem:[#allocation7 + $0x15c] ss:$40 sps:$4 sm:$0xff]   ;;  %v7307_v12 = vld [vmem:[#allocation7 + $0x470] ss:$40 sps:$4 sm:$0xff]  }
 0x513   :  { %2834 = vmatprep.subr.bf16.mxu0 %v7231_v15  ;;  %2916 = vmatprep.subr.bf16.mxu1 %v7234_v17  ;;  %v7310_v15 = vld [vmem:[#allocation7 + $0x478] ss:$40 sps:$4 sm:$0xff]   ;;  %v7315_v17 = vld [vmem:[#allocation7 + $0x4c4] ss:$40 sps:$4 sm:$0xff]  }
 0x515   :  { %2835 = vmatpush1.bf16.msra.mxu0 %v7229_v18  ;;  %v7318_v18 = vld [vmem:[#allocation7 + $0x4cc] ss:$40 sps:$4 sm:$0xff]  }
 0x516   :  { %2917 = vmatpush1.bf16.msra.mxu1 %v7232_v19  ;;  %2836 = vmatprep.subr.bf16.mxu0 %v7237_v20  ;;  %v7313_v19 = vld [vmem:[#allocation7 + $0x4c0] ss:$40 sps:$4 sm:$0xff]  }
 0x517   :  { %2918 = vmatprep.subr.bf16.mxu1 %v7240_v21  ;;  %v7316_v20 = vld [vmem:[#allocation7 + $0x4c8] ss:$40 sps:$4 sm:$0xff]   ;;  %v7321_v21 = vld [vmem:[#allocation7 + $0x514] ss:$40 sps:$4 sm:$0xff]  }
 0x519   :  { %2837 = vmatpush1.bf16.msra.mxu0 %v7235_v22  ;;  %v7324_v22 = vld [vmem:[#allocation7 + $0x51c] ss:$40 sps:$4 sm:$0xff]  }
 0x51a   :  { %2919 = vmatpush1.bf16.msra.mxu1 %v7238_v23  ;;  %2838 = vmatprep.subr.bf16.mxu0 %v7243_v24  ;;  %v7319_v23 = vld [vmem:[#allocation7 + $0x510] ss:$40 sps:$4 sm:$0xff]  }
 0x51b   :  { %2920 = vmatprep.subr.bf16.mxu1 %v7246_v25  ;;  %v7322_v24 = vld [vmem:[#allocation7 + $0x518] ss:$40 sps:$4 sm:$0xff]   ;;  %v7327_v25 = vld [vmem:[#allocation7 + $0x564] ss:$40 sps:$4 sm:$0xff]  }
 0x51d   :  { %2839 = vmatpush1.bf16.msra.mxu0 %v7241_v26  ;;  %v7330_v26 = vld [vmem:[#allocation7 + $0x56c] ss:$40 sps:$4 sm:$0xff]  }
 0x51e   :  { %2921 = vmatpush1.bf16.msra.mxu1 %v7244_v27  ;;  %2840 = vmatprep.subr.bf16.mxu0 %v7249_v28  ;;  %v7325_v27 = vld [vmem:[#allocation7 + $0x560] ss:$40 sps:$4 sm:$0xff]  }
 0x51f   :  { %2922 = vmatprep.subr.bf16.mxu1 %v7252_v57  ;;  %v7328_v28 = vld [vmem:[#allocation7 + $0x568] ss:$40 sps:$4 sm:$0xff]   ;;  %v7333_v57 = vld [vmem:[#allocation7 + $0x5b4] ss:$40 sps:$4 sm:$0xff]  }
 0x521   :  { %2841 = vmatpush1.bf16.msra.mxu0 %v7247_v29  ;;  %v7336_v29 = vld [vmem:[#allocation7 + $0x5bc] ss:$40 sps:$4 sm:$0xff]  }
 0x522   :  { %2923 = vmatpush1.bf16.msra.mxu1 %v7250_v30  ;;  %2842 = vmatprep.subr.bf16.mxu0 %v7255_v31  ;;  %v7331_v30 = vld [vmem:[#allocation7 + $0x5b0] ss:$40 sps:$4 sm:$0xff]  }
 0x523   :  { %2924 = vmatprep.subr.bf16.mxu1 %v7258_v32  ;;  %v7334_v31 = vld [vmem:[#allocation7 + $0x5b8] ss:$40 sps:$4 sm:$0xff]   ;;  %v7339_v32 = vld [vmem:[#allocation7 + $0x604] ss:$40 sps:$4 sm:$0xff]  }
 0x525   :  { %2843 = vmatpush1.bf16.msra.mxu0 %v7253_v33  ;;  %v7337_v33 = vld [vmem:[#allocation7 + $0x600] ss:$40 sps:$4 sm:$0xff]  }
 0x526   :  { %2925 = vmatpush1.bf16.msra.mxu1 %v7256_v34  ;;  %2844 = vmatprep.subr.bf16.mxu0 %v7261_v37  ;;  %v7340_v34 = vld [vmem:[#allocation7 + $0x608] ss:$40 sps:$4 sm:$0xff]   ;;  %v7345_v37 = vld [vmem:[#allocation7 + $0x654] ss:$40 sps:$4 sm:$0xff]  }
 0x527   :  { %2926 = vmatprep.subr.bf16.mxu1 %v7264_v38  ;;  %v7348_v38 = vld [vmem:[#allocation7 + $0x65c] ss:$40 sps:$4 sm:$0xff]  }
 0x529   :  { %2845 = vmatpush1.bf16.msra.mxu0 %v7259_v39  ;;  %v7346_v39 = vld [vmem:[#allocation7 + $0x658] ss:$40 sps:$4 sm:$0xff]  }
 0x52a   :  { %2927 = vmatpush1.bf16.msra.mxu1 %v7262_v40  ;;  %2846 = vmatprep.subr.bf16.mxu0 %v7267_v42  ;;  %v7351_v40 = vld [vmem:[#allocation7 + $0x6a4] ss:$40 sps:$4 sm:$0xff]  }
 0x52b   :  { %2928 = vmatprep.subr.bf16.mxu1 %v7270_v43  ;;  %v7354_v42 = vld [vmem:[#allocation7 + $0x6ac] ss:$40 sps:$4 sm:$0xff]   ;;  %v7349_v43 = vld [vmem:[#allocation7 + $0x6a0] ss:$40 sps:$4 sm:$0xff]  }
 0x52d   :  { %2847 = vmatpush1.bf16.msra.mxu0 %v7265_v44  ;;  %v7352_v44 = vld [vmem:[#allocation7 + $0x6a8] ss:$40 sps:$4 sm:$0xff]  }
 0x52e   :  { %2929 = vmatpush1.bf16.msra.mxu1 %v7268_v45  ;;  %2848 = vmatprep.subr.bf16.mxu0 %v7273_v46  ;;  %v7357_v45 = vld [vmem:[#allocation7 + $0x6f4] ss:$40 sps:$4 sm:$0xff]  }
 0x52f   :  { %2930 = vmatprep.subr.bf16.mxu1 %v7276_v47  ;;  %v7360_v46 = vld [vmem:[#allocation7 + $0x6fc] ss:$40 sps:$4 sm:$0xff]   ;;  %v7355_v47 = vld [vmem:[#allocation7 + $0x6f0] ss:$40 sps:$4 sm:$0xff]  }
 0x531   :  { %2849 = vmatpush1.bf16.msra.mxu0 %v7271_v48  ;;  %v7358_v48 = vld [vmem:[#allocation7 + $0x6f8] ss:$40 sps:$4 sm:$0xff]  }
 0x532   :  { %2931 = vmatpush1.bf16.msra.mxu1 %v7274_v50  ;;  %2850 = vmatprep.subr.bf16.mxu0 %v7279_v51  ;;  %v7363_v50 = vld [vmem:[#allocation7 + $0x744] ss:$40 sps:$4 sm:$0xff]  }
 0x533   :  { %2932 = vmatprep.subr.bf16.mxu1 %v7282_v52  ;;  %v7366_v51 = vld [vmem:[#allocation7 + $0x74c] ss:$40 sps:$4 sm:$0xff]   ;;  %v7361_v52 = vld [vmem:[#allocation7 + $0x740] ss:$40 sps:$4 sm:$0xff]  }
 0x535   :  { %2851 = vmatpush1.bf16.msra.mxu0 %v7277_v53  ;;  %v7364_v53 = vld [vmem:[#allocation7 + $0x748] ss:$40 sps:$4 sm:$0xff]  }
 0x536   :  { %2933 = vmatpush1.bf16.msra.mxu1 %v7280_v54  ;;  %2852 = vmatprep.subr.bf16.mxu0 %v7285_v55  ;;  %v7369_v54 = vld [vmem:[#allocation7 + $0x794] ss:$40 sps:$4 sm:$0xff]  }
 0x537   :  { %2934 = vmatprep.subr.bf16.mxu1 %v7288_v56  ;;  %v7372_v55 = vld [vmem:[#allocation7 + $0x79c] ss:$40 sps:$4 sm:$0xff]   ;;  %v7367_v56 = vld [vmem:[#allocation7 + $0x790] ss:$40 sps:$4 sm:$0xff]  }
 0x539   :  { %2853 = vmatpush1.bf16.msra.mxu0 %v7283_v58  ;;  %v7370_v58 = vld [vmem:[#allocation7 + $0x798] ss:$40 sps:$4 sm:$0xff]  }
 0x53a   :  { %2935 = vmatpush1.bf16.msra.mxu1 %v7286_v59  ;;  %2854 = vmatprep.subr.bf16.mxu0 %v7291_v61  ;;  %v7375_v59 = vld [vmem:[#allocation7 + $0x7e4] ss:$40 sps:$4 sm:$0xff]  }
 0x53b   :  { %2936 = vmatprep.subr.bf16.mxu1 %v7294_v62  ;;  %v7378_v61 = vld [vmem:[#allocation7 + $0x7ec] ss:$40 sps:$4 sm:$0xff]   ;;  %v7373_v62 = vld [vmem:[#allocation7 + $0x7e0] ss:$40 sps:$4 sm:$0xff]  }
 0x53d   :  { %2855 = vmatpush1.bf16.msra.mxu0 %v7289_v1  ;;  %v7376_v1 = vld [vmem:[#allocation7 + $0x7e8] ss:$40 sps:$4 sm:$0xff]  }
 0x53e   :  { %2937 = vmatpush1.bf16.msra.mxu1 %v7292_v2  ;;  %2856 = vmatprep.subr.bf16.mxu0 %v7297_v3  ;;  %v7381_v2 = vld [vmem:[#allocation7 + $0x834] ss:$40 sps:$4 sm:$0xff]  }
 0x53f   :  { %2938 = vmatprep.subr.bf16.mxu1 %v7300_v4  ;;  %v7384_v3 = vld [vmem:[#allocation7 + $0x83c] ss:$40 sps:$4 sm:$0xff]   ;;  %v7379_v4 = vld [vmem:[#allocation7 + $0x830] ss:$40 sps:$4 sm:$0xff]  }
 0x541   :  { %2857 = vmatpush1.bf16.msra.mxu0 %v7295_v35  ;;  %v7382_v35 = vld [vmem:[#allocation7 + $0x838] ss:$40 sps:$4 sm:$0xff]  }
 0x542   :  { %2939 = vmatpush1.bf16.msra.mxu1 %v7298_v5  ;;  %2858 = vmatprep.subr.bf16.mxu0 %v7303_v6  ;;  %v7387_v5 = vld [vmem:[#allocation7 + $0x884] ss:$40 sps:$4 sm:$0xff]  }
 0x543   :  { %2940 = vmatprep.subr.bf16.mxu1 %v7306_v7  ;;  %v7390_v6 = vld [vmem:[#allocation7 + $0x88c] ss:$40 sps:$4 sm:$0xff]   ;;  %v7385_v7 = vld [vmem:[#allocation7 + $0x880] ss:$40 sps:$4 sm:$0xff]  }
 0x545   :  { %2859 = vmatpush1.bf16.msra.mxu0 %v7301_v8  ;;  %v7388_v8 = vld [vmem:[#allocation7 + $0x888] ss:$40 sps:$4 sm:$0xff]  }
 0x546   :  { %2941 = vmatpush1.bf16.msra.mxu1 %v7304_v41  ;;  %2860 = vmatprep.subr.bf16.mxu0 %v7309_v9  ;;  %v7393_v41 = vld [vmem:[#allocation7 + $0x8d4] ss:$40 sps:$4 sm:$0xff]  }
 0x547   :  { %2942 = vmatprep.subr.bf16.mxu1 %v7312_v10  ;;  %v7396_v9 = vld [vmem:[#allocation7 + $0x8dc] ss:$40 sps:$4 sm:$0xff]   ;;  %v7391_v10 = vld [vmem:[#allocation7 + $0x8d0] ss:$40 sps:$4 sm:$0xff]  }
 0x549   :  { %2861 = vmatpush1.bf16.msra.mxu0 %v7307_v12  ;;  %v7394_v12 = vld [vmem:[#allocation7 + $0x8d8] ss:$40 sps:$4 sm:$0xff]  }
 0x54a   :  { %2943 = vmatpush1.bf16.msra.mxu1 %v7310_v15  ;;  %2862 = vmatprep.subr.bf16.mxu0 %v7315_v17  ;;  %v7399_v15 = vld [vmem:[#allocation7 + $0x924] ss:$40 sps:$4 sm:$0xff]  }
 0x54b   :  { %2944 = vmatprep.subr.bf16.mxu1 %v7318_v18  ;;  %v7402_v17 = vld [vmem:[#allocation7 + $0x92c] ss:$40 sps:$4 sm:$0xff]   ;;  %v7397_v18 = vld [vmem:[#allocation7 + $0x920] ss:$40 sps:$4 sm:$0xff]  }
 0x54d   :  { %2863 = vmatpush1.bf16.msra.mxu0 %v7313_v19  ;;  %v7400_v19 = vld [vmem:[#allocation7 + $0x928] ss:$40 sps:$4 sm:$0xff]  }
 0x54e   :  { %2945 = vmatpush1.bf16.msra.mxu1 %v7316_v20  ;;  %2873 = vmatprep.subr.bf16.mxu0 %v7321_v21  ;;  %v7405_v20 = vld [vmem:[#allocation7 + $0x974] ss:$40 sps:$4 sm:$0xff]  }
 0x54f   :  { %2955 = vmatprep.subr.bf16.mxu1 %v7324_v22  ;;  %v7408_v21 = vld [vmem:[#allocation7 + $0x97c] ss:$40 sps:$4 sm:$0xff]   ;;  %v7403_v22 = vld [vmem:[#allocation7 + $0x970] ss:$40 sps:$4 sm:$0xff]  }
 0x550   :  { %2865 = vmatmul.mubr.bf16.vlgmr.msra.gmra.mrb[16].mxu0 %v8221_v60 }
 0x551   :  { %2947 = vmatmul.mubr.bf16.vlgmr.msra.gmra.mrb[16].mxu1 %v8221_v60  ;;  %2874 = vmatpush1.bf16.msra.mxu0 %v7319_v23  ;;  %v7342_v60 = vld [vmem:[#allocation7 + $0x60c] ss:$40 sps:$4 sm:$0xff]   ;;  %v7406_v23 = vld [vmem:[#allocation7 + $0x978] ss:$40 sps:$4 sm:$0xff]  }
 0x552   :  { %2905 = vmatprep.mubr.bf16.mxu0 %v8225_v63  ;;  %2956 = vmatpush1.bf16.msra.mxu1 %v7322_v24  ;;  %v7411_v24 = vld [vmem:[#allocation7 + $0x9c4] ss:$40 sps:$4 sm:$0xff]  }
 0x553   :  { %2987 = vmatprep.mubr.bf16.mxu1 %v8225_v63  ;;  %2875 = vmatprep.subr.bf16.mxu0 %v7327_v25  ;;  %v7343_v63 = vld [vmem:[#allocation7 + $0x650] ss:$40 sps:$4 sm:$0xff]   ;;  %v7414_v25 = vld [vmem:[#allocation7 + $0x9cc] ss:$40 sps:$4 sm:$0xff]  }
 0x554   :  { %2957 = vmatprep.subr.bf16.mxu1 %v7330_v26  ;;  %v7409_v26 = vld [vmem:[#allocation7 + $0x9c0] ss:$40 sps:$4 sm:$0xff]  }
 0x555   :  { %2876 = vmatpush1.bf16.msra.mxu0 %v7325_v27  ;;  %v7412_v27 = vld [vmem:[#allocation7 + $0x9c8] ss:$40 sps:$4 sm:$0xff]  }
 0x556   :  { %2958 = vmatpush1.bf16.msra.mxu1 %v7328_v28  ;;  %2877 = vmatprep.subr.bf16.mxu0 %v7333_v57  ;;  %v7417_v28 = vld [vmem:[#allocation8 + $0x4] ss:$16 sps:$4 sm:$0xff]   ;;  %v7420_v57 = vld [vmem:[#allocation8 + $0xc] ss:$16 sps:$4 sm:$0xff]  }
 0x557   :  { %2959 = vmatprep.subr.bf16.mxu1 %v7336_v29  ;;  %v7415_v29 = vld [vmem:[#allocation8] ss:$16 sps:$4 sm:$0xff]  }
 0x559   :  { %2878 = vmatpush1.bf16.msra.mxu0 %v7331_v30  ;;  %v7418_v30 = vld [vmem:[#allocation8 + $0x8] ss:$16 sps:$4 sm:$0xff]  }
 0x55a   :  { %2960 = vmatpush1.bf16.msra.mxu1 %v7334_v31  ;;  %2879 = vmatprep.subr.bf16.mxu0 %v7339_v32  ;;  %v7423_v31 = vld [vmem:[#allocation8 + $0x24] ss:$16 sps:$4 sm:$0xff]   ;;  %v7426_v32 = vld [vmem:[#allocation8 + $0x2c] ss:$16 sps:$4 sm:$0xff]  }
 0x55b   :  { %2961 = vmatprep.subr.bf16.mxu1 %v7342_v60  ;;  %v7421_v60 = vld [vmem:[#allocation8 + $0x20] ss:$16 sps:$4 sm:$0xff]  }
 0x55d   :  { %2880 = vmatpush1.bf16.msra.mxu0 %v7337_v33  ;;  %v7424_v33 = vld [vmem:[#allocation8 + $0x28] ss:$16 sps:$4 sm:$0xff]  }
 0x55e   :  { %2962 = vmatpush1.bf16.msra.mxu1 %v7340_v34  ;;  %2881 = vmatprep.subr.bf16.mxu0 %v7345_v37  ;;  %v7429_v34 = vld [vmem:[#allocation8 + $0x44] ss:$16 sps:$4 sm:$0xff]   ;;  %v7432_v37 = vld [vmem:[#allocation8 + $0x4c] ss:$16 sps:$4 sm:$0xff]  }
 0x55f   :  { %2963 = vmatprep.subr.bf16.mxu1 %v7348_v38  ;;  %v7427_v38 = vld [vmem:[#allocation8 + $0x40] ss:$16 sps:$4 sm:$0xff]  }
 0x561   :  { %2882 = vmatpush1.bf16.msra.mxu0 %v7343_v63  ;;  %v7430_v63 = vld [vmem:[#allocation8 + $0x48] ss:$16 sps:$4 sm:$0xff]  }
 0x562   :  { %2964 = vmatpush1.bf16.msra.mxu1 %v7346_v39  ;;  %2883 = vmatprep.subr.bf16.mxu0 %v7351_v40  ;;  %v7435_v39 = vld [vmem:[#allocation8 + $0x64] ss:$16 sps:$4 sm:$0xff]   ;;  %v7438_v40 = vld [vmem:[#allocation8 + $0x6c] ss:$16 sps:$4 sm:$0xff]  }
 0x563   :  { %2965 = vmatprep.subr.bf16.mxu1 %v7354_v42  ;;  %v7433_v42 = vld [vmem:[#allocation8 + $0x60] ss:$16 sps:$4 sm:$0xff]  }
 0x565   :  { %2884 = vmatpush1.bf16.msra.mxu0 %v7349_v43  ;;  %v7441_v43 = vld [vmem:[#allocation8 + $0x84] ss:$16 sps:$4 sm:$0xff]  }
 0x566   :  { %2966 = vmatpush1.bf16.msra.mxu1 %v7352_v44  ;;  %2885 = vmatprep.subr.bf16.mxu0 %v7357_v45  ;;  %v7444_v44 = vld [vmem:[#allocation8 + $0x8c] ss:$16 sps:$4 sm:$0xff]   ;;  %v7439_v45 = vld [vmem:[#allocation8 + $0x80] ss:$16 sps:$4 sm:$0xff]  }
 0x567   :  { %2967 = vmatprep.subr.bf16.mxu1 %v7360_v46  ;;  %v7442_v46 = vld [vmem:[#allocation8 + $0x88] ss:$16 sps:$4 sm:$0xff]  }
 0x569   :  { %2886 = vmatpush1.bf16.msra.mxu0 %v7355_v47  ;;  %v7447_v47 = vld [vmem:[#allocation8 + $0xa4] ss:$16 sps:$4 sm:$0xff]  }
 0x56a   :  { %2968 = vmatpush1.bf16.msra.mxu1 %v7358_v48  ;;  %2887 = vmatprep.subr.bf16.mxu0 %v7363_v50  ;;  %v7450_v48 = vld [vmem:[#allocation8 + $0xac] ss:$16 sps:$4 sm:$0xff]   ;;  %v7445_v50 = vld [vmem:[#allocation8 + $0xa0] ss:$16 sps:$4 sm:$0xff]  }
 0x56b   :  { %2969 = vmatprep.subr.bf16.mxu1 %v7366_v51  ;;  %v7448_v51 = vld [vmem:[#allocation8 + $0xa8] ss:$16 sps:$4 sm:$0xff]  }
 0x56d   :  { %2888 = vmatpush1.bf16.msra.mxu0 %v7361_v52  ;;  %v7453_v52 = vld [vmem:[#allocation8 + $0xc4] ss:$16 sps:$4 sm:$0xff]  }
 0x56e   :  { %2970 = vmatpush1.bf16.msra.mxu1 %v7364_v53  ;;  %2889 = vmatprep.subr.bf16.mxu0 %v7369_v54  ;;  %v7456_v53 = vld [vmem:[#allocation8 + $0xcc] ss:$16 sps:$4 sm:$0xff]   ;;  %v7451_v54 = vld [vmem:[#allocation8 + $0xc0] ss:$16 sps:$4 sm:$0xff]  }
 0x56f   :  { %2971 = vmatprep.subr.bf16.mxu1 %v7372_v55  ;;  %v7454_v55 = vld [vmem:[#allocation8 + $0xc8] ss:$16 sps:$4 sm:$0xff]  }
 0x571   :  { %2890 = vmatpush1.bf16.msra.mxu0 %v7367_v56  ;;  %v7459_v56 = vld [vmem:[#allocation8 + $0xe4] ss:$16 sps:$4 sm:$0xff]  }
 0x572   :  { %2972 = vmatpush1.bf16.msra.mxu1 %v7370_v58  ;;  %2891 = vmatprep.subr.bf16.mxu0 %v7375_v59  ;;  %v7462_v58 = vld [vmem:[#allocation8 + $0xec] ss:$16 sps:$4 sm:$0xff]   ;;  %v7457_v59 = vld [vmem:[#allocation8 + $0xe0] ss:$16 sps:$4 sm:$0xff]  }
 0x573   :  { %2973 = vmatprep.subr.bf16.mxu1 %v7378_v61  ;;  %v7460_v61 = vld [vmem:[#allocation8 + $0xe8] ss:$16 sps:$4 sm:$0xff]  }
 0x575   :  { %2892 = vmatpush1.bf16.msra.mxu0 %v7373_v62  ;;  %v7465_v62 = vld [vmem:[#allocation8 + $0x104] ss:$16 sps:$4 sm:$0xff]  }
 0x576   :  { %2974 = vmatpush1.bf16.msra.mxu1 %v7376_v1  ;;  %2893 = vmatprep.subr.bf16.mxu0 %v7381_v2  ;;  %v7468_v1 = vld [vmem:[#allocation8 + $0x10c] ss:$16 sps:$4 sm:$0xff]   ;;  %v7463_v2 = vld [vmem:[#allocation8 + $0x100] ss:$16 sps:$4 sm:$0xff]  }
 0x577   :  { %2975 = vmatprep.subr.bf16.mxu1 %v7384_v3  ;;  %v7466_v3 = vld [vmem:[#allocation8 + $0x108] ss:$16 sps:$4 sm:$0xff]  }
 0x579   :  { %2894 = vmatpush1.bf16.msra.mxu0 %v7379_v4  ;;  %v7471_v4 = vld [vmem:[#allocation8 + $0x124] ss:$16 sps:$4 sm:$0xff]  }
 0x57a   :  { %2976 = vmatpush1.bf16.msra.mxu1 %v7382_v35  ;;  %2895 = vmatprep.subr.bf16.mxu0 %v7387_v5  ;;  %v7474_v35 = vld [vmem:[#allocation8 + $0x12c] ss:$16 sps:$4 sm:$0xff]   ;;  %v7469_v5 = vld [vmem:[#allocation8 + $0x120] ss:$16 sps:$4 sm:$0xff]  }
 0x57b   :  { %2977 = vmatprep.subr.bf16.mxu1 %v7390_v6  ;;  %v7472_v6 = vld [vmem:[#allocation8 + $0x128] ss:$16 sps:$4 sm:$0xff]  }
 0x57d   :  { %2896 = vmatpush1.bf16.msra.mxu0 %v7385_v7  ;;  %v7477_v7 = vld [vmem:[#allocation8 + $0x144] ss:$16 sps:$4 sm:$0xff]  }
 0x57e   :  { %2978 = vmatpush1.bf16.msra.mxu1 %v7388_v8  ;;  %2897 = vmatprep.subr.bf16.mxu0 %v7393_v41  ;;  %v7480_v8 = vld [vmem:[#allocation8 + $0x14c] ss:$16 sps:$4 sm:$0xff]   ;;  %v7475_v41 = vld [vmem:[#allocation8 + $0x140] ss:$16 sps:$4 sm:$0xff]  }
 0x57f   :  { %2979 = vmatprep.subr.bf16.mxu1 %v7396_v9  ;;  %v7478_v9 = vld [vmem:[#allocation8 + $0x148] ss:$16 sps:$4 sm:$0xff]  }
 0x581   :  { %2898 = vmatpush1.bf16.msra.mxu0 %v7391_v10  ;;  %v7483_v10 = vld [vmem:[#allocation8 + $0x164] ss:$16 sps:$4 sm:$0xff]  }
 0x582   :  { %2980 = vmatpush1.bf16.msra.mxu1 %v7394_v12  ;;  %2899 = vmatprep.subr.bf16.mxu0 %v7399_v15  ;;  %v7486_v12 = vld [vmem:[#allocation8 + $0x16c] ss:$16 sps:$4 sm:$0xff]   ;;  %v7481_v15 = vld [vmem:[#allocation8 + $0x160] ss:$16 sps:$4 sm:$0xff]  }
 0x583   :  { %2981 = vmatprep.subr.bf16.mxu1 %v7402_v17  ;;  %v7484_v17 = vld [vmem:[#allocation8 + $0x168] ss:$16 sps:$4 sm:$0xff]  }
 0x585   :  { %2900 = vmatpush1.bf16.msra.mxu0 %v7397_v18  ;;  %v7489_v18 = vld [vmem:[#allocation8 + $0x184] ss:$16 sps:$4 sm:$0xff]  }
 0x586   :  { %2982 = vmatpush1.bf16.msra.mxu1 %v7400_v19  ;;  %2901 = vmatprep.subr.bf16.mxu0 %v7405_v20  ;;  %v7492_v19 = vld [vmem:[#allocation8 + $0x18c] ss:$16 sps:$4 sm:$0xff]   ;;  %v7487_v20 = vld [vmem:[#allocation8 + $0x180] ss:$16 sps:$4 sm:$0xff]  }
 0x587   :  { %2983 = vmatprep.subr.bf16.mxu1 %v7408_v21  ;;  %v7490_v21 = vld [vmem:[#allocation8 + $0x188] ss:$16 sps:$4 sm:$0xff]  }
 0x589   :  { %2902 = vmatpush1.bf16.msra.mxu0 %v7403_v22  ;;  %v7495_v22 = vld [vmem:[#allocation8 + $0x1a4] ss:$16 sps:$4 sm:$0xff]  }
 0x58a   :  { %2984 = vmatpush1.bf16.msra.mxu1 %v7406_v23  ;;  %2903 = vmatprep.subr.bf16.mxu0 %v7411_v24  ;;  %v7498_v23 = vld [vmem:[#allocation8 + $0x1ac] ss:$16 sps:$4 sm:$0xff]   ;;  %v7493_v24 = vld [vmem:[#allocation8 + $0x1a0] ss:$16 sps:$4 sm:$0xff]  }
 0x58b   :  { %2985 = vmatprep.subr.bf16.mxu1 %v7414_v25  ;;  %v7496_v25 = vld [vmem:[#allocation8 + $0x1a8] ss:$16 sps:$4 sm:$0xff]  }
 0x58d   :  { %2904 = vmatpush1.bf16.msra.mxu0 %v7409_v26  ;;  %v7501_v26 = vld [vmem:[#allocation8 + $0x1c4] ss:$16 sps:$4 sm:$0xff]  }
 0x58e   :  { %2986 = vmatpush1.bf16.msra.mxu1 %v7412_v27  ;;  %4578 = vmatprep.subr.bf16.mxu0 %v7417_v28  ;;  %v7504_v27 = vld [vmem:[#allocation8 + $0x1cc] ss:$16 sps:$4 sm:$0xff]   ;;  %v7499_v28 = vld [vmem:[#allocation8 + $0x1c0] ss:$16 sps:$4 sm:$0xff]  }
 0x58f   :  { %4742 = vmatprep.subr.bf16.mxu1 %v7420_v57  ;;  %v7502_v57 = vld [vmem:[#allocation8 + $0x1c8] ss:$16 sps:$4 sm:$0xff]  }
 0x590   :  { %2906 = vmatmul.mubr.bf16.vlgmr.msra.gmra.mrb[16].mxu0 %v8237_v11 }
 0x591   :  { %2988 = vmatmul.mubr.bf16.vlgmr.msra.gmra.mrb[16].mxu1 %v8237_v11  ;;  %4579 = vmatpush1.bf16.msra.mxu0 %v7415_v29  ;;  %v7436_v11 = vld [vmem:[#allocation8 + $0x68] ss:$16 sps:$4 sm:$0xff]   ;;  %v7507_v29 = vld [vmem:[#allocation8 + $0x1e4] ss:$16 sps:$4 sm:$0xff]  }
 0x592   :  { %4743 = vmatpush1.bf16.msra.mxu1 %v7418_v30  ;;  %4580 = vmatprep.subr.bf16.mxu0 %v7423_v31  ;;  %v7510_v30 = vld [vmem:[#allocation8 + $0x1ec] ss:$16 sps:$4 sm:$0xff]   ;;  %v7505_v31 = vld [vmem:[#allocation8 + $0x1e0] ss:$16 sps:$4 sm:$0xff]  }
 0x593   :  { %4744 = vmatprep.subr.bf16.mxu1 %v7426_v32  ;;  %v7508_v32 = vld [vmem:[#allocation8 + $0x1e8] ss:$16 sps:$4 sm:$0xff]  }
 0x595   :  { %4581 = vmatpush1.bf16.msra.mxu0 %v7421_v60  ;;  %v7513_v60 = vld [vmem:[#allocation8 + $0x204] ss:$16 sps:$4 sm:$0xff]  }
 0x596   :  { %4745 = vmatpush1.bf16.msra.mxu1 %v7424_v33  ;;  %4582 = vmatprep.subr.bf16.mxu0 %v7429_v34  ;;  %v7516_v33 = vld [vmem:[#allocation8 + $0x20c] ss:$16 sps:$4 sm:$0xff]  }
 0x597   :  { %4746 = vmatprep.subr.bf16.mxu1 %v7432_v37  ;;  %v8249_v34 = vld [vmem:[#allocation10 + $0x9] sm:$0xff] }
 0x598   :  { %v1351_v37 = vrot.slane %v8249_v34, %v8199_v14 }
 0x599   :  { %4583 = vmatpush1.bf16.msra.mxu0 %v7427_v38  ;;  %v1355_v38 = vrot.slane %v8249_v34, %v8202_v16 }
 0x59a   :  { %4747 = vmatpush1.bf16.msra.mxu1 %v7430_v63  ;;  %4584 = vmatprep.subr.bf16.mxu0 %v7435_v39  ;;  %v1363_v63 = vrot.slane %v8249_v34, %v8209_v36 }
 0x59b   :  { %4748 = vmatprep.subr.bf16.mxu1 %v7438_v40 }
 0x59d   :  { %4585 = vmatpush1.bf16.msra.mxu0 %v7433_v42 }
 0x59e   :  { %4749 = vmatpush1.bf16.msra.mxu1 %v7436_v11  ;;  %4586 = vmatprep.subr.bf16.mxu0 %v7441_v43 }
 0x59f   :  { %4750 = vmatprep.subr.bf16.mxu1 %v7444_v44 }
 0x5a1   :  { %4587 = vmatpush1.bf16.msra.mxu0 %v7439_v45 }
 0x5a2   :  { %4751 = vmatpush1.bf16.msra.mxu1 %v7442_v46  ;;  %4588 = vmatprep.subr.bf16.mxu0 %v7447_v47 }
 0x5a3   :  { %4752 = vmatprep.subr.bf16.mxu1 %v7450_v48 }
 0x5a5   :  { %4589 = vmatpush1.bf16.msra.mxu0 %v7445_v50 }
 0x5a6   :  { %4753 = vmatpush1.bf16.msra.mxu1 %v7448_v51  ;;  %4590 = vmatprep.subr.bf16.mxu0 %v7453_v52 }
 0x5a7   :  { %4754 = vmatprep.subr.bf16.mxu1 %v7456_v53 }
 0x5a9   :  { %4591 = vmatpush1.bf16.msra.mxu0 %v7451_v54 }
 0x5aa   :  { %4755 = vmatpush1.bf16.msra.mxu1 %v7454_v55  ;;  %4592 = vmatprep.subr.bf16.mxu0 %v7459_v56 }
 0x5ab   :  { %4756 = vmatprep.subr.bf16.mxu1 %v7462_v58 }
 0x5ad   :  { %4593 = vmatpush1.bf16.msra.mxu0 %v7457_v59  ;;  %v7511_v59 = vld [vmem:[#allocation8 + $0x200] ss:$16 sps:$4 sm:$0xff]  }
 0x5ae   :  { %4757 = vmatpush1.bf16.msra.mxu1 %v7460_v61  ;;  %4594 = vmatprep.subr.bf16.mxu0 %v7465_v62  ;;  %v7514_v61 = vld [vmem:[#allocation8 + $0x208] ss:$16 sps:$4 sm:$0xff]  }
 0x5af   :  { %4758 = vmatprep.subr.bf16.mxu1 %v7468_v1  ;;  %v7519_v1 = vld [vmem:[#allocation8 + $0x224] ss:$16 sps:$4 sm:$0xff]  }
 0x5b1   :  { %4595 = vmatpush1.bf16.msra.mxu0 %v7463_v2  ;;  %v7522_v2 = vld [vmem:[#allocation8 + $0x22c] ss:$16 sps:$4 sm:$0xff]  }
 0x5b2   :  { %4759 = vmatpush1.bf16.msra.mxu1 %v7466_v3  ;;  %4596 = vmatprep.subr.bf16.mxu0 %v7471_v4  ;;  %v7517_v4 = vld [vmem:[#allocation8 + $0x220] ss:$16 sps:$4 sm:$0xff]  }
 0x5b3   :  { %4760 = vmatprep.subr.bf16.mxu1 %v7474_v35  ;;  %v7520_v35 = vld [vmem:[#allocation8 + $0x228] ss:$16 sps:$4 sm:$0xff]  }
 0x5b5   :  { %4597 = vmatpush1.bf16.msra.mxu0 %v7469_v5  ;;  %v7525_v5 = vld [vmem:[#allocation8 + $0x244] ss:$16 sps:$4 sm:$0xff]  }
 0x5b6   :  { %4761 = vmatpush1.bf16.msra.mxu1 %v7472_v6  ;;  %4598 = vmatprep.subr.bf16.mxu0 %v7477_v7  ;;  %v7528_v6 = vld [vmem:[#allocation8 + $0x24c] ss:$16 sps:$4 sm:$0xff]   ;;  %v7523_v7 = vld [vmem:[#allocation8 + $0x240] ss:$16 sps:$4 sm:$0xff]  }
 0x5b7   :  { %4762 = vmatprep.subr.bf16.mxu1 %v7480_v8  ;;  %v7526_v8 = vld [vmem:[#allocation8 + $0x248] ss:$16 sps:$4 sm:$0xff]  }
 0x5b9   :  { %4599 = vmatpush1.bf16.msra.mxu0 %v7475_v41  ;;  %v7531_v41 = vld [vmem:[#allocation8 + $0x264] ss:$16 sps:$4 sm:$0xff]  }
 0x5ba   :  { %4763 = vmatpush1.bf16.msra.mxu1 %v7478_v9  ;;  %4600 = vmatprep.subr.bf16.mxu0 %v7483_v10  ;;  %v7534_v9 = vld [vmem:[#allocation8 + $0x26c] ss:$16 sps:$4 sm:$0xff]   ;;  %v7529_v10 = vld [vmem:[#allocation8 + $0x260] ss:$16 sps:$4 sm:$0xff]  }
 0x5bb   :  { %4764 = vmatprep.subr.bf16.mxu1 %v7486_v12  ;;  %v7532_v12 = vld [vmem:[#allocation8 + $0x268] ss:$16 sps:$4 sm:$0xff]  }
 0x5bd   :  { %4601 = vmatpush1.bf16.msra.mxu0 %v7481_v15  ;;  %v7537_v15 = vld [vmem:[#allocation8 + $0x284] ss:$16 sps:$4 sm:$0xff]  }
 0x5be   :  { %4765 = vmatpush1.bf16.msra.mxu1 %v7484_v17  ;;  %4602 = vmatprep.subr.bf16.mxu0 %v7489_v18  ;;  %v7540_v17 = vld [vmem:[#allocation8 + $0x28c] ss:$16 sps:$4 sm:$0xff]   ;;  %v7535_v18 = vld [vmem:[#allocation8 + $0x280] ss:$16 sps:$4 sm:$0xff]  }
 0x5bf   :  { %4766 = vmatprep.subr.bf16.mxu1 %v7492_v19  ;;  %v7538_v19 = vld [vmem:[#allocation8 + $0x288] ss:$16 sps:$4 sm:$0xff]  }
 0x5c1   :  { %4603 = vmatpush1.bf16.msra.mxu0 %v7487_v20  ;;  %v7543_v20 = vld [vmem:[#allocation8 + $0x2a4] ss:$16 sps:$4 sm:$0xff]  }
 0x5c2   :  { %4767 = vmatpush1.bf16.msra.mxu1 %v7490_v21  ;;  %4604 = vmatprep.subr.bf16.mxu0 %v7495_v22  ;;  %v7546_v21 = vld [vmem:[#allocation8 + $0x2ac] ss:$16 sps:$4 sm:$0xff]   ;;  %v7541_v22 = vld [vmem:[#allocation8 + $0x2a0] ss:$16 sps:$4 sm:$0xff]  }
 0x5c3   :  { %4768 = vmatprep.subr.bf16.mxu1 %v7498_v23  ;;  %v7544_v23 = vld [vmem:[#allocation8 + $0x2a8] ss:$16 sps:$4 sm:$0xff]  }
 0x5c5   :  { %4605 = vmatpush1.bf16.msra.mxu0 %v7493_v24  ;;  %v7549_v24 = vld [vmem:[#allocation8 + $0x2c4] ss:$16 sps:$4 sm:$0xff]  }
 0x5c6   :  { %4769 = vmatpush1.bf16.msra.mxu1 %v7496_v25  ;;  %4606 = vmatprep.subr.bf16.mxu0 %v7501_v26  ;;  %v7552_v25 = vld [vmem:[#allocation8 + $0x2cc] ss:$16 sps:$4 sm:$0xff]   ;;  %v7547_v26 = vld [vmem:[#allocation8 + $0x2c0] ss:$16 sps:$4 sm:$0xff]  }
 0x5c7   :  { %4770 = vmatprep.subr.bf16.mxu1 %v7504_v27  ;;  %v7550_v27 = vld [vmem:[#allocation8 + $0x2c8] ss:$16 sps:$4 sm:$0xff]  }
 0x5c9   :  { %4607 = vmatpush1.bf16.msra.mxu0 %v7499_v28  ;;  %v7555_v28 = vld [vmem:[#allocation8 + $0x2e4] ss:$16 sps:$4 sm:$0xff]  }
 0x5ca   :  { %4771 = vmatpush1.bf16.msra.mxu1 %v7502_v57  ;;  %4608 = vmatprep.subr.bf16.mxu0 %v7507_v29  ;;  %v7558_v57 = vld [vmem:[#allocation8 + $0x2ec] ss:$16 sps:$4 sm:$0xff]   ;;  %v7553_v29 = vld [vmem:[#allocation8 + $0x2e0] ss:$16 sps:$4 sm:$0xff]  }
 0x5cb   :  { %4772 = vmatprep.subr.bf16.mxu1 %v7510_v30  ;;  %v7556_v30 = vld [vmem:[#allocation8 + $0x2e8] ss:$16 sps:$4 sm:$0xff]  }
 0x5cd   :  { %4609 = vmatpush1.bf16.msra.mxu0 %v7505_v31  ;;  %v7561_v31 = vld [vmem:[#allocation8 + $0x304] ss:$16 sps:$4 sm:$0xff]  }
 0x5ce   :  { %4773 = vmatpush1.bf16.msra.mxu1 %v7508_v32  ;;  %4619 = vmatprep.subr.bf16.mxu0 %v7513_v60  ;;  %v7564_v32 = vld [vmem:[#allocation8 + $0x30c] ss:$16 sps:$4 sm:$0xff]   ;;  %v7559_v60 = vld [vmem:[#allocation8 + $0x300] ss:$16 sps:$4 sm:$0xff]  }
 0x5cf   :  { %4783 = vmatprep.subr.bf16.mxu1 %v7516_v33  ;;  %v7562_v33 = vld [vmem:[#allocation8 + $0x308] ss:$16 sps:$4 sm:$0xff]  }
 0x5e3   :  { %v2743_v39 = vpop.f32.mrb[12].mxu0  ;;  %v8257_v40 = vpop.f32.mrb[12].mxu1 }
 0x5e4   :  { %v6860_v42 = vadd.f32 %v2743_v39, %v1351_v37  ;;  %v2745_v11 = vpop.f32.mrb[13].mxu0  ;;  %v2827_v43 = vpop.f32.mrb[13].mxu1  ;;  %v7567_v37 = vld [vmem:[#allocation8 + $0x324] ss:$16 sps:$4 sm:$0xff]   ;;  %v7568_v39 = vld [vmem:[#allocation8 + $0x328] ss:$16 sps:$4 sm:$0xff]  }
 0x5e5   :  { %v6861_v44 = vadd.f32 %v2745_v11, %v1355_v38  ;;  %v6863_v45 = vadd.f32 %v2827_v43, %v1363_v63  ;;  %v2747_v46 = vpop.f32.mrb[14].mxu0  ;;  %v2829_v47 = vpop.f32.mrb[14].mxu1  ;;  %v7570_v38 = vld [vmem:[#allocation8 + $0x32c] ss:$16 sps:$4 sm:$0xff]   ;;  %v7565_v63 = vld [vmem:[#allocation8 + $0x320] ss:$16 sps:$4 sm:$0xff]  }
 0x5e6   :  { %v2996_v48 = vmul.f32 0.01, %v6860_v42  ;;  %v2748_v50 = vpop.f32.mrb[15].mxu0  ;;  %v2830_v51 = vpop.f32.mrb[15].mxu1  ;;  %v7576_v11 = vld [vmem:[#allocation8 + $0x34c] ss:$16 sps:$4 sm:$0xff]  }
 0x5e7   :  { %v2997_v52 = vmul.f32 0.01, %v6861_v44  ;;  %v2999_v53 = vmul.f32 0.01, %v6863_v45  ;;  %v7571_v43 = vld [vmem:[#allocation8 + $0x340] ss:$16 sps:$4 sm:$0xff]  }
 0x5e8   :  { %v3004_v54 = vmax.f32 %v6860_v42, %v2996_v48  ;;  %v7573_v42 = vld [vmem:[#allocation8 + $0x344] ss:$16 sps:$4 sm:$0xff]   ;;  %v7582_v46 = vld [vmem:[#allocation8 + $0x36c] ss:$16 sps:$4 sm:$0xff]   ;;  %v7577_v47 = vld [vmem:[#allocation8 + $0x360] ss:$16 sps:$4 sm:$0xff]  }
 0x5e9   :  { %v3005_v55 = vmax.f32 %v6861_v44, %v2997_v52  ;;  %v3007_v56 = vmax.f32 %v6863_v45, %v2999_v53  ;;  %v7574_v44 = vld [vmem:[#allocation8 + $0x348] ss:$16 sps:$4 sm:$0xff]   ;;  %v7579_v45 = vld [vmem:[#allocation8 + $0x364] ss:$16 sps:$4 sm:$0xff]   ;;  %v7588_v51 = vld [vmem:[#allocation8 + $0x38c] ss:$16 sps:$4 sm:$0xff]  }
 0x5ea   :  { %v3268_v62 = vpack.c.bf16 %v3004_v54, %v3004_v54  ;;  %v7580_v48 = vld [vmem:[#allocation8 + $0x368] ss:$16 sps:$4 sm:$0xff]   ;;  %v7585_v50 = vld [vmem:[#allocation8 + $0x384] ss:$16 sps:$4 sm:$0xff]   ;;  %v7583_v52 = vld [vmem:[#allocation8 + $0x380] ss:$16 sps:$4 sm:$0xff]   ;;  %v1359_v54 = vrot.slane %v8249_v34, %v8232_v49 }
 0x5eb   :  { %v3269_v58 = vpack.c.bf16 %v3005_v55, %v3005_v55  ;;  %v3271_v3 = vpack.c.bf16 %v3007_v56, %v3007_v56  ;;  %v7586_v53 = vld [vmem:[#allocation8 + $0x388] ss:$16 sps:$4 sm:$0xff]   ;;  %v7591_v55 = vld [vmem:[#allocation8 + $0x3a4] ss:$16 sps:$4 sm:$0xff]   ;;  %v7594_v56 = vld [vmem:[#allocation8 + $0x3ac] ss:$16 sps:$4 sm:$0xff]  }
 0x5ed   :  { %4610 = vmatprep.mubr.bf16.mxu0 %v3269_v58  ;;  %4774 = vmatprep.mubr.bf16.mxu1 %v3269_v58  ;;  %v7589_v58 = vld [vmem:[#allocation8 + $0x3a0] ss:$16 sps:$4 sm:$0xff]  }
 0x5ee   :  { %4611 = vmatmul.mubr.bf16.vlgmr.msra.gmra.mrb[20].mxu0 %v3268_v62  ;;  %4775 = vmatmul.mubr.bf16.vlgmr.msra.gmra.mrb[20].mxu1 %v3268_v62  ;;  %v7597_v62 = vld [vmem:[#allocation8 + $0x3c4] ss:$16 sps:$4 sm:$0xff]  }
 0x5ef   :  { %4620 = vmatpush1.bf16.msra.mxu0 %v7511_v59  ;;  %4784 = vmatpush1.bf16.msra.mxu1 %v7514_v61  ;;  %v7592_v59 = vld [vmem:[#allocation8 + $0x3a8] ss:$16 sps:$4 sm:$0xff]   ;;  %v6862_v61 = vadd.f32 %v8257_v40, %v1359_v54  ;;  %v7609_v40 = vld [vmem:[#allocation8 + $0x404] ss:$16 sps:$4 sm:$0xff]  }
 0x5f0   :  { %4651 = vmatprep.mubr.bf16.mxu0 %v3271_v3  ;;  %4815 = vmatprep.mubr.bf16.mxu1 %v3271_v3  ;;  %v7598_v3 = vld [vmem:[#allocation8 + $0x3c8] ss:$16 sps:$4 sm:$0xff]   ;;  %v7669_v54 = vld [vmem:[#allocation8 + $0x544] ss:$16 sps:$4 sm:$0xff]  }
 0x5f1   :  { %4621 = vmatprep.subr.bf16.mxu0 %v7519_v1  ;;  %4785 = vmatprep.subr.bf16.mxu1 %v7522_v2  ;;  %v7600_v1 = vld [vmem:[#allocation8 + $0x3cc] ss:$16 sps:$4 sm:$0xff]   ;;  %v7595_v2 = vld [vmem:[#allocation8 + $0x3c0] ss:$16 sps:$4 sm:$0xff]  }
 0x5f3   :  { %4622 = vmatpush1.bf16.msra.mxu0 %v7517_v4  ;;  %4786 = vmatpush1.bf16.msra.mxu1 %v7520_v35  ;;  %v2998_v4 = vmul.f32 0.01, %v6862_v61  ;;  %v7603_v35 = vld [vmem:[#allocation8 + $0x3e4] ss:$16 sps:$4 sm:$0xff]  }
 0x5f4   :  { %4623 = vmatprep.subr.bf16.mxu0 %v7525_v5  ;;  %4787 = vmatprep.subr.bf16.mxu1 %v7528_v6  ;;  %v7606_v5 = vld [vmem:[#allocation8 + $0x3ec] ss:$16 sps:$4 sm:$0xff]   ;;  %v7601_v6 = vld [vmem:[#allocation8 + $0x3e0] ss:$16 sps:$4 sm:$0xff]  }
 0x5f7   :  { %4624 = vmatpush1.bf16.msra.mxu0 %v7523_v7  ;;  %4788 = vmatpush1.bf16.msra.mxu1 %v7526_v8  ;;  %v7604_v7 = vld [vmem:[#allocation8 + $0x3e8] ss:$16 sps:$4 sm:$0xff]   ;;  %v3006_v8 = vmax.f32 %v6862_v61, %v2998_v4  ;;  %v7678_v61 = vld [vmem:[#allocation8 + $0x56c] ss:$16 sps:$4 sm:$0xff]   ;;  %v7679_v4 = vld [vmem:[#allocation8 + $0x580] ss:$16 sps:$4 sm:$0xff]  }
 0x5f8   :  { %4625 = vmatprep.subr.bf16.mxu0 %v7531_v41  ;;  %4789 = vmatprep.subr.bf16.mxu1 %v7534_v9  ;;  %v7612_v41 = vld [vmem:[#allocation8 + $0x40c] ss:$16 sps:$4 sm:$0xff]   ;;  %v7607_v9 = vld [vmem:[#allocation8 + $0x400] ss:$16 sps:$4 sm:$0xff]  }
 0x5fb   :  { %4626 = vmatpush1.bf16.msra.mxu0 %v7529_v10  ;;  %4790 = vmatpush1.bf16.msra.mxu1 %v7532_v12  ;;  %v7610_v10 = vld [vmem:[#allocation8 + $0x408] ss:$16 sps:$4 sm:$0xff]   ;;  %v3270_v12 = vpack.c.bf16 %v3006_v8, %v3006_v8  ;;  %v1370_v8 = vsub.s32 5, %v8196_v13 }
 0x5fc   :  { %4627 = vmatprep.subr.bf16.mxu0 %v7537_v15  ;;  %4791 = vmatprep.subr.bf16.mxu1 %v7540_v17  ;;  %v7615_v15 = vld [vmem:[#allocation8 + $0x424] ss:$16 sps:$4 sm:$0xff]   ;;  %v7618_v17 = vld [vmem:[#allocation8 + $0x42c] ss:$16 sps:$4 sm:$0xff]  }
 0x5ff   :  { %4628 = vmatpush1.bf16.msra.mxu0 %v7535_v18  ;;  %4792 = vmatpush1.bf16.msra.mxu1 %v7538_v19  ;;  %v7613_v18 = vld [vmem:[#allocation8 + $0x420] ss:$16 sps:$4 sm:$0xff]   ;;  %v7616_v19 = vld [vmem:[#allocation8 + $0x428] ss:$16 sps:$4 sm:$0xff]  }
 0x600   :  { %4629 = vmatprep.subr.bf16.mxu0 %v7543_v20  ;;  %4793 = vmatprep.subr.bf16.mxu1 %v7546_v21  ;;  %v7621_v20 = vld [vmem:[#allocation8 + $0x444] ss:$16 sps:$4 sm:$0xff]   ;;  %v7624_v21 = vld [vmem:[#allocation8 + $0x44c] ss:$16 sps:$4 sm:$0xff]  }
 0x603   :  { %4630 = vmatpush1.bf16.msra.mxu0 %v7541_v22  ;;  %4794 = vmatpush1.bf16.msra.mxu1 %v7544_v23  ;;  %v7619_v22 = vld [vmem:[#allocation8 + $0x440] ss:$16 sps:$4 sm:$0xff]   ;;  %v7622_v23 = vld [vmem:[#allocation8 + $0x448] ss:$16 sps:$4 sm:$0xff]  }
 0x604   :  { %4631 = vmatprep.subr.bf16.mxu0 %v7549_v24  ;;  %4795 = vmatprep.subr.bf16.mxu1 %v7552_v25  ;;  %v7627_v24 = vld [vmem:[#allocation8 + $0x464] ss:$16 sps:$4 sm:$0xff]   ;;  %v7630_v25 = vld [vmem:[#allocation8 + $0x46c] ss:$16 sps:$4 sm:$0xff]  }
 0x607   :  { %4632 = vmatpush1.bf16.msra.mxu0 %v7547_v26  ;;  %4796 = vmatpush1.bf16.msra.mxu1 %v7550_v27  ;;  %v7625_v26 = vld [vmem:[#allocation8 + $0x460] ss:$16 sps:$4 sm:$0xff]   ;;  %v7628_v27 = vld [vmem:[#allocation8 + $0x468] ss:$16 sps:$4 sm:$0xff]  }
 0x608   :  { %4633 = vmatprep.subr.bf16.mxu0 %v7555_v28  ;;  %4797 = vmatprep.subr.bf16.mxu1 %v7558_v57  ;;  %v7633_v28 = vld [vmem:[#allocation8 + $0x484] ss:$16 sps:$4 sm:$0xff]   ;;  %v7636_v57 = vld [vmem:[#allocation8 + $0x48c] ss:$16 sps:$4 sm:$0xff]  }
 0x60b   :  { %4634 = vmatpush1.bf16.msra.mxu0 %v7553_v29  ;;  %4798 = vmatpush1.bf16.msra.mxu1 %v7556_v30  ;;  %v7631_v29 = vld [vmem:[#allocation8 + $0x480] ss:$16 sps:$4 sm:$0xff]   ;;  %v7634_v30 = vld [vmem:[#allocation8 + $0x488] ss:$16 sps:$4 sm:$0xff]  }
 0x60c   :  { %4635 = vmatprep.subr.bf16.mxu0 %v7561_v31  ;;  %4799 = vmatprep.subr.bf16.mxu1 %v7564_v32  ;;  %v7639_v31 = vld [vmem:[#allocation8 + $0x4a4] ss:$16 sps:$4 sm:$0xff]   ;;  %v7642_v32 = vld [vmem:[#allocation8 + $0x4ac] ss:$16 sps:$4 sm:$0xff]  }
 0x60f   :  { %4636 = vmatpush1.bf16.msra.mxu0 %v7559_v60  ;;  %4800 = vmatpush1.bf16.msra.mxu1 %v7562_v33  ;;  %v7637_v60 = vld [vmem:[#allocation8 + $0x4a0] ss:$16 sps:$4 sm:$0xff]   ;;  %v7640_v33 = vld [vmem:[#allocation8 + $0x4a8] ss:$16 sps:$4 sm:$0xff]  }
 0x610   :  { %4637 = vmatprep.subr.bf16.mxu0 %v7567_v37  ;;  %4801 = vmatprep.subr.bf16.mxu1 %v7570_v38  ;;  %v7645_v37 = vld [vmem:[#allocation8 + $0x4c4] ss:$16 sps:$4 sm:$0xff]   ;;  %v7648_v38 = vld [vmem:[#allocation8 + $0x4cc] ss:$16 sps:$4 sm:$0xff]  }
 0x613   :  { %4638 = vmatpush1.bf16.msra.mxu0 %v7565_v63  ;;  %4802 = vmatpush1.bf16.msra.mxu1 %v7568_v39  ;;  %v7643_v63 = vld [vmem:[#allocation8 + $0x4c0] ss:$16 sps:$4 sm:$0xff]   ;;  %v7646_v39 = vld [vmem:[#allocation8 + $0x4c8] ss:$16 sps:$4 sm:$0xff]  }
 0x614   :  { %4639 = vmatprep.subr.bf16.mxu0 %v7573_v42  ;;  %4803 = vmatprep.subr.bf16.mxu1 %v7576_v11  ;;  %v7651_v42 = vld [vmem:[#allocation8 + $0x4e4] ss:$16 sps:$4 sm:$0xff]   ;;  %v7654_v11 = vld [vmem:[#allocation8 + $0x4ec] ss:$16 sps:$4 sm:$0xff]  }
 0x617   :  { %4640 = vmatpush1.bf16.msra.mxu0 %v7571_v43  ;;  %4804 = vmatpush1.bf16.msra.mxu1 %v7574_v44  ;;  %v7649_v43 = vld [vmem:[#allocation8 + $0x4e0] ss:$16 sps:$4 sm:$0xff]   ;;  %v7652_v44 = vld [vmem:[#allocation8 + $0x4e8] ss:$16 sps:$4 sm:$0xff]  }
 0x618   :  { %4641 = vmatprep.subr.bf16.mxu0 %v7579_v45  ;;  %4805 = vmatprep.subr.bf16.mxu1 %v7582_v46  ;;  %v7657_v45 = vld [vmem:[#allocation8 + $0x504] ss:$16 sps:$4 sm:$0xff]   ;;  %v7660_v46 = vld [vmem:[#allocation8 + $0x50c] ss:$16 sps:$4 sm:$0xff]  }
 0x61b   :  { %4642 = vmatpush1.bf16.msra.mxu0 %v7577_v47  ;;  %4806 = vmatpush1.bf16.msra.mxu1 %v7580_v48  ;;  %v7655_v47 = vld [vmem:[#allocation8 + $0x500] ss:$16 sps:$4 sm:$0xff]   ;;  %v7658_v48 = vld [vmem:[#allocation8 + $0x508] ss:$16 sps:$4 sm:$0xff]  }
 0x61c   :  { %4643 = vmatprep.subr.bf16.mxu0 %v7585_v50  ;;  %4807 = vmatprep.subr.bf16.mxu1 %v7588_v51  ;;  %v7663_v50 = vld [vmem:[#allocation8 + $0x524] ss:$16 sps:$4 sm:$0xff]   ;;  %v7666_v51 = vld [vmem:[#allocation8 + $0x52c] ss:$16 sps:$4 sm:$0xff]  }
 0x61f   :  { %4644 = vmatpush1.bf16.msra.mxu0 %v7583_v52  ;;  %4808 = vmatpush1.bf16.msra.mxu1 %v7586_v53  ;;  %v7661_v52 = vld [vmem:[#allocation8 + $0x520] ss:$16 sps:$4 sm:$0xff]   ;;  %v7664_v53 = vld [vmem:[#allocation8 + $0x528] ss:$16 sps:$4 sm:$0xff]  }
 0x620   :  { %4645 = vmatprep.subr.bf16.mxu0 %v7591_v55  ;;  %4809 = vmatprep.subr.bf16.mxu1 %v7594_v56  ;;  %v7672_v55 = vld [vmem:[#allocation8 + $0x54c] ss:$16 sps:$4 sm:$0xff]   ;;  %v7667_v56 = vld [vmem:[#allocation8 + $0x540] ss:$16 sps:$4 sm:$0xff]  }
 0x623   :  { %4646 = vmatpush1.bf16.msra.mxu0 %v7589_v58  ;;  %4810 = vmatpush1.bf16.msra.mxu1 %v7592_v59  ;;  %v7670_v58 = vld [vmem:[#allocation8 + $0x548] ss:$16 sps:$4 sm:$0xff]   ;;  %v7675_v59 = vld [vmem:[#allocation8 + $0x564] ss:$16 sps:$4 sm:$0xff]  }
 0x624   :  { %4647 = vmatprep.subr.bf16.mxu0 %v7597_v62  ;;  %4811 = vmatprep.subr.bf16.mxu1 %v7600_v1  ;;  %v7673_v62 = vld [vmem:[#allocation8 + $0x560] ss:$16 sps:$4 sm:$0xff]   ;;  %v7676_v1 = vld [vmem:[#allocation8 + $0x568] ss:$16 sps:$4 sm:$0xff]  }
 0x627   :  { %4648 = vmatpush1.bf16.msra.mxu0 %v7595_v2  ;;  %4812 = vmatpush1.bf16.msra.mxu1 %v7598_v3  ;;  %v7681_v2 = vld [vmem:[#allocation8 + $0x584] ss:$16 sps:$4 sm:$0xff]   ;;  %v7684_v3 = vld [vmem:[#allocation8 + $0x58c] ss:$16 sps:$4 sm:$0xff]  }
 0x628   :  { %4649 = vmatprep.subr.bf16.mxu0 %v7603_v35  ;;  %4813 = vmatprep.subr.bf16.mxu1 %v7606_v5  ;;  %v7682_v35 = vld [vmem:[#allocation8 + $0x588] ss:$16 sps:$4 sm:$0xff]   ;;  %v7687_v5 = vld [vmem:[#allocation8 + $0x5a4] ss:$16 sps:$4 sm:$0xff]  }
 0x62b   :  { %4650 = vmatpush1.bf16.msra.mxu0 %v7601_v6  ;;  %4814 = vmatpush1.bf16.msra.mxu1 %v7604_v7  ;;  %v7690_v6 = vld [vmem:[#allocation8 + $0x5ac] ss:$16 sps:$4 sm:$0xff]   ;;  %v1366_v7 = vsub.s32 4, %v8196_v13 }
 0x62c   :  { %4660 = vmatprep.subr.bf16.mxu0 %v7609_v40  ;;  %4824 = vmatprep.subr.bf16.mxu1 %v7612_v41  ;;  %v1378_v40 = vsub.s32 7, %v8196_v13  ;;  %v7685_v41 = vld [vmem:[#allocation8 + $0x5a0] ss:$16 sps:$4 sm:$0xff]  }
 0x62e   :  { %4652 = vmatmul.mubr.bf16.vlgmr.msra.gmra.mrb[20].mxu0 %v3270_v12  ;;  %4816 = vmatmul.mubr.bf16.vlgmr.msra.gmra.mrb[20].mxu1 %v3270_v12  ;;  %v7693_v12 = vld [vmem:[#allocation8 + $0x5c4] ss:$16 sps:$4 sm:$0xff]  }
 0x62f   :  { %4661 = vmatpush1.bf16.msra.mxu0 %v7607_v9  ;;  %4825 = vmatpush1.bf16.msra.mxu1 %v7610_v10  ;;  %v7688_v9 = vld [vmem:[#allocation8 + $0x5a8] ss:$16 sps:$4 sm:$0xff]   ;;  %v1367_v10 = vrot.slane %v8249_v34, %v1366_v7  ;;  %v7738_v7 = vld [vmem:[#allocation8 + $0x6ac] ss:$16 sps:$4 sm:$0xff]  }
 0x630   :  { %4662 = vmatprep.subr.bf16.mxu0 %v7615_v15  ;;  %4826 = vmatprep.subr.bf16.mxu1 %v7618_v17  ;;  %v7696_v15 = vld [vmem:[#allocation8 + $0x5cc] ss:$16 sps:$4 sm:$0xff]   ;;  %v1371_v17 = vrot.slane %v8249_v34, %v1370_v8  ;;  %v7733_v8 = vld [vmem:[#allocation8 + $0x6a0] ss:$16 sps:$4 sm:$0xff]  }
 0x633   :  { %4663 = vmatpush1.bf16.msra.mxu0 %v7613_v18  ;;  %4827 = vmatpush1.bf16.msra.mxu1 %v7616_v19  ;;  %v1379_v18 = vrot.slane %v8249_v34, %v1378_v40  ;;  %v7736_v40 = vld [vmem:[#allocation8 + $0x6a8] ss:$16 sps:$4 sm:$0xff]  }
 0x634   :  { %4664 = vmatprep.subr.bf16.mxu0 %v7621_v20  ;;  %4828 = vmatprep.subr.bf16.mxu1 %v7624_v21  ;;  %v7691_v20 = vld [vmem:[#allocation8 + $0x5c0] ss:$16 sps:$4 sm:$0xff]   ;;  %v7694_v21 = vld [vmem:[#allocation8 + $0x5c8] ss:$16 sps:$4 sm:$0xff]  }
 0x637   :  { %4665 = vmatpush1.bf16.msra.mxu0 %v7619_v22  ;;  %4829 = vmatpush1.bf16.msra.mxu1 %v7622_v23 }
 0x638   :  { %4666 = vmatprep.subr.bf16.mxu0 %v7627_v24  ;;  %4830 = vmatprep.subr.bf16.mxu1 %v7630_v25  ;;  %v7699_v25 = vld [vmem:[#allocation8 + $0x5e4] ss:$16 sps:$4 sm:$0xff]  }
 0x63b   :  { %4667 = vmatpush1.bf16.msra.mxu0 %v7625_v26  ;;  %4831 = vmatpush1.bf16.msra.mxu1 %v7628_v27  ;;  %v7702_v26 = vld [vmem:[#allocation8 + $0x5ec] ss:$16 sps:$4 sm:$0xff]  }
 0x63c   :  { %4668 = vmatprep.subr.bf16.mxu0 %v7633_v28  ;;  %4832 = vmatprep.subr.bf16.mxu1 %v7636_v57 }
 0x63f   :  { %4669 = vmatpush1.bf16.msra.mxu0 %v7631_v29  ;;  %4833 = vmatpush1.bf16.msra.mxu1 %v7634_v30 }
 0x640   :  { %4670 = vmatprep.subr.bf16.mxu0 %v7639_v31  ;;  %4834 = vmatprep.subr.bf16.mxu1 %v7642_v32 }
 0x643   :  { %4671 = vmatpush1.bf16.msra.mxu0 %v7637_v60  ;;  %4835 = vmatpush1.bf16.msra.mxu1 %v7640_v33  ;;  %v7697_v60 = vld [vmem:[#allocation8 + $0x5e0] ss:$16 sps:$4 sm:$0xff]  }
 0x644   :  { %4672 = vmatprep.subr.bf16.mxu0 %v7645_v37  ;;  %4836 = vmatprep.subr.bf16.mxu1 %v7648_v38  ;;  %v7700_v38 = vld [vmem:[#allocation8 + $0x5e8] ss:$16 sps:$4 sm:$0xff]  }
 0x647   :  { %4673 = vmatpush1.bf16.msra.mxu0 %v7643_v63  ;;  %4837 = vmatpush1.bf16.msra.mxu1 %v7646_v39 }
 0x648   :  { %4674 = vmatprep.subr.bf16.mxu0 %v7651_v42  ;;  %4838 = vmatprep.subr.bf16.mxu1 %v7654_v11  ;;  %v7705_v42 = vld [vmem:[#allocation8 + $0x604] ss:$16 sps:$4 sm:$0xff]   ;;  %v7708_v11 = vld [vmem:[#allocation8 + $0x60c] ss:$16 sps:$4 sm:$0xff]  }
 0x64b   :  { %4675 = vmatpush1.bf16.msra.mxu0 %v7649_v43  ;;  %4839 = vmatpush1.bf16.msra.mxu1 %v7652_v44 }
 0x64c   :  { %4676 = vmatprep.subr.bf16.mxu0 %v7657_v45  ;;  %4840 = vmatprep.subr.bf16.mxu1 %v7660_v46  ;;  %v7703_v46 = vld [vmem:[#allocation8 + $0x600] ss:$16 sps:$4 sm:$0xff]  }
 0x64f   :  { %4677 = vmatpush1.bf16.msra.mxu0 %v7655_v47  ;;  %4841 = vmatpush1.bf16.msra.mxu1 %v7658_v48  ;;  %v7706_v47 = vld [vmem:[#allocation8 + $0x608] ss:$16 sps:$4 sm:$0xff]  }
 0x650   :  { %4678 = vmatprep.subr.bf16.mxu0 %v7663_v50  ;;  %4842 = vmatprep.subr.bf16.mxu1 %v7666_v51  ;;  %v7711_v50 = vld [vmem:[#allocation8 + $0x624] ss:$16 sps:$4 sm:$0xff]   ;;  %v7714_v51 = vld [vmem:[#allocation8 + $0x62c] ss:$16 sps:$4 sm:$0xff]  }
 0x653   :  { %4679 = vmatpush1.bf16.msra.mxu0 %v7661_v52  ;;  %4843 = vmatpush1.bf16.msra.mxu1 %v7664_v53  ;;  %v7709_v53 = vld [vmem:[#allocation8 + $0x620] ss:$16 sps:$4 sm:$0xff]  }
 0x654   :  { %4680 = vmatprep.subr.bf16.mxu0 %v7669_v54  ;;  %4844 = vmatprep.subr.bf16.mxu1 %v7672_v55  ;;  %v7712_v54 = vld [vmem:[#allocation8 + $0x628] ss:$16 sps:$4 sm:$0xff]   ;;  %v7717_v55 = vld [vmem:[#allocation8 + $0x644] ss:$16 sps:$4 sm:$0xff]  }
 0x657   :  { %4681 = vmatpush1.bf16.msra.mxu0 %v7667_v56  ;;  %4845 = vmatpush1.bf16.msra.mxu1 %v7670_v58  ;;  %v7720_v56 = vld [vmem:[#allocation8 + $0x64c] ss:$16 sps:$4 sm:$0xff]   ;;  %v7715_v58 = vld [vmem:[#allocation8 + $0x640] ss:$16 sps:$4 sm:$0xff]  }
 0x658   :  { %4682 = vmatprep.subr.bf16.mxu0 %v7675_v59  ;;  %4846 = vmatprep.subr.bf16.mxu1 %v7678_v61  ;;  %v7718_v59 = vld [vmem:[#allocation8 + $0x648] ss:$16 sps:$4 sm:$0xff]   ;;  %v7723_v61 = vld [vmem:[#allocation8 + $0x664] ss:$16 sps:$4 sm:$0xff]  }
 0x65b   :  { %4683 = vmatpush1.bf16.msra.mxu0 %v7673_v62  ;;  %4847 = vmatpush1.bf16.msra.mxu1 %v7676_v1  ;;  %v7726_v62 = vld [vmem:[#allocation8 + $0x66c] ss:$16 sps:$4 sm:$0xff]   ;;  %v7721_v1 = vld [vmem:[#allocation8 + $0x660] ss:$16 sps:$4 sm:$0xff]  }
 0x65c   :  { %4684 = vmatprep.subr.bf16.mxu0 %v7681_v2  ;;  %4848 = vmatprep.subr.bf16.mxu1 %v7684_v3  ;;  %v7724_v2 = vld [vmem:[#allocation8 + $0x668] ss:$16 sps:$4 sm:$0xff]   ;;  %v7729_v3 = vld [vmem:[#allocation8 + $0x684] ss:$16 sps:$4 sm:$0xff]  }
 0x65f   :  { %4685 = vmatpush1.bf16.msra.mxu0 %v7679_v4  ;;  %4849 = vmatpush1.bf16.msra.mxu1 %v7682_v35  ;;  %v7732_v4 = vld [vmem:[#allocation8 + $0x68c] ss:$16 sps:$4 sm:$0xff]   ;;  %v7727_v35 = vld [vmem:[#allocation8 + $0x680] ss:$16 sps:$4 sm:$0xff]  }
 0x660   :  { %4686 = vmatprep.subr.bf16.mxu0 %v7687_v5  ;;  %4850 = vmatprep.subr.bf16.mxu1 %v7690_v6  ;;  %v7730_v5 = vld [vmem:[#allocation8 + $0x688] ss:$16 sps:$4 sm:$0xff]   ;;  %v7735_v6 = vld [vmem:[#allocation8 + $0x6a4] ss:$16 sps:$4 sm:$0xff]  }
 0x663   :  { %4687 = vmatpush1.bf16.msra.mxu0 %v7685_v41  ;;  %4851 = vmatpush1.bf16.msra.mxu1 %v7688_v9  ;;  %v2907_v19 = vpop.f32.mrb[16].mxu0  ;;  %v7741_v41 = vld [vmem:[#allocation8 + $0x6c4] ss:$16 sps:$4 sm:$0xff]   ;;  %v7744_v9 = vld [vmem:[#allocation8 + $0x6cc] ss:$16 sps:$4 sm:$0xff]  }
 0x664   :  { %v6864_v22 = vadd.f32 %v2907_v19, %v1367_v10  ;;  %v8268_v23 = vpop.f32.mrb[16].mxu1  ;;  %v2909_v24 = vpop.f32.mrb[17].mxu0  ;;  %4688 = vmatprep.subr.bf16.mxu0 %v7693_v12  ;;  %4852 = vmatprep.subr.bf16.mxu1 %v7696_v15  ;;  %v7739_v10 = vld [vmem:[#allocation8 + $0x6c0] ss:$16 sps:$4 sm:$0xff]   ;;  %v7742_v12 = vld [vmem:[#allocation8 + $0x6c8] ss:$16 sps:$4 sm:$0xff]  }
 0x665   :  { %v6865_v27 = vadd.f32 %v2909_v24, %v1371_v17  ;;  %v2991_v28 = vpop.f32.mrb[17].mxu1  ;;  %v2911_v57 = vpop.f32.mrb[18].mxu0  ;;  %v7747_v15 = vld [vmem:[#allocation8 + $0x6e4] ss:$16 sps:$4 sm:$0xff]   ;;  %v7750_v17 = vld [vmem:[#allocation8 + $0x6ec] ss:$16 sps:$4 sm:$0xff]  }
 0x666   :  { %v3000_v29 = vmul.f32 0.01, %v6864_v22  ;;  %v6867_v30 = vadd.f32 %v2991_v28, %v1379_v18  ;;  %v2993_v31 = vpop.f32.mrb[18].mxu1  ;;  %v2912_v32 = vpop.f32.mrb[19].mxu0  ;;  %v7745_v18 = vld [vmem:[#allocation8 + $0x6e0] ss:$16 sps:$4 sm:$0xff]  }
 0x667   :  { %v3001_v33 = vmul.f32 0.01, %v6865_v27  ;;  %v2994_v37 = vpop.f32.mrb[19].mxu1  ;;  %4689 = vmatpush1.bf16.msra.mxu0 %v7691_v20  ;;  %4853 = vmatpush1.bf16.msra.mxu1 %v7694_v21  ;;  %v7748_v19 = vld [vmem:[#allocation8 + $0x6e8] ss:$16 sps:$4 sm:$0xff]  }
 0x668   :  { %v3008_v63 = vmax.f32 %v6864_v22, %v3000_v29  ;;  %v3003_v39 = vmul.f32 0.01, %v6867_v30  ;;  %4690 = vmatprep.subr.bf16.mxu0 %v7699_v25  ;;  %4854 = vmatprep.subr.bf16.mxu1 %v7702_v26  ;;  %v7753_v20 = vld [vmem:[#allocation8 + $0x704] ss:$16 sps:$4 sm:$0xff]   ;;  %v7756_v21 = vld [vmem:[#allocation8 + $0x70c] ss:$16 sps:$4 sm:$0xff]  }
 0x669   :  { %v3009_v43 = vmax.f32 %v6865_v27, %v3001_v33  ;;  %v7751_v22 = vld [vmem:[#allocation8 + $0x700] ss:$16 sps:$4 sm:$0xff]   ;;  %v7754_v24 = vld [vmem:[#allocation8 + $0x708] ss:$16 sps:$4 sm:$0xff]   ;;  %v7759_v25 = vld [vmem:[#allocation8 + $0x724] ss:$16 sps:$4 sm:$0xff]  }
 0x66a   :  { %v3011_v44 = vmax.f32 %v6867_v30, %v3003_v39  ;;  %v3272_v48 = vpack.c.bf16 %v3008_v63, %v3008_v63  ;;  %v7762_v26 = vld [vmem:[#allocation8 + $0x72c] ss:$16 sps:$4 sm:$0xff]   ;;  %v7757_v27 = vld [vmem:[#allocation8 + $0x720] ss:$16 sps:$4 sm:$0xff]   ;;  %v7760_v28 = vld [vmem:[#allocation8 + $0x728] ss:$16 sps:$4 sm:$0xff]  }
 0x66b   :  { %v3273_v45 = vpack.c.bf16 %v3009_v43, %v3009_v43  ;;  %4691 = vmatpush1.bf16.msra.mxu0 %v7697_v60  ;;  %4855 = vmatpush1.bf16.msra.mxu1 %v7700_v38  ;;  %v7765_v57 = vld [vmem:[#allocation8 + $0x744] ss:$16 sps:$4 sm:$0xff]   ;;  %v7768_v29 = vld [vmem:[#allocation8 + $0x74c] ss:$16 sps:$4 sm:$0xff]   ;;  %v7763_v30 = vld [vmem:[#allocation8 + $0x740] ss:$16 sps:$4 sm:$0xff]  }
 0x66c   :  { %4701 = vmatprep.subr.bf16.mxu0 %v7705_v42  ;;  %4865 = vmatprep.subr.bf16.mxu1 %v7708_v11  ;;  %v3275_v52 = vpack.c.bf16 %v3011_v44, %v3011_v44  ;;  %v7766_v31 = vld [vmem:[#allocation8 + $0x748] ss:$16 sps:$4 sm:$0xff]   ;;  %v7771_v32 = vld [vmem:[#allocation8 + $0x764] ss:$16 sps:$4 sm:$0xff]   ;;  %v7774_v60 = vld [vmem:[#allocation8 + $0x76c] ss:$16 sps:$4 sm:$0xff]  }
 0x66d   :  { %4692 = vmatprep.mubr.bf16.mxu0 %v3273_v45  ;;  %4856 = vmatprep.mubr.bf16.mxu1 %v3273_v45  ;;  %v7769_v33 = vld [vmem:[#allocation8 + $0x760] ss:$16 sps:$4 sm:$0xff]   ;;  %v7772_v37 = vld [vmem:[#allocation8 + $0x768] ss:$16 sps:$4 sm:$0xff]   ;;  %v1374_v38 = vsub.s32 6, %v8196_v13 }
 0x66e   :  { %4693 = vmatmul.mubr.bf16.vlgmr.msra.gmra.mrb[20].mxu0 %v3272_v48  ;;  %4857 = vmatmul.mubr.bf16.vlgmr.msra.gmra.mrb[20].mxu1 %v3272_v48  ;;  %v7777_v63 = vld [vmem:[#allocation8 + $0x784] ss:$16 sps:$4 sm:$0xff]   ;;  %v7780_v39 = vld [vmem:[#allocation8 + $0x78c] ss:$16 sps:$4 sm:$0xff]   ;;  %v7775_v42 = vld [vmem:[#allocation8 + $0x780] ss:$16 sps:$4 sm:$0xff]  }
 0x66f   :  { %4702 = vmatpush1.bf16.msra.mxu0 %v7703_v46  ;;  %4866 = vmatpush1.bf16.msra.mxu1 %v7706_v47  ;;  %v7778_v11 = vld [vmem:[#allocation8 + $0x788] ss:$16 sps:$4 sm:$0xff]   ;;  %v1375_v43 = vrot.slane %v8249_v34, %v1374_v38  ;;  %v7783_v44 = vld [vmem:[#allocation8 + $0x7a4] ss:$16 sps:$4 sm:$0xff]   ;;  %v7786_v45 = vld [vmem:[#allocation8 + $0x7ac] ss:$16 sps:$4 sm:$0xff]  }
 0x670   :  { %4733 = vmatprep.mubr.bf16.mxu0 %v3275_v52  ;;  %4897 = vmatprep.mubr.bf16.mxu1 %v3275_v52  ;;  %v7781_v46 = vld [vmem:[#allocation8 + $0x7a0] ss:$16 sps:$4 sm:$0xff]   ;;  %v7784_v47 = vld [vmem:[#allocation8 + $0x7a8] ss:$16 sps:$4 sm:$0xff]   ;;  %v7789_v48 = vld [vmem:[#allocation8 + $0x7c4] ss:$16 sps:$4 sm:$0xff]  }
 0x671   :  { %4703 = vmatprep.subr.bf16.mxu0 %v7711_v50  ;;  %4867 = vmatprep.subr.bf16.mxu1 %v7714_v51  ;;  %v6866_v13 = vadd.f32 %v8268_v23, %v1375_v43  ;;  %v7792_v50 = vld [vmem:[#allocation8 + $0x7cc] ss:$16 sps:$4 sm:$0xff]   ;;  %v7787_v51 = vld [vmem:[#allocation8 + $0x7c0] ss:$16 sps:$4 sm:$0xff]   ;;  %v7790_v52 = vld [vmem:[#allocation8 + $0x7c8] ss:$16 sps:$4 sm:$0xff]  }
 0x672   :  { %v7795_v34 = vld [vmem:[#allocation8 + $0x7e4] ss:$16 sps:$4 sm:$0xff]  }
 0x673   :  { %4704 = vmatpush1.bf16.msra.mxu0 %v7709_v53  ;;  %4868 = vmatpush1.bf16.msra.mxu1 %v7712_v54  ;;  %v3002_v53 = vmul.f32 0.01, %v6866_v13  ;;  %v7798_v54 = vld [vmem:[#allocation8 + $0x7ec] ss:$16 sps:$4 sm:$0xff]   ;;  %v7899_v38 = vld [vmem:[#allocation5 + $0x1a0] ss:$20 sps:$4 sm:$0xff]  }
 0x674   :  { %4705 = vmatprep.subr.bf16.mxu0 %v7717_v55  ;;  %4869 = vmatprep.subr.bf16.mxu1 %v7720_v56  ;;  %v7793_v55 = vld [vmem:[#allocation8 + $0x7e0] ss:$16 sps:$4 sm:$0xff]   ;;  %v7796_v56 = vld [vmem:[#allocation8 + $0x7e8] ss:$16 sps:$4 sm:$0xff]   ;;  %v7801_v23 = vld [vmem:[#allocation7 + $0x24] ss:$40 sps:$4 sm:$0xff]  }
 0x675   :  { %v7904_v43 = vld [vmem:[#allocation5 + $0xb0] ss:$20 sps:$4 sm:$0xff]  }
 0x677   :  { %4706 = vmatpush1.bf16.msra.mxu0 %v7715_v58  ;;  %4870 = vmatpush1.bf16.msra.mxu1 %v7718_v59  ;;  %v3010_v58 = vmax.f32 %v6866_v13, %v3002_v53  ;;  %v7799_v59 = vld [vmem:[#allocation7 + $0x20] ss:$40 sps:$4 sm:$0xff]  }
 0x678   :  { %4707 = vmatprep.subr.bf16.mxu0 %v7723_v61  ;;  %4871 = vmatprep.subr.bf16.mxu1 %v7726_v62  ;;  %v7804_v62 = vld [vmem:[#allocation7 + $0x74] ss:$40 sps:$4 sm:$0xff]  }
 0x679   :  { %v3274_v61 = vpack.c.bf16 %v3010_v58, %v3010_v58 }
 0x67b   :  { %4708 = vmatpush1.bf16.msra.mxu0 %v7721_v1  ;;  %4872 = vmatpush1.bf16.msra.mxu1 %v7724_v2  ;;  %v7802_v1 = vld [vmem:[#allocation7 + $0x70] ss:$40 sps:$4 sm:$0xff]   ;;  %v7807_v2 = vld [vmem:[#allocation7 + $0xc4] ss:$40 sps:$4 sm:$0xff]  }
 0x67c   :  { %4709 = vmatprep.subr.bf16.mxu0 %v7729_v3  ;;  %4873 = vmatprep.subr.bf16.mxu1 %v7732_v4  ;;  %v7805_v3 = vld [vmem:[#allocation7 + $0xc0] ss:$40 sps:$4 sm:$0xff]   ;;  %v7810_v4 = vld [vmem:[#allocation7 + $0x114] ss:$40 sps:$4 sm:$0xff]  }
 0x67f   :  { %4710 = vmatpush1.bf16.msra.mxu0 %v7727_v35  ;;  %4874 = vmatpush1.bf16.msra.mxu1 %v7730_v5  ;;  %v7808_v35 = vld [vmem:[#allocation7 + $0x110] ss:$40 sps:$4 sm:$0xff]   ;;  %v7813_v5 = vld [vmem:[#allocation7 + $0x164] ss:$40 sps:$4 sm:$0xff]  }
 0x680   :  { %4711 = vmatprep.subr.bf16.mxu0 %v7735_v6  ;;  %4875 = vmatprep.subr.bf16.mxu1 %v7738_v7  ;;  %v7811_v6 = vld [vmem:[#allocation7 + $0x160] ss:$40 sps:$4 sm:$0xff]   ;;  %v7816_v7 = vld [vmem:[#allocation7 + $0x1b4] ss:$40 sps:$4 sm:$0xff]  }
 0x683   :  { %4712 = vmatpush1.bf16.msra.mxu0 %v7733_v8  ;;  %4876 = vmatpush1.bf16.msra.mxu1 %v7736_v40  ;;  %v7814_v8 = vld [vmem:[#allocation7 + $0x1b0] ss:$40 sps:$4 sm:$0xff]   ;;  %v7819_v40 = vld [vmem:[#allocation7 + $0x204] ss:$40 sps:$4 sm:$0xff]  }
 0x684   :  { %4713 = vmatprep.subr.bf16.mxu0 %v7741_v41  ;;  %4877 = vmatprep.subr.bf16.mxu1 %v7744_v9  ;;  %v7817_v41 = vld [vmem:[#allocation7 + $0x200] ss:$40 sps:$4 sm:$0xff]   ;;  %v7822_v9 = vld [vmem:[#allocation7 + $0x254] ss:$40 sps:$4 sm:$0xff]  }
 0x687   :  { %4714 = vmatpush1.bf16.msra.mxu0 %v7739_v10  ;;  %4878 = vmatpush1.bf16.msra.mxu1 %v7742_v12  ;;  %v7820_v10 = vld [vmem:[#allocation7 + $0x250] ss:$40 sps:$4 sm:$0xff]   ;;  %v7825_v12 = vld [vmem:[#allocation7 + $0x2a4] ss:$40 sps:$4 sm:$0xff]  }
 0x688   :  { %4715 = vmatprep.subr.bf16.mxu0 %v7747_v15  ;;  %4879 = vmatprep.subr.bf16.mxu1 %v7750_v17  ;;  %v7823_v15 = vld [vmem:[#allocation7 + $0x2a0] ss:$40 sps:$4 sm:$0xff]   ;;  %v7828_v17 = vld [vmem:[#allocation7 + $0x2f4] ss:$40 sps:$4 sm:$0xff]  }
 0x68b   :  { %4716 = vmatpush1.bf16.msra.mxu0 %v7745_v18  ;;  %4880 = vmatpush1.bf16.msra.mxu1 %v7748_v19  ;;  %v7826_v18 = vld [vmem:[#allocation7 + $0x2f0] ss:$40 sps:$4 sm:$0xff]   ;;  %v7831_v19 = vld [vmem:[#allocation7 + $0x344] ss:$40 sps:$4 sm:$0xff]  }
 0x68c   :  { %4717 = vmatprep.subr.bf16.mxu0 %v7753_v20  ;;  %4881 = vmatprep.subr.bf16.mxu1 %v7756_v21  ;;  %v7829_v20 = vld [vmem:[#allocation7 + $0x340] ss:$40 sps:$4 sm:$0xff]   ;;  %v7834_v21 = vld [vmem:[#allocation7 + $0x394] ss:$40 sps:$4 sm:$0xff]  }
 0x68f   :  { %4718 = vmatpush1.bf16.msra.mxu0 %v7751_v22  ;;  %4882 = vmatpush1.bf16.msra.mxu1 %v7754_v24  ;;  %v7832_v22 = vld [vmem:[#allocation7 + $0x390] ss:$40 sps:$4 sm:$0xff]   ;;  %v7837_v24 = vld [vmem:[#allocation7 + $0x3e4] ss:$40 sps:$4 sm:$0xff]  }
 0x690   :  { %4719 = vmatprep.subr.bf16.mxu0 %v7759_v25  ;;  %4883 = vmatprep.subr.bf16.mxu1 %v7762_v26  ;;  %v7835_v25 = vld [vmem:[#allocation7 + $0x3e0] ss:$40 sps:$4 sm:$0xff]   ;;  %v7840_v26 = vld [vmem:[#allocation7 + $0x434] ss:$40 sps:$4 sm:$0xff]  }
 0x693   :  { %4720 = vmatpush1.bf16.msra.mxu0 %v7757_v27  ;;  %4884 = vmatpush1.bf16.msra.mxu1 %v7760_v28  ;;  %v7838_v27 = vld [vmem:[#allocation7 + $0x430] ss:$40 sps:$4 sm:$0xff]   ;;  %v7843_v28 = vld [vmem:[#allocation7 + $0x484] ss:$40 sps:$4 sm:$0xff]  }
 0x694   :  { %4721 = vmatprep.subr.bf16.mxu0 %v7765_v57  ;;  %4885 = vmatprep.subr.bf16.mxu1 %v7768_v29  ;;  %v7841_v57 = vld [vmem:[#allocation7 + $0x480] ss:$40 sps:$4 sm:$0xff]   ;;  %v7846_v29 = vld [vmem:[#allocation7 + $0x4d4] ss:$40 sps:$4 sm:$0xff]  }
 0x697   :  { %4722 = vmatpush1.bf16.msra.mxu0 %v7763_v30  ;;  %4886 = vmatpush1.bf16.msra.mxu1 %v7766_v31  ;;  %v7844_v30 = vld [vmem:[#allocation7 + $0x4d0] ss:$40 sps:$4 sm:$0xff]   ;;  %v7849_v31 = vld [vmem:[#allocation7 + $0x524] ss:$40 sps:$4 sm:$0xff]  }
 0x698   :  { %4723 = vmatprep.subr.bf16.mxu0 %v7771_v32  ;;  %4887 = vmatprep.subr.bf16.mxu1 %v7774_v60  ;;  %v7895_v32 = vld [vmem:[#allocation5 + $0x150] ss:$20 sps:$4 sm:$0xff]  }
 0x699   :  { %v7896_v60 = vld [vmem:[#allocation5 + $0x10] ss:$20 sps:$4 sm:$0xff]  }
 0x69b   :  { %4724 = vmatpush1.bf16.msra.mxu0 %v7769_v33  ;;  %4888 = vmatpush1.bf16.msra.mxu1 %v7772_v37  ;;  %v7897_v33 = vld [vmem:[#allocation5 + $0x178] ss:$20 sps:$4 sm:$0xff]  }
 0x69c   :  { %4725 = vmatprep.subr.bf16.mxu0 %v7777_v63  ;;  %4889 = vmatprep.subr.bf16.mxu1 %v7780_v39  ;;  %v7898_v37 = vld [vmem:[#allocation5 + $0x38] ss:$20 sps:$4 sm:$0xff]   ;;  %v7900_v63 = vld [vmem:[#allocation5 + $0x60] ss:$20 sps:$4 sm:$0xff]   ;;  %v7901_v39 = vld [vmem:[#allocation5 + $0x1c8] ss:$20 sps:$4 sm:$0xff]  }
 0x69f   :  { %4726 = vmatpush1.bf16.msra.mxu0 %v7775_v42  ;;  %4890 = vmatpush1.bf16.msra.mxu1 %v7778_v11  ;;  %v7902_v42 = vld [vmem:[#allocation5 + $0x88] ss:$20 sps:$4 sm:$0xff]   ;;  %v7903_v11 = vld [vmem:[#allocation5 + $0x1f0] ss:$20 sps:$4 sm:$0xff]  }
 0x6a0   :  { %4727 = vmatprep.subr.bf16.mxu0 %v7783_v44  ;;  %4891 = vmatprep.subr.bf16.mxu1 %v7786_v45  ;;  %v7905_v44 = vld [vmem:[#allocation5 + $0x218] ss:$20 sps:$4 sm:$0xff]   ;;  %v8273_v45 = vld [vmem:[#allocation10 + $0x11] sm:$0xf] }
 0x6a1   :  { %v3293_v13 = vrot.slane %v8273_v45, %v8209_v36  ;;  %v7847_v36 = vld [vmem:[#allocation7 + $0x520] ss:$40 sps:$4 sm:$0xff]  }
 0x6a3   :  { %4728 = vmatpush1.bf16.msra.mxu0 %v7781_v46  ;;  %4892 = vmatpush1.bf16.msra.mxu1 %v7784_v47  ;;  %v3281_v46 = vrot.slane %v8273_v45, %v8199_v14  ;;  %v3285_v47 = vrot.slane %v8273_v45, %v8202_v16 }
 0x6a4   :  { %4729 = vmatprep.subr.bf16.mxu0 %v7789_v48  ;;  %4893 = vmatprep.subr.bf16.mxu1 %v7792_v50 }
 0x6a7   :  { %4730 = vmatpush1.bf16.msra.mxu0 %v7787_v51  ;;  %4894 = vmatpush1.bf16.msra.mxu1 %v7790_v52 }
 0x6a8   :  { %4731 = vmatprep.subr.bf16.mxu0 %v7795_v34  ;;  %4895 = vmatprep.subr.bf16.mxu1 %v7798_v54 }
 0x6ab   :  { %4732 = vmatpush1.bf16.msra.mxu0 %v7793_v55  ;;  %4896 = vmatpush1.bf16.msra.mxu1 %v7796_v56 }
 0x6ac   :  { %5314 = vmatprep.subr.bf16.mxu0 %v7801_v23  ;;  %6691 = vmatprep.subr.bf16.mxu1 %v7895_v32  ;;  %v3289_v32 = vrot.slane %v8273_v45, %v8232_v49  ;;  %v7906_v49 = vld [vmem:[#allocation5 + $0xd8] ss:$20 sps:$4 sm:$0xff]   ;;  %v7907_v45 = vld [vmem:[#allocation5 + $0x240] ss:$20 sps:$4 sm:$0xff]  }
 0x6ae   :  { %4734 = vmatmul.mubr.bf16.vlgmr.msra.gmra.mrb[20].mxu0 %v3274_v61  ;;  %4898 = vmatmul.mubr.bf16.vlgmr.msra.gmra.mrb[20].mxu1 %v3274_v61 }
 0x6af   :  { %5315 = vmatpush1.bf16.msra.mxu0 %v7799_v59  ;;  %6692 = vmatpush3.bf16.msra.mxu1 %v7896_v60  ;;  %v7888_v60 = vld [vmem:[#allocation7 + $0x934] ss:$40 sps:$4 sm:$0xff]  }
 0x6b0   :  { %5316 = vmatprep.subr.bf16.mxu0 %v7804_v62  ;;  %6693 = vmatprep.subr.bf16.mxu1 %v7897_v33  ;;  %v7886_v33 = vld [vmem:[#allocation7 + $0x930] ss:$40 sps:$4 sm:$0xff]  }
 0x6b3   :  { %5317 = vmatpush1.bf16.msra.mxu0 %v7802_v1  ;;  %6694 = vmatpush3.bf16.msra.mxu1 %v7898_v37 }
 0x6b4   :  { %5318 = vmatprep.subr.bf16.mxu0 %v7807_v2  ;;  %6695 = vmatprep.subr.bf16.mxu1 %v7899_v38  ;;  %v7891_v38 = vld [vmem:[#allocation7 + $0x984] ss:$40 sps:$4 sm:$0xff]  }
 0x6b7   :  { %5319 = vmatpush1.bf16.msra.mxu0 %v7805_v3  ;;  %6696 = vmatpush3.bf16.msra.mxu1 %v7900_v63  ;;  %v7889_v63 = vld [vmem:[#allocation7 + $0x980] ss:$40 sps:$4 sm:$0xff]  }
 0x6b8   :  { %5320 = vmatprep.subr.bf16.mxu0 %v7810_v4  ;;  %6697 = vmatprep.subr.bf16.mxu1 %v7901_v39 }
 0x6bb   :  { %5321 = vmatpush1.bf16.msra.mxu0 %v7808_v35  ;;  %6698 = vmatpush3.bf16.msra.mxu1 %v7902_v42  ;;  %v7894_v42 = vld [vmem:[#allocation7 + $0x9d4] ss:$40 sps:$4 sm:$0xff]  }
 0x6bc   :  { %5322 = vmatprep.subr.bf16.mxu0 %v7813_v5  ;;  %6699 = vmatprep.subr.bf16.mxu1 %v7903_v11  ;;  %v7852_v5 = vld [vmem:[#allocation7 + $0x574] ss:$40 sps:$4 sm:$0xff]   ;;  %v7892_v11 = vld [vmem:[#allocation7 + $0x9d0] ss:$40 sps:$4 sm:$0xff]  }
 0x6bf   :  { %5323 = vmatpush1.bf16.msra.mxu0 %v7811_v6  ;;  %6700 = vmatpush3.bf16.msra.mxu1 %v7904_v43 }
 0x6c0   :  { %5324 = vmatprep.subr.bf16.mxu0 %v7816_v7  ;;  %6701 = vmatprep.subr.bf16.mxu1 %v7905_v44  ;;  %v7850_v7 = vld [vmem:[#allocation7 + $0x570] ss:$40 sps:$4 sm:$0xff]  }
 0x6c3   :  { %5325 = vmatpush1.bf16.msra.mxu0 %v7814_v8  ;;  %v7855_v8 = vld [vmem:[#allocation7 + $0x5c4] ss:$40 sps:$4 sm:$0xff]   ;;  %6702 = vmatpush3.bf16.msra.mxu1 %v7906_v49  ;;  %v5699_v49 = vld [vmem:[#allocation2 + $0xd8] sm:$0xf] }
 0x6c4   :  { %5326 = vmatprep.subr.bf16.mxu0 %v7819_v40  ;;  %v7853_v40 = vld [vmem:[#allocation7 + $0x5c0] ss:$40 sps:$4 sm:$0xff]   ;;  %6703 = vmatprep.subr.bf16.mxu1 %v7907_v45  ;;  %v5700_v45 = vld [vmem:[#allocation2 + $0xf8] sm:$0xf] }
 0x6c7   :  { %5327 = vmatpush1.bf16.msra.mxu0 %v7817_v41  ;;  %v7858_v41 = vld [vmem:[#allocation7 + $0x614] ss:$40 sps:$4 sm:$0xff]  }
 0x6c8   :  { %5328 = vmatprep.subr.bf16.mxu0 %v7822_v9  ;;  %v7856_v9 = vld [vmem:[#allocation7 + $0x610] ss:$40 sps:$4 sm:$0xff]  }
 0x6cb   :  { %5329 = vmatpush1.bf16.msra.mxu0 %v7820_v10  ;;  %v7861_v10 = vld [vmem:[#allocation7 + $0x664] ss:$40 sps:$4 sm:$0xff]  }
 0x6cc   :  { %5330 = vmatprep.subr.bf16.mxu0 %v7825_v12  ;;  %v7859_v12 = vld [vmem:[#allocation7 + $0x660] ss:$40 sps:$4 sm:$0xff]  }
 0x6cf   :  { %5331 = vmatpush1.bf16.msra.mxu0 %v7823_v15  ;;  %v7864_v15 = vld [vmem:[#allocation7 + $0x6b4] ss:$40 sps:$4 sm:$0xff]  }
 0x6d0   :  { %5332 = vmatprep.subr.bf16.mxu0 %v7828_v17  ;;  %v7862_v17 = vld [vmem:[#allocation7 + $0x6b0] ss:$40 sps:$4 sm:$0xff]  }
 0x6d3   :  { %5333 = vmatpush1.bf16.msra.mxu0 %v7826_v18  ;;  %v7867_v18 = vld [vmem:[#allocation7 + $0x704] ss:$40 sps:$4 sm:$0xff]  }
 0x6d4   :  { %5334 = vmatprep.subr.bf16.mxu0 %v7831_v19  ;;  %v7865_v19 = vld [vmem:[#allocation7 + $0x700] ss:$40 sps:$4 sm:$0xff]  }
 0x6d7   :  { %5335 = vmatpush1.bf16.msra.mxu0 %v7829_v20  ;;  %v7870_v20 = vld [vmem:[#allocation7 + $0x754] ss:$40 sps:$4 sm:$0xff]  }
 0x6d8   :  { %5336 = vmatprep.subr.bf16.mxu0 %v7834_v21  ;;  %v7868_v21 = vld [vmem:[#allocation7 + $0x750] ss:$40 sps:$4 sm:$0xff]  }
 0x6db   :  { %5337 = vmatpush1.bf16.msra.mxu0 %v7832_v22  ;;  %v7873_v22 = vld [vmem:[#allocation7 + $0x7a4] ss:$40 sps:$4 sm:$0xff]  }
 0x6dc   :  { %5338 = vmatprep.subr.bf16.mxu0 %v7837_v24  ;;  %v7871_v24 = vld [vmem:[#allocation7 + $0x7a0] ss:$40 sps:$4 sm:$0xff]  }
 0x6df   :  { %5339 = vmatpush1.bf16.msra.mxu0 %v7835_v25  ;;  %v7876_v25 = vld [vmem:[#allocation7 + $0x7f4] ss:$40 sps:$4 sm:$0xff]  }
 0x6e0   :  { %5340 = vmatprep.subr.bf16.mxu0 %v7840_v26  ;;  %v7874_v26 = vld [vmem:[#allocation7 + $0x7f0] ss:$40 sps:$4 sm:$0xff]  }
 0x6e3   :  { %5341 = vmatpush1.bf16.msra.mxu0 %v7838_v27  ;;  %v7879_v27 = vld [vmem:[#allocation7 + $0x844] ss:$40 sps:$4 sm:$0xff]  }
 0x6e4   :  { %5342 = vmatprep.subr.bf16.mxu0 %v7843_v28  ;;  %v7877_v28 = vld [vmem:[#allocation7 + $0x840] ss:$40 sps:$4 sm:$0xff]  }
 0x6e7   :  { %5343 = vmatpush1.bf16.msra.mxu0 %v7841_v57  ;;  %v7882_v57 = vld [vmem:[#allocation7 + $0x894] ss:$40 sps:$4 sm:$0xff]  }
 0x6e8   :  { %5344 = vmatprep.subr.bf16.mxu0 %v7846_v29  ;;  %v7880_v29 = vld [vmem:[#allocation7 + $0x890] ss:$40 sps:$4 sm:$0xff]  }
 0x6eb   :  { %5345 = vmatpush1.bf16.msra.mxu0 %v7844_v30  ;;  %v7885_v30 = vld [vmem:[#allocation7 + $0x8e4] ss:$40 sps:$4 sm:$0xff]  }
 0x6ec   :  { %5355 = vmatprep.subr.bf16.mxu0 %v7849_v31  ;;  %v7883_v31 = vld [vmem:[#allocation7 + $0x8e0] ss:$40 sps:$4 sm:$0xff]  }
 0x781   :  { %v4735_v48 = vpop.f32.mrb[20].mxu0  ;;  %v8281_v50 = vpop.f32.mrb[20].mxu1 }
 0x782   :  { %v6868_v51 = vadd.f32 %v4735_v48, %v3281_v46  ;;  %v4737_v52 = vpop.f32.mrb[21].mxu0  ;;  %v4901_v53 = vpop.f32.mrb[21].mxu1  ;;  %v6870_v37 = vadd.f32 %v8281_v50, %v3289_v32  ;;  %v7908_v46 = vld [vmem:[#allocation5 + $0x100] ss:$20 sps:$4 sm:$0xff]   ;;  %v5693_v32 = vld [vmem:[#allocation2 + $0x18] sm:$0xf] }
 0x783   :  { %v6869_v34 = vadd.f32 %v4737_v52, %v3285_v47  ;;  %v6871_v54 = vadd.f32 %v4901_v53, %v3293_v13  ;;  %v4739_v55 = vpop.f32.mrb[22].mxu0  ;;  %v4903_v56 = vpop.f32.mrb[22].mxu1  ;;  %6704 = vmatpush3.bf16.msra.mxu1 %v7908_v46  ;;  %v7909_v47 = vld [vmem:[#allocation5 + $0x268] ss:$20 sps:$4 sm:$0xff]   ;;  %v4982_v48 = vld [vmem:[#allocation10 + $0x15] sm:$0x3]  ;;  %v6650_v46 = vcombine.low %v5699_v49, %v5700_v45 }
 0x784   :  { %v4906_v58 = vmul.f32 0.01, %v6868_v51  ;;  %v4740_v23 = vpop.f32.mrb[23].mxu0  ;;  %v4904_v59 = vpop.f32.mrb[23].mxu1  ;;  %v4908_v39 = vmul.f32 0.01, %v6870_v37  ;;  %6705 = vmatprep.subr.bf16.mxu1 %v7909_v47  ;;  %v4987_v50 = vrot.slane %v4982_v48, %v8199_v14 }
 0x785   :  { %v4907_v61 = vmul.f32 0.01, %v6869_v34  ;;  %v4909_v62 = vmul.f32 0.01, %v6871_v54  ;;  %v7910_v13 = vld [vmem:[#allocation5 + $0x128] ss:$20 sps:$4 sm:$0xff]  }
 0x786   :  { %v4910_v1 = vmax.f32 %v6868_v51, %v4906_v58  ;;  %v4912_v43 = vmax.f32 %v6870_v37, %v4908_v39  ;;  %v4991_v51 = vrot.slane %v4982_v48, %v8202_v16  ;;  %v5583_v16 = vld [vmem:[#allocation2 + $0x94] sm:$0xf]  ;;  %v5696_v39 = vld [vmem:[#allocation2 + $0x78] sm:$0xf] }
 0x787   :  { %v4911_v2 = vmax.f32 %v6869_v34, %v4907_v61  ;;  %v4913_v3 = vmax.f32 %v6871_v54, %v4909_v62  ;;  %6706 = vmatpush3.bf16.msra.mxu1 %v7910_v13  ;;  %v5579_v61 = vld [vmem:[#allocation2 + $0x14] sm:$0xf]  ;;  %v5701_v47 = vld [vmem:[#allocation2 + $0x118] sm:$0xf] }
 0x788   :  { %v4978_v35 = vpack.c.bf16 %v4910_v1, %v4910_v1  ;;  %v4980_v44 = vpack.c.bf16 %v4912_v43, %v4912_v43  ;;  %6800 = vmatprep.subr.bf16.mxu1 %v8064_v0  ;;  %v5580_v62 = vld [vmem:[#allocation2 + $0x34] sm:$0xf]  ;;  %v5698_v43 = vld [vmem:[#allocation2 + $0xb8] sm:$0xf] }
 0x789   :  { %v4979_v4 = vpack.c.bf16 %v4911_v2, %v4911_v2  ;;  %v4981_v6 = vpack.c.bf16 %v4913_v3, %v4913_v3  ;;  %v6638_v3 = vcombine.low %v5579_v61, %v5580_v62  ;;  %v5702_v13 = vld [vmem:[#allocation2 + $0x138] sm:$0xf] }
 0x78a   :  { %v6651_v48 = vcombine.low %v5701_v47, %v5702_v13 }
 0x78b   :  { %5346 = vmatprep.mubr.bf16.mxu0 %v4979_v4 }
 0x78c   :  { %5347 = vmatmul.mubr.bf16.vlgmr.msra.gmra.mrb[24].mxu0 %v4978_v35  ;;  %v5582_v35 = vld [vmem:[#allocation2 + $0x74] sm:$0xf] }
 0x78d   :  { %5356 = vmatpush1.bf16.msra.mxu0 %v7847_v36  ;;  %5387 = vmatprep.mubr.bf16.mxu0 %v4981_v6  ;;  %v5581_v36 = vld [vmem:[#allocation2 + $0x54] sm:$0xf] }
 0x78e   :  { %5357 = vmatprep.subr.bf16.mxu0 %v7852_v5  ;;  %v6639_v14 = vcombine.low %v5581_v36, %v5582_v35  ;;  %v5584_v5 = vld [vmem:[#allocation2 + $0xb4] sm:$0xf]  ;;  %v5808_v36 = vld [vmem:[#allocation2 + $0x3c] sm:$0xf] }
 0x78f   :  { %v6640_v6 = vcombine.low %v5583_v16, %v5584_v5  ;;  %v5809_v5 = vld [vmem:[#allocation2 + $0x5c] sm:$0xf] }
 0x791   :  { %5358 = vmatpush1.bf16.msra.mxu0 %v7850_v7  ;;  %v5585_v7 = vld [vmem:[#allocation2 + $0xd4] sm:$0xf] }
 0x792   :  { %5359 = vmatprep.subr.bf16.mxu0 %v7855_v8  ;;  %v5586_v8 = vld [vmem:[#allocation2 + $0xf4] sm:$0xf] }
 0x795   :  { %5360 = vmatpush1.bf16.msra.mxu0 %v7853_v40  ;;  %v6641_v40 = vcombine.low %v5585_v7, %v5586_v8  ;;  %v5811_v8 = vld [vmem:[#allocation2 + $0x9c] sm:$0xf] }
 0x796   :  { %5361 = vmatprep.subr.bf16.mxu0 %v7858_v41  ;;  %v5587_v41 = vld [vmem:[#allocation2 + $0x114] sm:$0xf] }
 0x799   :  { %5362 = vmatpush1.bf16.msra.mxu0 %v7856_v9  ;;  %v5588_v9 = vld [vmem:[#allocation2 + $0x134] sm:$0xf] }
 0x79a   :  { %5363 = vmatprep.subr.bf16.mxu0 %v7861_v10  ;;  %v6642_v10 = vcombine.low %v5587_v41, %v5588_v9  ;;  %v5813_v9 = vld [vmem:[#allocation2 + $0xdc] sm:$0xf] }
 0x79d   :  { %5364 = vmatpush1.bf16.msra.mxu0 %v7859_v12  ;;  %v5589_v12 = vld [vmem:[#allocation2 + $0x154] sm:$0xf] }
 0x79e   :  { %5365 = vmatprep.subr.bf16.mxu0 %v7864_v15  ;;  %v5590_v15 = vld [vmem:[#allocation2 + $0x174] sm:$0xf] }
 0x7a1   :  { %5366 = vmatpush1.bf16.msra.mxu0 %v7862_v17  ;;  %v6643_v17 = vcombine.low %v5589_v12, %v5590_v15  ;;  %v5815_v15 = vld [vmem:[#allocation2 + $0x11c] sm:$0xf] }
 0x7a2   :  { %5367 = vmatprep.subr.bf16.mxu0 %v7867_v18  ;;  %v5591_v18 = vld [vmem:[#allocation2 + $0x194] sm:$0xf] }
 0x7a5   :  { %5368 = vmatpush1.bf16.msra.mxu0 %v7865_v19  ;;  %v5592_v19 = vld [vmem:[#allocation2 + $0x1b4] sm:$0xf] }
 0x7a6   :  { %5369 = vmatprep.subr.bf16.mxu0 %v7870_v20  ;;  %v6644_v20 = vcombine.low %v5591_v18, %v5592_v19  ;;  %v5817_v19 = vld [vmem:[#allocation2 + $0x15c] sm:$0xf] }
 0x7a9   :  { %5370 = vmatpush1.bf16.msra.mxu0 %v7868_v21  ;;  %v5593_v21 = vld [vmem:[#allocation2 + $0x1d4] sm:$0xf] }
 0x7aa   :  { %5371 = vmatprep.subr.bf16.mxu0 %v7873_v22  ;;  %v5594_v22 = vld [vmem:[#allocation2 + $0x1f4] sm:$0xf] }
 0x7ad   :  { %5372 = vmatpush1.bf16.msra.mxu0 %v7871_v24  ;;  %v6645_v24 = vcombine.low %v5593_v21, %v5594_v22  ;;  %v5819_v22 = vld [vmem:[#allocation2 + $0x19c] sm:$0xf] }
 0x7ae   :  { %5373 = vmatprep.subr.bf16.mxu0 %v7876_v25 }
 0x7b1   :  { %5374 = vmatpush1.bf16.msra.mxu0 %v7874_v26  ;;  %v6620_v26 = vld [vmem:[#allocation10 + $0x17] ss:$0 sm:$0xff] }
 0x7b2   :  { %5375 = vmatprep.subr.bf16.mxu0 %v7879_v27 }
 0x7b5   :  { %5376 = vmatpush1.bf16.msra.mxu0 %v7877_v28 }
 0x7b6   :  { %5377 = vmatprep.subr.bf16.mxu0 %v7882_v57 }
 0x7b9   :  { %5378 = vmatpush1.bf16.msra.mxu0 %v7880_v29 }
 0x7ba   :  { %5379 = vmatprep.subr.bf16.mxu0 %v7885_v30 }
 0x7bd   :  { %5380 = vmatpush1.bf16.msra.mxu0 %v7883_v31 }
 0x7be   :  { %5381 = vmatprep.subr.bf16.mxu0 %v7888_v60  ;;  %v5694_v60 = vld [vmem:[#allocation2 + $0x38] sm:$0xf] }
 0x7bf   :  { %v6647_v37 = vcombine.low %v5693_v32, %v5694_v60 }
 0x7c1   :  { %5382 = vmatpush1.bf16.msra.mxu0 %v7886_v33 }
 0x7c2   :  { %5383 = vmatprep.subr.bf16.mxu0 %v7891_v38 }
 0x7c5   :  { %5384 = vmatpush1.bf16.msra.mxu0 %v7889_v63  ;;  %v5695_v63 = vld [vmem:[#allocation2 + $0x58] sm:$0xf] }
 0x7c6   :  { %5385 = vmatprep.subr.bf16.mxu0 %v7894_v42  ;;  %v6648_v42 = vcombine.low %v5695_v63, %v5696_v39  ;;  %v6655_v63 = vld [vmem:[#allocation10 + $0x1a] ss:$0 sm:$0xff] }
 0x7c9   :  { %5386 = vmatpush1.bf16.msra.mxu0 %v7892_v11  ;;  %v5697_v11 = vld [vmem:[#allocation2 + $0x98] sm:$0xf] }
 0x7cc   :  { %5388 = vmatmul.mubr.bf16.vlgmr.msra.gmra.mrb[24].mxu0 %v4980_v44  ;;  %v6649_v44 = vcombine.low %v5697_v11, %v5698_v43 }
 0x89f   :  { %v5389_v52 = vpop.f32.mrb[24].mxu0 }
 0x8a0   :  { %v6872_v53 = vadd.f32 %v5389_v52, %v4987_v50  ;;  %v5391_v34 = vpop.f32.mrb[25].mxu0  ;;  %v5703_v50 = vld [vmem:[#allocation2 + $0x158] sm:$0xf] }
 0x8a1   :  { %v6873_v54 = vadd.f32 %v5391_v34, %v4991_v51  ;;  %v5393_v55 = vpop.f32.mrb[26].mxu0  ;;  %v5704_v51 = vld [vmem:[#allocation2 + $0x178] sm:$0xf] }
 0x8a2   :  { %v5396_v56 = vmul.f32 0.01, %v6872_v53  ;;  %v5394_v58 = vpop.f32.mrb[27].mxu0  ;;  %v6652_v52 = vcombine.low %v5703_v50, %v5704_v51  ;;  %v5706_v34 = vld [vmem:[#allocation2 + $0x1b8] sm:$0xf] }
 0x8a3   :  { %v5397_v23 = vmul.f32 0.01, %v6873_v54  ;;  %v5707_v55 = vld [vmem:[#allocation2 + $0x1d8] sm:$0xf] }
 0x8a4   :  { %v5398_v59 = vmax.f32 %v6872_v53, %v5396_v56  ;;  %v5705_v53 = vld [vmem:[#allocation2 + $0x198] sm:$0xf] }
 0x8a5   :  { %v5399_v1 = vmax.f32 %v6873_v54, %v5397_v23  ;;  %v6653_v54 = vcombine.low %v5705_v53, %v5706_v34  ;;  %v5708_v56 = vld [vmem:[#allocation2 + $0x1f8] sm:$0xf] }
 0x8a6   :  { %v5432_v4 = vpack.c.bf16 %v5398_v59, %v5398_v59  ;;  %v6654_v58 = vcombine.low %v5707_v55, %v5708_v56  ;;  %v6637_v23 = vld [vmem:[#allocation10 + $0x18] ss:$0 sm:$0xff] }
 0x8a7   :  { %v5433_v2 = vpack.c.bf16 %v5399_v1, %v5399_v1 }
 0x8a9   :  { %5569 = vmatprep.mubr.bf16.mxu1 %v5433_v2  ;;  %v5807_v2 = vld [vmem:[#allocation2 + $0x1c] sm:$0xf] }
 0x8aa   :  { %5570 = vmatmul.mubr.bf16.vlgmr.msra.gmra.mrb[24].mxu1 %v5432_v4 }
 0x8ab   :  { %6801 = vmatpush3.bf16.msra.mxu1 %v6638_v3  ;;  %6816 = vmatprep.mubr.msk.bf16.mxu1 %vm8065_vm0, %v8064_v0 }
 0x8ac   :  { %6802 = vmatprep.subr.bf16.mxu1 %v8064_v0 }
 0x8af   :  { %6803 = vmatpush3.bf16.msra.mxu1 %v6639_v14  ;;  %v6656_v14 = vcombine.low %v5807_v2, %v5808_v36 }
 0x8b0   :  { %6804 = vmatprep.subr.bf16.mxu1 %v8064_v0 }
 0x8b3   :  { %6805 = vmatpush3.bf16.msra.mxu1 %v6640_v6  ;;  %v5810_v6 = vld [vmem:[#allocation2 + $0x7c] sm:$0xf] }
 0x8b4   :  { %6806 = vmatprep.subr.bf16.mxu1 %v8064_v0  ;;  %v6657_v7 = vcombine.low %v5809_v5, %v5810_v6 }
 0x8b7   :  { %6807 = vmatpush3.bf16.msra.mxu1 %v6641_v40  ;;  %v5812_v40 = vld [vmem:[#allocation2 + $0xbc] sm:$0xf] }
 0x8b8   :  { %6808 = vmatprep.subr.bf16.mxu1 %v8064_v0  ;;  %v6658_v41 = vcombine.low %v5811_v8, %v5812_v40 }
 0x8bb   :  { %6809 = vmatpush3.bf16.msra.mxu1 %v6642_v10  ;;  %v5814_v10 = vld [vmem:[#allocation2 + $0xfc] sm:$0xf] }
 0x8bc   :  { %6810 = vmatprep.subr.bf16.mxu1 %v8064_v0  ;;  %v6659_v12 = vcombine.low %v5813_v9, %v5814_v10 }
 0x8bf   :  { %6811 = vmatpush3.bf16.msra.mxu1 %v6643_v17  ;;  %v5816_v17 = vld [vmem:[#allocation2 + $0x13c] sm:$0xf] }
 0x8c0   :  { %6812 = vmatprep.subr.bf16.mxu1 %v8064_v0  ;;  %v6660_v18 = vcombine.low %v5815_v15, %v5816_v17 }
 0x8c3   :  { %6813 = vmatpush3.bf16.msra.mxu1 %v6644_v20  ;;  %v5818_v20 = vld [vmem:[#allocation2 + $0x17c] sm:$0xf] }
 0x8c4   :  { %6814 = vmatprep.subr.bf16.mxu1 %v8064_v0  ;;  %v6661_v21 = vcombine.low %v5817_v19, %v5818_v20 }
 0x8c7   :  { %6815 = vmatpush3.bf16.msra.mxu1 %v6645_v24  ;;  %v5820_v24 = vld [vmem:[#allocation2 + $0x1bc] sm:$0xf] }
 0x8c8   :  { %6820 = vmatprep.subr.bf16.mxu1 %v8064_v0 }
 0x97d   :  { %v6707_v25 = vpop.f32.mrb[24].mxu1 }
 0x97e   :  { %v6708_v27 = vpop.f32.mrb[25].mxu1 }
 0x97f   :  { %v6709_v28 = vadd.f32 %v6708_v27, %v6707_v25  ;;  %v6710_v57 = vpop.f32.mrb[26].mxu1  ;;  %v6662_v25 = vcombine.low %v5819_v22, %v5820_v24  ;;  %v5822_v27 = vld [vmem:[#allocation2 + $0x1fc] sm:$0xf] }
 0x980   :  { %v6711_v29 = vpop.f32.mrb[27].mxu1  ;;  %v6646_v57 = vld [vmem:[#allocation10 + $0x19] ss:$0 sm:$0xff] }
 0x981   :  { %v5572_v30 = vadd.f32 %v6709_v28, %v6620_v26  ;;  %v5821_v26 = vld [vmem:[#allocation2 + $0x1dc] sm:$0xf] }
 0x982   :  { %v6663_v28 = vcombine.low %v5821_v26, %v5822_v27 }
 0x983   :  { %v5577_v31 = vmul.f32 0.01, %v5572_v30 }
 0x985   :  { %v5578_v33 = vmax.f32 %v5572_v30, %v5577_v31 }
 0x987   :  { %v5595_v38 = vpack.c.bf16 %v5578_v33, %v5578_v33 }
 0x989   :  { %6817 = vmatmul.mubr.bf16.vlgmr.msra.gmra.mrb[28].mxu1 %v5595_v38 }
 0x98a   :  { %6821 = vmatpush3.bf16.msra.mxu1 %v6647_v37  ;;  %6836 = vmatprep.mubr.msk.bf16.mxu1 %vm8065_vm0, %v8064_v0 }
 0x98b   :  { %6822 = vmatprep.subr.bf16.mxu1 %v8064_v0 }
 0x98e   :  { %6823 = vmatpush3.bf16.msra.mxu1 %v6648_v42 }
 0x98f   :  { %6824 = vmatprep.subr.bf16.mxu1 %v8064_v0 }
 0x992   :  { %6825 = vmatpush3.bf16.msra.mxu1 %v6649_v44 }
 0x993   :  { %6826 = vmatprep.subr.bf16.mxu1 %v8064_v0 }
 0x996   :  { %6827 = vmatpush3.bf16.msra.mxu1 %v6650_v46 }
 0x997   :  { %6828 = vmatprep.subr.bf16.mxu1 %v8064_v0 }
 0x99a   :  { %6829 = vmatpush3.bf16.msra.mxu1 %v6651_v48 }
 0x99b   :  { %6830 = vmatprep.subr.bf16.mxu1 %v8064_v0 }
 0x99e   :  { %6831 = vmatpush3.bf16.msra.mxu1 %v6652_v52 }
 0x99f   :  { %6832 = vmatprep.subr.bf16.mxu1 %v8064_v0 }
 0x9a2   :  { %6833 = vmatpush3.bf16.msra.mxu1 %v6653_v54 }
 0x9a3   :  { %6834 = vmatprep.subr.bf16.mxu1 %v8064_v0 }
 0x9a6   :  { %6835 = vmatpush3.bf16.msra.mxu1 %v6654_v58 }
 0x9a7   :  { %6840 = vmatprep.subr.bf16.mxu1 %v8064_v0 }
 0xa5c   :  { %v5685_v59 = vpop.f32.mrb[28].mxu1 }
 0xa5d   :  { %v5686_v61 = vadd.f32 %v6637_v23, %v5685_v59  ;;  %v6818_v62 = vpop.f32.mrb[29].mxu1 }
 0xa5e   :  { %v5688_v1 = vpop.f32.mrb[30].mxu1 }
 0xa5f   :  { %v5691_v3 = vmul.f32 0.01, %v5686_v61  ;;  %v6819_v4 = vpop.f32.mrb[31].mxu1 }
 0xa61   :  { %v5692_v35 = vmax.f32 %v5686_v61, %v5691_v3 }
 0xa63   :  { %v5709_v16 = vpack.c.bf16 %v5692_v35, %v5692_v35 }
 0xa65   :  { %6837 = vmatmul.mubr.bf16.vlgmr.msra.gmra.mrb[32].mxu1 %v5709_v16 }
 0xa66   :  { %6841 = vmatpush3.bf16.msra.mxu1 %v6656_v14  ;;  %6856 = vmatprep.mubr.msk.bf16.mxu1 %vm8065_vm0, %v8064_v0 }
 0xa67   :  { %6842 = vmatprep.subr.bf16.mxu1 %v8064_v0 }
 0xa6a   :  { %6843 = vmatpush3.bf16.msra.mxu1 %v6657_v7 }
 0xa6b   :  { %6844 = vmatprep.subr.bf16.mxu1 %v8064_v0 }
 0xa6e   :  { %6845 = vmatpush3.bf16.msra.mxu1 %v6658_v41 }
 0xa6f   :  { %6846 = vmatprep.subr.bf16.mxu1 %v8064_v0 }
 0xa72   :  { %6847 = vmatpush3.bf16.msra.mxu1 %v6659_v12 }
 0xa73   :  { %6848 = vmatprep.subr.bf16.mxu1 %v8064_v0 }
 0xa76   :  { %6849 = vmatpush3.bf16.msra.mxu1 %v6660_v18 }
 0xa77   :  { %6850 = vmatprep.subr.bf16.mxu1 %v8064_v0 }
 0xa7a   :  { %6851 = vmatpush3.bf16.msra.mxu1 %v6661_v21 }
 0xa7b   :  { %6852 = vmatprep.subr.bf16.mxu1 %v8064_v0 }
 0xa7e   :  { %6853 = vmatpush3.bf16.msra.mxu1 %v6662_v25 }
 0xa7f   :  { %6854 = vmatprep.subr.bf16.mxu1 %v8064_v0 }
 0xa82   :  { %6855 = vmatpush3.bf16.msra.mxu1 %v6663_v28 }
 0xb38   :  { %v5799_v29 = vpop.f32.mrb[32].mxu1 }
 0xb39   :  { %v5800_v30 = vadd.f32 %v6646_v57, %v5799_v29  ;;  %v6838_v31 = vpop.f32.mrb[33].mxu1 }
 0xb3a   :  { %v5802_v32 = vpop.f32.mrb[34].mxu1 }
 0xb3b   :  { %v5805_v60 = vmul.f32 0.01, %v5800_v30  ;;  %v6839_v33 = vpop.f32.mrb[35].mxu1 }
 0xb3d   :  { %v5806_v37 = vmax.f32 %v5800_v30, %v5805_v60 }
 0xb3f   :  { %v5823_v38 = vpack.c.bf16 %v5806_v37, %v5806_v37 }
 0xb41   :  { %6857 = vmatmul.mubr.bf16.vlgmr.msra.gmra.mrb[36].mxu1 %v5823_v38 }
 0xc14   :  { %v5913_v39 = vpop.f32.mrb[36].mxu1 }
 0xc15   :  { %v5914_v42 = vadd.f32 %v6655_v63, %v5913_v39  ;;  %v6858_v0 = vpop.f32.mrb[37].mxu1 }
 0xc16   :  { %v5916_v11 = vpop.f32.mrb[38].mxu1 }
 0xc17   :  { %5919 = vst [vmem:[#allocation11] sm:$0xff] %v5914_v42  ;;  %v6859_v43 = vpop.f32.mrb[39].mxu1 }
 0xc18   :  { %8032 = shalt.err (!%p8029_p2)
}
 0xc19   :  { %s8033_s17 = scalar_lea.hbm %s8336_s6, 128 }
 0xc1a   :  { %p8034_p3 = scmp.ne.s32.totalorder %s8336_s6, %s8033_s17  ;;  %p8037_p4 = scmp.lt.u32.totalorder %s8033_s17, %s8336_s6 }
 0xc1c   :  { %p8039_p5 = pnand %p8037_p4, %p8034_p3 }
 0xc1e   :  { %8042 = shalt.err (!%p8039_p5)
}
 0xc1f   :  { %5929 = dma.vmem_to_hbm [thread:$0]  %s5927_s13, 128, %s8336_s6, [#allocation4]  }
 0xc20   :  { %8049 = dma.done.wait [#allocation4], 128  }
 0xc21   :  { %8050 = vsyncadd [#allocation4], 4294967168 }
 0xc22   :  { %5933 = vsyncpa [#allocation3], 1 }
 0xc23   :  { %5934 = vsyncpa [#allocation6], 1 }
 0xc24   :  { %5935 = vsyncpa [#allocation9], 1 }
 0xc25   :  { %5936 = vsyncpa [#allocation4], 1 }

</bundles_post_ra>
